<compile_context>
chip_gen: v7x
topology: tpu7x:2x2x1
jax: 0.10.0
libtpu: 0.0.40
codegen_flags: <defaults>
</compile_context>

<pallas_src>
import functools
import math

import jax
import jax.numpy as jnp
from jax.experimental import pallas as pl
from jax.experimental.pallas import tpu as pltpu

MXU_DTYPE = jnp.bfloat16      # MXU operand dtype (accumulation is always f32)
MASK_VALUE = -1e30            # finite additive-mask value (avoids -inf/NaN pitfalls)
LN_EPS = 1e-12                # BertConfig default layer_norm_eps


# ----------------------------- in-kernel helpers -----------------------------

def _mm(a, b):
    """[m,k] @ [k,n] on the MXU with bf16 operands and f32 accumulation."""
    return jnp.dot(a.astype(MXU_DTYPE), b.astype(MXU_DTYPE),
                   preferred_element_type=jnp.float32)


def _mm_t(a, b):
    """[m,k] @ [n,k]^T on the MXU with bf16 operands and f32 accumulation."""
    return jax.lax.dot_general(a.astype(MXU_DTYPE), b.astype(MXU_DTYPE),
                               (((1,), (1,)), ((), ())),
                               preferred_element_type=jnp.float32)


def _ln(x, g, b):
    mu = jnp.mean(x, axis=-1, keepdims=True)
    var = jnp.mean((x - mu) ** 2, axis=-1, keepdims=True)
    return (x - mu) * jax.lax.rsqrt(var + LN_EPS) * g + b


def _gelu(x):
    # TODO(synk): BERT uses exact erf-GELU; tanh approximation used for safe TPU lowering.
    return 0.5 * x * (1.0 + jnp.tanh(0.7978845608028654 * (x + 0.044715 * x * x * x)))


def _softmax(s):
    s = s - jnp.max(s, axis=-1, keepdims=True)
    p = jnp.exp(s)
    return p * pl.reciprocal(jnp.sum(p, axis=-1, keepdims=True), approx=True)


def _mhsa(h, wqkv, bqkv, wo, bo, n_head, mask):
    """Multi-head self-attention on one [S, D] slab; heads handled fully in-kernel."""
    S, D = h.shape
    dh = D // n_head
    scale = 1.0 / math.sqrt(dh)
    qkv = _mm(h, wqkv) + bqkv                               # [S, 3D]
    acc = jnp.zeros((S, D), jnp.float32)
    for hh in range(n_head):                                # static unroll (n_head small)
        q = qkv[:, hh * dh:(hh + 1) * dh]
        k = qkv[:, D + hh * dh:D + (hh + 1) * dh]
        v = qkv[:, 2 * D + hh * dh:2 * D + (hh + 1) * dh]
        s = _mm_t(q, k) * scale                             # [S, S]
        if mask is not None:
            s = jnp.where(mask, s, MASK_VALUE)
        p = _softmax(s)
        ctx = _mm(p, v)                                     # [S, dh]
        # (concat_h ctx_h) @ wo  ==  sum_h ctx_h @ wo[h*dh:(h+1)*dh, :]  (no lane concat)
        acc = acc + _mm(ctx, wo[hh * dh:(hh + 1) * dh, :])
    return acc + bo


# ------------------------- fused encoder + VQ kernel --------------------------

def _encoder_vq_kernel(x_emb_ref, enc_tt_ref, eln_g_ref, eln_b_ref,
                       wqkv_ref, bqkv_ref, wo_ref, bo_ref, ln1_g_ref, ln1_b_ref,
                       wi_ref, bi_ref, wo2_ref, bo2_ref, ln2_g_ref, ln2_b_ref,
                       pool_w_ref, pool_b_ref, d2l_w_ref, vq_e_ref, e_sq_ref,
                       z_ref, codes_ref, stats_ref,
                       *, n_head, n_groups, n_codes):
    x = x_emb_ref[0]                                        # [S, D]
    # BertEmbeddings: token embedding + token-type embedding, then LayerNorm.
    # TODO(synk): 'relative_key_query' relative-position attention terms not implemented.
    h = _ln(x + enc_tt_ref[...], eln_g_ref[...], eln_b_ref[...])

    # --- BERT encoder layer (self-attention has no mask) ---
    attn = _mhsa(h, wqkv_ref[...], bqkv_ref[...], wo_ref[...], bo_ref[...], n_head, None)
    h = _ln(attn + h, ln1_g_ref[...], ln1_b_ref[...])
    inter = _gelu(_mm(h, wi_ref[...]) + bi_ref[...])
    h = _ln(_mm(inter, wo2_ref[...]) + bo2_ref[...] + h, ln2_g_ref[...], ln2_b_ref[...])

    # --- pooler (first token) + D2latent ---
    pooled = jnp.tanh(_mm(h[0:1, :], pool_w_ref[...]) + pool_b_ref[...])    # [1, D]
    lat = _mm(pooled, d2l_w_ref[...])                                       # [1, d_latent]

    # --- vector quantization (eval mode: no codebook init / EMA update), f32 math ---
    emb = vq_e_ref[...]                                     # [C, dim]
    dim = emb.shape[1]
    ids = jax.lax.broadcasted_iota(jnp.int32, (1, n_codes), 1)
    stats_w = stats_ref.shape[-1]
    lane = jax.lax.broadcasted_iota(jnp.int32, (1, stats_w), 1)
    sq_sum = jnp.zeros((1, 1), jnp.float32)
    counts_pad = jnp.zeros((1, stats_w), jnp.float32)       # code c counted at lane c+1
    for g in range(n_groups):                               # static unroll (n_groups small)
        xg = lat[:, g * dim:(g + 1) * dim]                  # [1, dim]
        xg_sq = jnp.sum(xg * xg, axis=1, keepdims=True)
        xe = jax.lax.dot_general(xg, emb, (((1,), (1,)), ((), ())),
                                 preferred_element_type=jnp.float32)        # [1, C]
        dist = xg_sq - 2.0 * xe + e_sq_ref[...]             # e_sq precomputed outside
        # argmin with lowest-index tie break (matches torch (-distance).max(1)).
        neg = -dist
        mx = jnp.max(neg, axis=1, keepdims=True)
        cand = jnp.where(neg >= mx, ids.astype(jnp.float32), float(n_codes))
        idx_f = jnp.min(cand, axis=1, keepdims=True)                        # [1, 1]
        idx_i = idx_f.astype(jnp.int32)
        onehot = (ids == idx_i).astype(jnp.float32)                         # [1, C]
        # TODO(synk): for large codebooks replace the one-hot matmul gather with a DMA gather.
        qg = jax.lax.dot_general(onehot, emb, (((1,), (0,)), ((), ())),
                                 preferred_element_type=jnp.float32)        # [1, dim]
        sq_sum = sq_sum + jnp.sum((qg - xg) ** 2, axis=1, keepdims=True)
        counts_pad = counts_pad + (lane == (idx_i + 1)).astype(jnp.float32)
        z_ref[0, :, g * dim:(g + 1) * dim] = qg             # straight-through value == qg
        codes_ref[0, :, g:g + 1] = idx_i
    # lane 0: per-row squared error; lanes 1..C: per-row code counts (reduced outside).
    stats_ref[0] = jnp.where(lane == 0, sq_sum, counts_pad)


# ------------------------------ fused decoder kernel --------------------------

def _decoder_kernel(x_emb_ref, z_ref, l2d_w_ref, ap_w_ref, ap_b_ref, dec_tt_ref,
                    dln_g_ref, dln_b_ref,
                    wqkv_ref, bqkv_ref, wo_ref, bo_ref, lnsa_g_ref, lnsa_b_ref,
                    c_wkv_ref, c_bkv_ref, c_wo_ref, c_bo_ref, lnca_g_ref, lnca_b_ref,
                    wi_ref, bi_ref, wo2_ref, bo2_ref, lnm_g_ref, lnm_b_ref,
                    logw_ref, logb_ref, o_ref, *, n_head):
    x = x_emb_ref[0]                                        # [S, D]
    S, D = x.shape
    z = z_ref[0]                                            # [1, d_latent]
    init_state = _mm(z, l2d_w_ref[...])                     # [1, D]  latent2D (no bias)
    memory = _mm(init_state, ap_w_ref[...]) + ap_b_ref[...]  # [1, D]  attention_project
    h = _ln(x + init_state + dec_tt_ref[...], dln_g_ref[...], dln_b_ref[...])

    # --- masked self-attention: windowed-causal mask generated in-kernel ---
    row = jax.lax.broadcasted_iota(jnp.int32, (S, S), 0)
    col = jax.lax.broadcasted_iota(jnp.int32, (S, S), 1)
    allowed = jnp.logical_or(col <= row, col == 0)          # every row has >=1 valid key
    attn = _mhsa(h, wqkv_ref[...], bqkv_ref[...], wo_ref[...], bo_ref[...], n_head, allowed)
    h = _ln(attn + h, lnsa_g_ref[...], lnsa_b_ref[...])

    # --- cross-attention over `memory`: all max_seq_len memory rows are identical per
    # batch element, so softmax weights are uniform and the context equals the projected
    # memory value exactly (the query projection cancels out of the forward value). ---
    kv = _mm(memory, c_wkv_ref[...]) + c_bkv_ref[...]       # [1, 2D]
    v = kv[:, D:2 * D]                                      # [1, D]
    cross = _mm(v, c_wo_ref[...]) + c_bo_ref[...]           # [1, D], broadcast over S rows
    h = _ln(cross + h, lnca_g_ref[...], lnca_b_ref[...])

    # --- MLP ---
    inter = _gelu(_mm(h, wi_ref[...]) + bi_ref[...])
    h = _ln(_mm(inter, wo2_ref[...]) + bo2_ref[...] + h, lnm_g_ref[...], lnm_b_ref[...])

    # --- vocab logits into a lane-dense, 128-padded slab ---
    o_ref[0] = _mm(h, logw_ref[...]) + logb_ref[...]


# --------------------------------- wrappers ----------------------------------

def _round_up(n, m):
    return ((n + m - 1) // m) * m


def _rep_spec(shape):
    """Full-array block, identical for every grid step (weights / biases stay resident)."""
    zeros = (0,) * len(shape)
    return pl.BlockSpec(tuple(shape), lambda b, _z=zeros: _z)


def _batch_spec(shape):
    """Block over the leading (batch) axis; last two dims are full-extent."""
    blk = (1,) + tuple(shape[1:])
    rest = (0,) * (len(shape) - 1)
    return pl.BlockSpec(blk, lambda b, _r=rest: (b,) + _r)


def prepare_params(p, cfg):
    """One-time prep: fuse Q/K/V (and cross K/V) weights, pad logits to a lane-dense
    width, reshape biases/LN params to [1, N], cast matmul weights to bf16, and
    precompute the VQ codebook squared norms."""
    D, V = cfg["D"], cfg["vocab"]
    vpad = _round_up(V, 128)
    mxu = lambda w: w.astype(MXU_DTYPE)
    row = lambda v: v.reshape(1, -1).astype(jnp.float32)

    pp = {"tok_emb": p["tok_emb"]}
    # ---- encoder ----
    pp["enc_tt"] = row(p["enc_tt"])
    pp["enc_emb_ln_g"], pp["enc_emb_ln_b"] = row(p["enc_emb_ln_g"]), row(p["enc_emb_ln_b"])
    pp["e_wqkv"] = mxu(jnp.concatenate([p["e_wq"], p["e_wk"], p["e_wv"]], axis=1))
    pp["e_bqkv"] = row(jnp.concatenate([p["e_bq"], p["e_bk"], p["e_bv"]]))
    # self-attn output projections kept f32 so per-head row slices stay on an unpacked
    # layout; they are still cast to bf16 at the MXU boundary inside the kernel.
    pp["e_wo"], pp["e_bo"] = p["e_wo"].astype(jnp.float32), row(p["e_bo"])
    pp["e_ln1_g"], pp["e_ln1_b"] = row(p["e_ln1_g"]), row(p["e_ln1_b"])
    pp["e_wi"], pp["e_bi"] = mxu(p["e_wi"]), row(p["e_bi"])
    pp["e_wo2"], pp["e_bo2"] = mxu(p["e_wo2"]), row(p["e_bo2"])
    pp["e_ln2_g"], pp["e_ln2_b"] = row(p["e_ln2_g"]), row(p["e_ln2_b"])
    pp["pool_w"], pp["pool_b"] = mxu(p["pool_w"]), row(p["pool_b"])
    pp["d2l_w"] = mxu(p["d2l_w"])
    # ---- vector quantizer (kept f32 for exact code selection) ----
    pp["vq_emb"] = p["vq_emb"].astype(jnp.float32)
    pp["vq_e_sq"] = jnp.sum(p["vq_emb"] ** 2, axis=1)[None, :].astype(jnp.float32)
    # ---- decoder ----
    pp["l2d_w"] = mxu(p["l2d_w"])
    pp["ap_w"], pp["ap_b"] = mxu(p["ap_w"]), row(p["ap_b"])
    pp["dec_tt"] = row(p["dec_tt"])
    pp["dec_emb_ln_g"], pp["dec_emb_ln_b"] = row(p["dec_emb_ln_g"]), row(p["dec_emb_ln_b"])
    pp["d_wqkv"] = mxu(jnp.concatenate([p["d_wq"], p["d_wk"], p["d_wv"]], axis=1))
    pp["d_bqkv"] = row(jnp.concatenate([p["d_bq"], p["d_bk"], p["d_bv"]]))
    pp["d_wo"], pp["d_bo"] = p["d_wo"].astype(jnp.float32), row(p["d_bo"])
    pp["d_ln_sa_g"], pp["d_ln_sa_b"] = row(p["d_ln_sa_g"]), row(p["d_ln_sa_b"])
    # c_wq / c_bq do not affect the forward value (all memory rows identical -> uniform
    # cross-attention weights), so only the fused K/V projection is shipped to the kernel.
    pp["c_wkv"] = mxu(jnp.concatenate([p["c_wk"], p["c_wv"]], axis=1))
    pp["c_bkv"] = row(jnp.concatenate([p["c_bk"], p["c_bv"]]))
    pp["c_wo"], pp["c_bo"] = mxu(p["c_wo"]), row(p["c_bo"])
    pp["d_ln_ca_g"], pp["d_ln_ca_b"] = row(p["d_ln_ca_g"]), row(p["d_ln_ca_b"])
    pp["d_wi"], pp["d_bi"] = mxu(p["d_wi"]), row(p["d_bi"])
    pp["d_wo2"], pp["d_bo2"] = mxu(p["d_wo2"]), row(p["d_bo2"])
    pp["d_ln_mlp_g"], pp["d_ln_mlp_b"] = row(p["d_ln_mlp_g"]), row(p["d_ln_mlp_b"])
    log_w = jnp.zeros((D, vpad), jnp.float32).at[:, :V].set(p["log_w"])
    pp["log_w_pad"] = mxu(log_w)
    pp["log_b_pad"] = jnp.zeros((1, vpad), jnp.float32).at[:, :V].set(p["log_b"][None, :])
    return pp


def vqvae_forward(pp, x_tokens, cfg):
    B, S = x_tokens.shape
    D, H, V = cfg["D"], cfg["n_head"], cfg["vocab"]
    d_latent, G, C = cfg["d_latent"], cfg["n_groups"], cfg["n_codes"]
    vpad = pp["log_w_pad"].shape[1]
    stats_w = _round_up(1 + C, 128)
    parallel = pltpu.CompilerParams(dimension_semantics=("parallel",))

    # Token embedding lookup (gather) done once and reused by encoder and decoder.
    # TODO(synk): `Embeddings` wrapper class definition unavailable; assumed plain
    # nn.Embedding lookup with padding_idx=0.
    x_embed = jnp.take(pp["tok_emb"], x_tokens, axis=0)                     # [B, S, D]

    # ---------------- fused encoder + VQ kernel (parallel over batch) ----------------
    enc_args = (x_embed, pp["enc_tt"], pp["enc_emb_ln_g"], pp["enc_emb_ln_b"],
                pp["e_wqkv"], pp["e_bqkv"], pp["e_wo"], pp["e_bo"],
                pp["e_ln1_g"], pp["e_ln1_b"], pp["e_wi"], pp["e_bi"],
                pp["e_wo2"], pp["e_bo2"], pp["e_ln2_g"], pp["e_ln2_b"],
                pp["pool_w"], pp["pool_b"], pp["d2l_w"], pp["vq_emb"], pp["vq_e_sq"])
    enc_specs = [_batch_spec(x_embed.shape)] + [_rep_spec(a.shape) for a in enc_args[1:]]
    z3, codes3, stats = pl.pallas_call(
        functools.partial(_encoder_vq_kernel, n_head=H, n_groups=G, n_codes=C),
        grid=(B,),
        in_specs=enc_specs,
        out_specs=(_batch_spec((B, 1, d_latent)),
                   _batch_spec((B, 1, G)),
                   _batch_spec((B, 1, stats_w))),
        out_shape=(jax.ShapeDtypeStruct((B, 1, d_latent), jnp.float32),
                   jax.ShapeDtypeStruct((B, 1, G), jnp.int32),
                   jax.ShapeDtypeStruct((B, 1, stats_w), jnp.float32)),
        compiler_params=parallel,
    )(*enc_args)

    z = z3[:, 0, :]                                                         # [B, d_latent]
    codes = codes3[:, 0, :]                                                 # [B, n_groups]
    # Tiny cross-batch VQ reductions kept outside the parallel batch grid.
    diff = jnp.sum(stats[:, 0, 0]) / float(B * d_latent)
    counts = jnp.sum(stats[:, 0, 1:1 + C], axis=0)                          # [C]
    avg = counts / jnp.sum(counts)
    ppl = -jnp.sum(avg * jnp.log(avg + 1e-5))

    # ---------------- fused decoder kernel (parallel over batch) ----------------
    # Runs over the S valid rows only; rows >= S are sliced off in the reference anyway.
    dec_args = (x_embed, z3, pp["l2d_w"], pp["ap_w"], pp["ap_b"], pp["dec_tt"],
                pp["dec_emb_ln_g"], pp["dec_emb_ln_b"],
                pp["d_wqkv"], pp["d_bqkv"], pp["d_wo"], pp["d_bo"],
                pp["d_ln_sa_g"], pp["d_ln_sa_b"],
                pp["c_wkv"], pp["c_bkv"], pp["c_wo"], pp["c_bo"],
                pp["d_ln_ca_g"], pp["d_ln_ca_b"],
                pp["d_wi"], pp["d_bi"], pp["d_wo2"], pp["d_bo2"],
                pp["d_ln_mlp_g"], pp["d_ln_mlp_b"],
                pp["log_w_pad"], pp["log_b_pad"])
    dec_specs = ([_batch_spec(x_embed.shape), _batch_spec(z3.shape)]
                 + [_rep_spec(a.shape) for a in dec_args[2:]])
    logits_pad = pl.pallas_call(
        functools.partial(_decoder_kernel, n_head=H),
        grid=(B,),
        in_specs=dec_specs,
        out_specs=_batch_spec((B, S, vpad)),
        out_shape=jax.ShapeDtypeStruct((B, S, vpad), jnp.float32),
        compiler_params=parallel,
    )(*dec_args)
    logits = logits_pad[..., :V]                                            # [B, S, V]

    return {"logits": logits, "z": z, "diff": diff, "codes": codes, "ppl": ppl}


# ------------------------------- params init --------------------------------

def init_params(cfg, key):
    D, V, mlp = cfg["D"], cfg["vocab"], cfg["mlp"]
    d_latent, n_codes = cfg["d_latent"], cfg["n_codes"]
    dim = d_latent // cfg["n_groups"]
    ks = iter(jax.random.split(key, 64))

    def w(shape, std=0.02):
        return (std * jax.random.normal(next(ks), shape)).astype(jnp.float32)

    zeros = lambda *s: jnp.zeros(s, jnp.float32)
    ones = lambda *s: jnp.ones(s, jnp.float32)

    p = {}
    p["tok_emb"] = w((V, D)).at[0].set(0.0)   # padding_idx=0 row zeroed
    p["enc_tt"] = w((D,))
    p["enc_emb_ln_g"], p["enc_emb_ln_b"] = ones(D), zeros(D)
    for pre in ("e", "d", "c"):
        p[f"{pre}_wq"], p[f"{pre}_bq"] = w((D, D)), zeros(D)
        p[f"{pre}_wk"], p[f"{pre}_bk"] = w((D, D)), zeros(D)
        p[f"{pre}_wv"], p[f"{pre}_bv"] = w((D, D)), zeros(D)
        p[f"{pre}_wo"], p[f"{pre}_bo"] = w((D, D)), zeros(D)
    p["e_ln1_g"], p["e_ln1_b"] = ones(D), zeros(D)
    p["e_wi"], p["e_bi"] = w((D, mlp)), zeros(mlp)
    p["e_wo2"], p["e_bo2"] = w((mlp, D)), zeros(D)
    p["e_ln2_g"], p["e_ln2_b"] = ones(D), zeros(D)
    p["pool_w"], p["pool_b"] = w((D, D)), zeros(D)
    p["d2l_w"] = w((D, d_latent))
    p["l2d_w"] = w((d_latent, D))
    p["ap_w"], p["ap_b"] = w((D, D)), zeros(D)
    p["vq_emb"] = w((n_codes, dim), std=1.0)
    p["dec_tt"] = w((D,))
    p["dec_emb_ln_g"], p["dec_emb_ln_b"] = ones(D), zeros(D)
    p["d_ln_sa_g"], p["d_ln_sa_b"] = ones(D), zeros(D)
    p["d_ln_ca_g"], p["d_ln_ca_b"] = ones(D), zeros(D)
    p["d_wi"], p["d_bi"] = w((D, mlp)), zeros(mlp)
    p["d_wo2"], p["d_bo2"] = w((mlp, D)), zeros(D)
    p["d_ln_mlp_g"], p["d_ln_mlp_b"] = ones(D), zeros(D)
    p["log_w"], p["log_b"] = w((D, V)), zeros(V)
    return p


if __name__ == "__main__":
    cfg = dict(vocab=11, D=32, n_head=4, mlp=64,
               d_latent=8, n_groups=2, n_codes=16, max_seq_len=8)
    key = jax.random.PRNGKey(0)
    pkey, xkey = jax.random.split(key)
    params = init_params(cfg, pkey)
    pp = prepare_params(params, cfg)   # one-time: fuse QKV, pad logits, cast to bf16
    B, S = 2, 8
    x = jax.random.randint(xkey, (B, S), 1, cfg["vocab"], dtype=jnp.int32)
    fwd = jax.jit(functools.partial(vqvae_forward, cfg=cfg))
    out = fwd(pp, x)
    out = jax.tree_util.tree_map(jax.block_until_ready, out)
    assert out["logits"].shape == (B, S, cfg["vocab"])
    assert out["z"].shape == (B, cfg["d_latent"])
    assert out["codes"].shape == (B, cfg["n_groups"])
    assert out["codes"].dtype == jnp.int32
    assert bool(jnp.all(jnp.isfinite(out["logits"])))
    print("KERNEL_OK")
</pallas_src>

<mosaic_0001>
module attributes {stable_mosaic.version = 11 : i64} {
  func.func @_decoder_kernel(%arg0: i32, %arg1: memref<1x8x32xf32, #tpu.memory_space<vmem>>, %arg2: memref<1x1x8xf32, #tpu.memory_space<vmem>>, %arg3: memref<8x32xbf16, #tpu.memory_space<vmem>>, %arg4: memref<32x32xbf16, #tpu.memory_space<vmem>>, %arg5: memref<1x32xf32, #tpu.memory_space<vmem>>, %arg6: memref<1x32xf32, #tpu.memory_space<vmem>>, %arg7: memref<1x32xf32, #tpu.memory_space<vmem>>, %arg8: memref<1x32xf32, #tpu.memory_space<vmem>>, %arg9: memref<32x96xbf16, #tpu.memory_space<vmem>>, %arg10: memref<1x96xf32, #tpu.memory_space<vmem>>, %arg11: memref<32x32xf32, #tpu.memory_space<vmem>>, %arg12: memref<1x32xf32, #tpu.memory_space<vmem>>, %arg13: memref<1x32xf32, #tpu.memory_space<vmem>>, %arg14: memref<1x32xf32, #tpu.memory_space<vmem>>, %arg15: memref<32x64xbf16, #tpu.memory_space<vmem>>, %arg16: memref<1x64xf32, #tpu.memory_space<vmem>>, %arg17: memref<32x32xbf16, #tpu.memory_space<vmem>>, %arg18: memref<1x32xf32, #tpu.memory_space<vmem>>, %arg19: memref<1x32xf32, #tpu.memory_space<vmem>>, %arg20: memref<1x32xf32, #tpu.memory_space<vmem>>, %arg21: memref<32x64xbf16, #tpu.memory_space<vmem>>, %arg22: memref<1x64xf32, #tpu.memory_space<vmem>>, %arg23: memref<64x32xbf16, #tpu.memory_space<vmem>>, %arg24: memref<1x32xf32, #tpu.memory_space<vmem>>, %arg25: memref<1x32xf32, #tpu.memory_space<vmem>>, %arg26: memref<1x32xf32, #tpu.memory_space<vmem>>, %arg27: memref<32x128xbf16, #tpu.memory_space<vmem>>, %arg28: memref<1x128xf32, #tpu.memory_space<vmem>>, %arg29: memref<1x8x128xf32, #tpu.memory_space<vmem>>) attributes {dimension_semantics = [#tpu.dimension_semantics<parallel>], iteration_bounds = array<i64: 2>, scalar_prefetch = 0 : i64, scratch_operands = 0 : i64, tpu.core_type = #tpu.core_type<tc>, window_params = [{transform_indices = @transform_0, window_bounds = array<i64: 1, 8, 32>}, {transform_indices = @transform_1, window_bounds = array<i64: 1, 1, 8>}, {pipeline_mode = #tpu.pipeline_mode<synchronous>, transform_indices = @transform_2, window_bounds = array<i64: 8, 32>}, {pipeline_mode = #tpu.pipeline_mode<synchronous>, transform_indices = @transform_3, window_bounds = array<i64: 32, 32>}, {pipeline_mode = #tpu.pipeline_mode<synchronous>, transform_indices = @transform_4, window_bounds = array<i64: 1, 32>}, {pipeline_mode = #tpu.pipeline_mode<synchronous>, transform_indices = @transform_5, window_bounds = array<i64: 1, 32>}, {pipeline_mode = #tpu.pipeline_mode<synchronous>, transform_indices = @transform_6, window_bounds = array<i64: 1, 32>}, {pipeline_mode = #tpu.pipeline_mode<synchronous>, transform_indices = @transform_7, window_bounds = array<i64: 1, 32>}, {pipeline_mode = #tpu.pipeline_mode<synchronous>, transform_indices = @transform_8, window_bounds = array<i64: 32, 96>}, {pipeline_mode = #tpu.pipeline_mode<synchronous>, transform_indices = @transform_9, window_bounds = array<i64: 1, 96>}, {pipeline_mode = #tpu.pipeline_mode<synchronous>, transform_indices = @transform_10, window_bounds = array<i64: 32, 32>}, {pipeline_mode = #tpu.pipeline_mode<synchronous>, transform_indices = @transform_11, window_bounds = array<i64: 1, 32>}, {pipeline_mode = #tpu.pipeline_mode<synchronous>, transform_indices = @transform_12, window_bounds = array<i64: 1, 32>}, {pipeline_mode = #tpu.pipeline_mode<synchronous>, transform_indices = @transform_13, window_bounds = array<i64: 1, 32>}, {pipeline_mode = #tpu.pipeline_mode<synchronous>, transform_indices = @transform_14, window_bounds = array<i64: 32, 64>}, {pipeline_mode = #tpu.pipeline_mode<synchronous>, transform_indices = @transform_15, window_bounds = array<i64: 1, 64>}, {pipeline_mode = #tpu.pipeline_mode<synchronous>, transform_indices = @transform_16, window_bounds = array<i64: 32, 32>}, {pipeline_mode = #tpu.pipeline_mode<synchronous>, transform_indices = @transform_17, window_bounds = array<i64: 1, 32>}, {pipeline_mode = #tpu.pipeline_mode<synchronous>, transform_indices = @transform_18, window_bounds = array<i64: 1, 32>}, {pipeline_mode = #tpu.pipeline_mode<synchronous>, transform_indices = @transform_19, window_bounds = array<i64: 1, 32>}, {pipeline_mode = #tpu.pipeline_mode<synchronous>, transform_indices = @transform_20, window_bounds = array<i64: 32, 64>}, {pipeline_mode = #tpu.pipeline_mode<synchronous>, transform_indices = @transform_21, window_bounds = array<i64: 1, 64>}, {pipeline_mode = #tpu.pipeline_mode<synchronous>, transform_indices = @transform_22, window_bounds = array<i64: 64, 32>}, {pipeline_mode = #tpu.pipeline_mode<synchronous>, transform_indices = @transform_23, window_bounds = array<i64: 1, 32>}, {pipeline_mode = #tpu.pipeline_mode<synchronous>, transform_indices = @transform_24, window_bounds = array<i64: 1, 32>}, {pipeline_mode = #tpu.pipeline_mode<synchronous>, transform_indices = @transform_25, window_bounds = array<i64: 1, 32>}, {pipeline_mode = #tpu.pipeline_mode<synchronous>, transform_indices = @transform_26, window_bounds = array<i64: 32, 128>}, {pipeline_mode = #tpu.pipeline_mode<synchronous>, transform_indices = @transform_27, window_bounds = array<i64: 1, 128>}, {transform_indices = @transform_28, window_bounds = array<i64: 1, 8, 128>}]} {
    %c0 = arith.constant 0 : index
    %c0_0 = arith.constant 0 : index
    %c0_1 = arith.constant 0 : index
    %0 = vector.load %arg1[%c0, %c0_0, %c0_1] : memref<1x8x32xf32, #tpu.memory_space<vmem>>, vector<1x8x32xf32>
    %1 = vector.shape_cast %0 : vector<1x8x32xf32> to vector<8x32xf32>
    %c0_2 = arith.constant 0 : index
    %c0_3 = arith.constant 0 : index
    %c0_4 = arith.constant 0 : index
    %2 = vector.load %arg2[%c0_2, %c0_3, %c0_4] : memref<1x1x8xf32, #tpu.memory_space<vmem>>, vector<1x1x8xf32>
    %3 = vector.shape_cast %2 : vector<1x1x8xf32> to vector<1x8xf32>
    %c0_5 = arith.constant 0 : index
    %c0_6 = arith.constant 0 : index
    %4 = vector.load %arg3[%c0_5, %c0_6] : memref<8x32xbf16, #tpu.memory_space<vmem>>, vector<8x32xbf16>
    %5 = arith.truncf %3 : vector<1x8xf32> to vector<1x8xbf16>
    %cst = arith.constant dense<0.000000e+00> : vector<1x32xf32>
    %6 = tpu.matmul %5, %4, %cst {dimension_numbers = #tpu.dot_dimension_numbers<[1], [0], [0], [1], [0, 0, 1, 1], [], []>} : vector<1x8xbf16>, vector<8x32xbf16>, vector<1x32xf32> -> vector<1x32xf32>
    %c0_7 = arith.constant 0 : index
    %c0_8 = arith.constant 0 : index
    %7 = vector.load %arg4[%c0_7, %c0_8] : memref<32x32xbf16, #tpu.memory_space<vmem>>, vector<32x32xbf16>
    %8 = arith.truncf %6 : vector<1x32xf32> to vector<1x32xbf16>
    %cst_9 = arith.constant dense<0.000000e+00> : vector<1x32xf32>
    %9 = tpu.matmul %8, %7, %cst_9 {dimension_numbers = #tpu.dot_dimension_numbers<[1], [0], [0], [1], [0, 0, 1, 1], [], []>} : vector<1x32xbf16>, vector<32x32xbf16>, vector<1x32xf32> -> vector<1x32xf32>
    %c0_10 = arith.constant 0 : index
    %c0_11 = arith.constant 0 : index
    %10 = vector.load %arg5[%c0_10, %c0_11] : memref<1x32xf32, #tpu.memory_space<vmem>>, vector<1x32xf32>
    %11 = arith.addf %9, %10 : vector<1x32xf32>
    %12 = vector.broadcast %6 : vector<1x32xf32> to vector<8x32xf32>
    %13 = arith.addf %1, %12 : vector<8x32xf32>
    %c0_12 = arith.constant 0 : index
    %c0_13 = arith.constant 0 : index
    %14 = vector.load %arg6[%c0_12, %c0_13] : memref<1x32xf32, #tpu.memory_space<vmem>>, vector<1x32xf32>
    %15 = vector.broadcast %14 : vector<1x32xf32> to vector<8x32xf32>
    %16 = arith.addf %13, %15 : vector<8x32xf32>
    %c0_14 = arith.constant 0 : index
    %c0_15 = arith.constant 0 : index
    %17 = vector.load %arg7[%c0_14, %c0_15] : memref<1x32xf32, #tpu.memory_space<vmem>>, vector<1x32xf32>
    %c0_16 = arith.constant 0 : index
    %c0_17 = arith.constant 0 : index
    %18 = vector.load %arg8[%c0_16, %c0_17] : memref<1x32xf32, #tpu.memory_space<vmem>>, vector<1x32xf32>
    %cst_18 = arith.constant dense<0.000000e+00> : vector<8xf32>
    %19 = vector.multi_reduction <add>, %16, %cst_18 [1] : vector<8x32xf32> to vector<8xf32>
    %20 = vector.shape_cast %19 : vector<8xf32> to vector<8x1xf32>
    %cst_19 = arith.constant 3.200000e+01 : f32
    %21 = vector.broadcast %cst_19 : f32 to vector<8x1xf32>
    %22 = arith.divf %20, %21 : vector<8x1xf32>
    %23 = vector.broadcast %22 : vector<8x1xf32> to vector<8x32xf32>
    %24 = arith.subf %16, %23 : vector<8x32xf32>
    %25 = arith.mulf %24, %24 : vector<8x32xf32>
    %cst_20 = arith.constant dense<0.000000e+00> : vector<8xf32>
    %26 = vector.multi_reduction <add>, %25, %cst_20 [1] : vector<8x32xf32> to vector<8xf32>
    %27 = vector.shape_cast %26 : vector<8xf32> to vector<8x1xf32>
    %cst_21 = arith.constant 3.200000e+01 : f32
    %28 = vector.broadcast %cst_21 : f32 to vector<8x1xf32>
    %29 = arith.divf %27, %28 : vector<8x1xf32>
    %30 = vector.broadcast %22 : vector<8x1xf32> to vector<8x32xf32>
    %31 = arith.subf %16, %30 : vector<8x32xf32>
    %cst_22 = arith.constant 9.99999996E-13 : f32
    %32 = vector.broadcast %cst_22 : f32 to vector<8x1xf32>
    %33 = arith.addf %29, %32 : vector<8x1xf32>
    %34 = math.rsqrt %33 : vector<8x1xf32>
    %35 = vector.broadcast %34 : vector<8x1xf32> to vector<8x32xf32>
    %36 = arith.mulf %31, %35 : vector<8x32xf32>
    %37 = vector.broadcast %17 : vector<1x32xf32> to vector<8x32xf32>
    %38 = arith.mulf %36, %37 : vector<8x32xf32>
    %39 = vector.broadcast %18 : vector<1x32xf32> to vector<8x32xf32>
    %40 = arith.addf %38, %39 : vector<8x32xf32>
    %41 = tpu.iota {dimensions = array<i32: 0>} : vector<8x8xi32>
    %42 = tpu.iota {dimensions = array<i32: 1>} : vector<8x8xi32>
    %43 = arith.cmpi sle, %42, %41 : vector<8x8xi32>
    %c0_i32 = arith.constant 0 : i32
    %44 = vector.broadcast %c0_i32 : i32 to vector<8x8xi32>
    %45 = arith.cmpi eq, %42, %44 : vector<8x8xi32>
    %46 = arith.ori %43, %45 : vector<8x8xi1>
    %c0_23 = arith.constant 0 : index
    %c0_24 = arith.constant 0 : index
    %47 = vector.load %arg9[%c0_23, %c0_24] : memref<32x96xbf16, #tpu.memory_space<vmem>>, vector<32x96xbf16>
    %c0_25 = arith.constant 0 : index
    %c0_26 = arith.constant 0 : index
    %48 = vector.load %arg10[%c0_25, %c0_26] : memref<1x96xf32, #tpu.memory_space<vmem>>, vector<1x96xf32>
    %c0_27 = arith.constant 0 : index
    %c0_28 = arith.constant 0 : index
    %49 = vector.load %arg11[%c0_27, %c0_28] : memref<32x32xf32, #tpu.memory_space<vmem>>, vector<32x32xf32>
    %c0_29 = arith.constant 0 : index
    %c0_30 = arith.constant 0 : index
    %50 = vector.load %arg12[%c0_29, %c0_30] : memref<1x32xf32, #tpu.memory_space<vmem>>, vector<1x32xf32>
    %51 = arith.truncf %40 : vector<8x32xf32> to vector<8x32xbf16>
    %cst_31 = arith.constant dense<0.000000e+00> : vector<8x96xf32>
    %52 = tpu.matmul %51, %47, %cst_31 {dimension_numbers = #tpu.dot_dimension_numbers<[1], [0], [0], [1], [0, 0, 1, 1], [], []>} : vector<8x32xbf16>, vector<32x96xbf16>, vector<8x96xf32> -> vector<8x96xf32>
    %53 = vector.broadcast %48 : vector<1x96xf32> to vector<8x96xf32>
    %54 = arith.addf %52, %53 : vector<8x96xf32>
    %cst_32 = arith.constant 0.000000e+00 : f32
    %55 = vector.broadcast %cst_32 : f32 to vector<8x32xf32>
    %56 = vector.extract_strided_slice %54 {offsets = [0, 0], sizes = [8, 8], strides = [1, 1]} : vector<8x96xf32> to vector<8x8xf32>
    %57 = vector.extract_strided_slice %54 {offsets = [0, 32], sizes = [8, 8], strides = [1, 1]} : vector<8x96xf32> to vector<8x8xf32>
    %58 = vector.extract_strided_slice %54 {offsets = [0, 64], sizes = [8, 8], strides = [1, 1]} : vector<8x96xf32> to vector<8x8xf32>
    %59 = arith.truncf %56 : vector<8x8xf32> to vector<8x8xbf16>
    %60 = arith.truncf %57 : vector<8x8xf32> to vector<8x8xbf16>
    %cst_33 = arith.constant dense<0.000000e+00> : vector<8x8xf32>
    %61 = tpu.matmul %59, %60, %cst_33 {dimension_numbers = #tpu.dot_dimension_numbers<[1], [1], [0], [0], [0, 0, 1, 0], [], []>} : vector<8x8xbf16>, vector<8x8xbf16>, vector<8x8xf32> -> vector<8x8xf32>
    %cst_34 = arith.constant 0.353553385 : f32
    %62 = vector.broadcast %cst_34 : f32 to vector<8x8xf32>
    %63 = arith.mulf %61, %62 : vector<8x8xf32>
    %cst_35 = arith.constant -1.000000e+30 : f32
    %64 = vector.broadcast %cst_35 : f32 to vector<8x8xf32>
    %65 = arith.select %46, %63, %64 : vector<8x8xi1>, vector<8x8xf32>
    %cst_36 = arith.constant dense<0xFF800000> : vector<8xf32>
    %66 = vector.multi_reduction <maximumf>, %65, %cst_36 [1] : vector<8x8xf32> to vector<8xf32>
    %67 = vector.shape_cast %66 : vector<8xf32> to vector<8x1xf32>
    %68 = vector.broadcast %67 : vector<8x1xf32> to vector<8x8xf32>
    %69 = arith.subf %65, %68 : vector<8x8xf32>
    %70 = math.exp %69 : vector<8x8xf32>
    %cst_37 = arith.constant dense<0.000000e+00> : vector<8xf32>
    %71 = vector.multi_reduction <add>, %70, %cst_37 [1] : vector<8x8xf32> to vector<8xf32>
    %72 = vector.shape_cast %71 : vector<8xf32> to vector<8x1xf32>
    %73 = tpu.reciprocal %72 {approx = true} : vector<8x1xf32> -> vector<8x1xf32>
    %74 = vector.broadcast %73 : vector<8x1xf32> to vector<8x8xf32>
    %75 = arith.mulf %70, %74 : vector<8x8xf32>
    %76 = arith.truncf %75 : vector<8x8xf32> to vector<8x8xbf16>
    %77 = arith.truncf %58 : vector<8x8xf32> to vector<8x8xbf16>
    %cst_38 = arith.constant dense<0.000000e+00> : vector<8x8xf32>
    %78 = tpu.matmul %76, %77, %cst_38 {dimension_numbers = #tpu.dot_dimension_numbers<[1], [0], [0], [1], [0, 0, 1, 1], [], []>} : vector<8x8xbf16>, vector<8x8xbf16>, vector<8x8xf32> -> vector<8x8xf32>
    %79 = vector.extract_strided_slice %49 {offsets = [0, 0], sizes = [8, 32], strides = [1, 1]} : vector<32x32xf32> to vector<8x32xf32>
    %80 = arith.truncf %78 : vector<8x8xf32> to vector<8x8xbf16>
    %81 = arith.truncf %79 : vector<8x32xf32> to vector<8x32xbf16>
    %cst_39 = arith.constant dense<0.000000e+00> : vector<8x32xf32>
    %82 = tpu.matmul %80, %81, %cst_39 {dimension_numbers = #tpu.dot_dimension_numbers<[1], [0], [0], [1], [0, 0, 1, 1], [], []>} : vector<8x8xbf16>, vector<8x32xbf16>, vector<8x32xf32> -> vector<8x32xf32>
    %83 = arith.addf %55, %82 : vector<8x32xf32>
    %84 = vector.extract_strided_slice %54 {offsets = [0, 8], sizes = [8, 8], strides = [1, 1]} : vector<8x96xf32> to vector<8x8xf32>
    %85 = vector.extract_strided_slice %54 {offsets = [0, 40], sizes = [8, 8], strides = [1, 1]} : vector<8x96xf32> to vector<8x8xf32>
    %86 = vector.extract_strided_slice %54 {offsets = [0, 72], sizes = [8, 8], strides = [1, 1]} : vector<8x96xf32> to vector<8x8xf32>
    %87 = arith.truncf %84 : vector<8x8xf32> to vector<8x8xbf16>
    %88 = arith.truncf %85 : vector<8x8xf32> to vector<8x8xbf16>
    %cst_40 = arith.constant dense<0.000000e+00> : vector<8x8xf32>
    %89 = tpu.matmul %87, %88, %cst_40 {dimension_numbers = #tpu.dot_dimension_numbers<[1], [1], [0], [0], [0, 0, 1, 0], [], []>} : vector<8x8xbf16>, vector<8x8xbf16>, vector<8x8xf32> -> vector<8x8xf32>
    %cst_41 = arith.constant 0.353553385 : f32
    %90 = vector.broadcast %cst_41 : f32 to vector<8x8xf32>
    %91 = arith.mulf %89, %90 : vector<8x8xf32>
    %cst_42 = arith.constant -1.000000e+30 : f32
    %92 = vector.broadcast %cst_42 : f32 to vector<8x8xf32>
    %93 = arith.select %46, %91, %92 : vector<8x8xi1>, vector<8x8xf32>
    %cst_43 = arith.constant dense<0xFF800000> : vector<8xf32>
    %94 = vector.multi_reduction <maximumf>, %93, %cst_43 [1] : vector<8x8xf32> to vector<8xf32>
    %95 = vector.shape_cast %94 : vector<8xf32> to vector<8x1xf32>
    %96 = vector.broadcast %95 : vector<8x1xf32> to vector<8x8xf32>
    %97 = arith.subf %93, %96 : vector<8x8xf32>
    %98 = math.exp %97 : vector<8x8xf32>
    %cst_44 = arith.constant dense<0.000000e+00> : vector<8xf32>
    %99 = vector.multi_reduction <add>, %98, %cst_44 [1] : vector<8x8xf32> to vector<8xf32>
    %100 = vector.shape_cast %99 : vector<8xf32> to vector<8x1xf32>
    %101 = tpu.reciprocal %100 {approx = true} : vector<8x1xf32> -> vector<8x1xf32>
    %102 = vector.broadcast %101 : vector<8x1xf32> to vector<8x8xf32>
    %103 = arith.mulf %98, %102 : vector<8x8xf32>
    %104 = arith.truncf %103 : vector<8x8xf32> to vector<8x8xbf16>
    %105 = arith.truncf %86 : vector<8x8xf32> to vector<8x8xbf16>
    %cst_45 = arith.constant dense<0.000000e+00> : vector<8x8xf32>
    %106 = tpu.matmul %104, %105, %cst_45 {dimension_numbers = #tpu.dot_dimension_numbers<[1], [0], [0], [1], [0, 0, 1, 1], [], []>} : vector<8x8xbf16>, vector<8x8xbf16>, vector<8x8xf32> -> vector<8x8xf32>
    %107 = vector.extract_strided_slice %49 {offsets = [8, 0], sizes = [8, 32], strides = [1, 1]} : vector<32x32xf32> to vector<8x32xf32>
    %108 = arith.truncf %106 : vector<8x8xf32> to vector<8x8xbf16>
    %109 = arith.truncf %107 : vector<8x32xf32> to vector<8x32xbf16>
    %cst_46 = arith.constant dense<0.000000e+00> : vector<8x32xf32>
    %110 = tpu.matmul %108, %109, %cst_46 {dimension_numbers = #tpu.dot_dimension_numbers<[1], [0], [0], [1], [0, 0, 1, 1], [], []>} : vector<8x8xbf16>, vector<8x32xbf16>, vector<8x32xf32> -> vector<8x32xf32>
    %111 = arith.addf %83, %110 : vector<8x32xf32>
    %112 = vector.extract_strided_slice %54 {offsets = [0, 16], sizes = [8, 8], strides = [1, 1]} : vector<8x96xf32> to vector<8x8xf32>
    %113 = vector.extract_strided_slice %54 {offsets = [0, 48], sizes = [8, 8], strides = [1, 1]} : vector<8x96xf32> to vector<8x8xf32>
    %114 = vector.extract_strided_slice %54 {offsets = [0, 80], sizes = [8, 8], strides = [1, 1]} : vector<8x96xf32> to vector<8x8xf32>
    %115 = arith.truncf %112 : vector<8x8xf32> to vector<8x8xbf16>
    %116 = arith.truncf %113 : vector<8x8xf32> to vector<8x8xbf16>
    %cst_47 = arith.constant dense<0.000000e+00> : vector<8x8xf32>
    %117 = tpu.matmul %115, %116, %cst_47 {dimension_numbers = #tpu.dot_dimension_numbers<[1], [1], [0], [0], [0, 0, 1, 0], [], []>} : vector<8x8xbf16>, vector<8x8xbf16>, vector<8x8xf32> -> vector<8x8xf32>
    %cst_48 = arith.constant 0.353553385 : f32
    %118 = vector.broadcast %cst_48 : f32 to vector<8x8xf32>
    %119 = arith.mulf %117, %118 : vector<8x8xf32>
    %cst_49 = arith.constant -1.000000e+30 : f32
    %120 = vector.broadcast %cst_49 : f32 to vector<8x8xf32>
    %121 = arith.select %46, %119, %120 : vector<8x8xi1>, vector<8x8xf32>
    %cst_50 = arith.constant dense<0xFF800000> : vector<8xf32>
    %122 = vector.multi_reduction <maximumf>, %121, %cst_50 [1] : vector<8x8xf32> to vector<8xf32>
    %123 = vector.shape_cast %122 : vector<8xf32> to vector<8x1xf32>
    %124 = vector.broadcast %123 : vector<8x1xf32> to vector<8x8xf32>
    %125 = arith.subf %121, %124 : vector<8x8xf32>
    %126 = math.exp %125 : vector<8x8xf32>
    %cst_51 = arith.constant dense<0.000000e+00> : vector<8xf32>
    %127 = vector.multi_reduction <add>, %126, %cst_51 [1] : vector<8x8xf32> to vector<8xf32>
    %128 = vector.shape_cast %127 : vector<8xf32> to vector<8x1xf32>
    %129 = tpu.reciprocal %128 {approx = true} : vector<8x1xf32> -> vector<8x1xf32>
    %130 = vector.broadcast %129 : vector<8x1xf32> to vector<8x8xf32>
    %131 = arith.mulf %126, %130 : vector<8x8xf32>
    %132 = arith.truncf %131 : vector<8x8xf32> to vector<8x8xbf16>
    %133 = arith.truncf %114 : vector<8x8xf32> to vector<8x8xbf16>
    %cst_52 = arith.constant dense<0.000000e+00> : vector<8x8xf32>
    %134 = tpu.matmul %132, %133, %cst_52 {dimension_numbers = #tpu.dot_dimension_numbers<[1], [0], [0], [1], [0, 0, 1, 1], [], []>} : vector<8x8xbf16>, vector<8x8xbf16>, vector<8x8xf32> -> vector<8x8xf32>
    %135 = vector.extract_strided_slice %49 {offsets = [16, 0], sizes = [8, 32], strides = [1, 1]} : vector<32x32xf32> to vector<8x32xf32>
    %136 = arith.truncf %134 : vector<8x8xf32> to vector<8x8xbf16>
    %137 = arith.truncf %135 : vector<8x32xf32> to vector<8x32xbf16>
    %cst_53 = arith.constant dense<0.000000e+00> : vector<8x32xf32>
    %138 = tpu.matmul %136, %137, %cst_53 {dimension_numbers = #tpu.dot_dimension_numbers<[1], [0], [0], [1], [0, 0, 1, 1], [], []>} : vector<8x8xbf16>, vector<8x32xbf16>, vector<8x32xf32> -> vector<8x32xf32>
    %139 = arith.addf %111, %138 : vector<8x32xf32>
    %140 = vector.extract_strided_slice %54 {offsets = [0, 24], sizes = [8, 8], strides = [1, 1]} : vector<8x96xf32> to vector<8x8xf32>
    %141 = vector.extract_strided_slice %54 {offsets = [0, 56], sizes = [8, 8], strides = [1, 1]} : vector<8x96xf32> to vector<8x8xf32>
    %142 = vector.extract_strided_slice %54 {offsets = [0, 88], sizes = [8, 8], strides = [1, 1]} : vector<8x96xf32> to vector<8x8xf32>
    %143 = arith.truncf %140 : vector<8x8xf32> to vector<8x8xbf16>
    %144 = arith.truncf %141 : vector<8x8xf32> to vector<8x8xbf16>
    %cst_54 = arith.constant dense<0.000000e+00> : vector<8x8xf32>
    %145 = tpu.matmul %143, %144, %cst_54 {dimension_numbers = #tpu.dot_dimension_numbers<[1], [1], [0], [0], [0, 0, 1, 0], [], []>} : vector<8x8xbf16>, vector<8x8xbf16>, vector<8x8xf32> -> vector<8x8xf32>
    %cst_55 = arith.constant 0.353553385 : f32
    %146 = vector.broadcast %cst_55 : f32 to vector<8x8xf32>
    %147 = arith.mulf %145, %146 : vector<8x8xf32>
    %cst_56 = arith.constant -1.000000e+30 : f32
    %148 = vector.broadcast %cst_56 : f32 to vector<8x8xf32>
    %149 = arith.select %46, %147, %148 : vector<8x8xi1>, vector<8x8xf32>
    %cst_57 = arith.constant dense<0xFF800000> : vector<8xf32>
    %150 = vector.multi_reduction <maximumf>, %149, %cst_57 [1] : vector<8x8xf32> to vector<8xf32>
    %151 = vector.shape_cast %150 : vector<8xf32> to vector<8x1xf32>
    %152 = vector.broadcast %151 : vector<8x1xf32> to vector<8x8xf32>
    %153 = arith.subf %149, %152 : vector<8x8xf32>
    %154 = math.exp %153 : vector<8x8xf32>
    %cst_58 = arith.constant dense<0.000000e+00> : vector<8xf32>
    %155 = vector.multi_reduction <add>, %154, %cst_58 [1] : vector<8x8xf32> to vector<8xf32>
    %156 = vector.shape_cast %155 : vector<8xf32> to vector<8x1xf32>
    %157 = tpu.reciprocal %156 {approx = true} : vector<8x1xf32> -> vector<8x1xf32>
    %158 = vector.broadcast %157 : vector<8x1xf32> to vector<8x8xf32>
    %159 = arith.mulf %154, %158 : vector<8x8xf32>
    %160 = arith.truncf %159 : vector<8x8xf32> to vector<8x8xbf16>
    %161 = arith.truncf %142 : vector<8x8xf32> to vector<8x8xbf16>
    %cst_59 = arith.constant dense<0.000000e+00> : vector<8x8xf32>
    %162 = tpu.matmul %160, %161, %cst_59 {dimension_numbers = #tpu.dot_dimension_numbers<[1], [0], [0], [1], [0, 0, 1, 1], [], []>} : vector<8x8xbf16>, vector<8x8xbf16>, vector<8x8xf32> -> vector<8x8xf32>
    %163 = vector.extract_strided_slice %49 {offsets = [24, 0], sizes = [8, 32], strides = [1, 1]} : vector<32x32xf32> to vector<8x32xf32>
    %164 = arith.truncf %162 : vector<8x8xf32> to vector<8x8xbf16>
    %165 = arith.truncf %163 : vector<8x32xf32> to vector<8x32xbf16>
    %cst_60 = arith.constant dense<0.000000e+00> : vector<8x32xf32>
    %166 = tpu.matmul %164, %165, %cst_60 {dimension_numbers = #tpu.dot_dimension_numbers<[1], [0], [0], [1], [0, 0, 1, 1], [], []>} : vector<8x8xbf16>, vector<8x32xbf16>, vector<8x32xf32> -> vector<8x32xf32>
    %167 = arith.addf %139, %166 : vector<8x32xf32>
    %168 = vector.broadcast %50 : vector<1x32xf32> to vector<8x32xf32>
    %169 = arith.addf %167, %168 : vector<8x32xf32>
    %170 = arith.addf %169, %40 : vector<8x32xf32>
    %c0_61 = arith.constant 0 : index
    %c0_62 = arith.constant 0 : index
    %171 = vector.load %arg13[%c0_61, %c0_62] : memref<1x32xf32, #tpu.memory_space<vmem>>, vector<1x32xf32>
    %c0_63 = arith.constant 0 : index
    %c0_64 = arith.constant 0 : index
    %172 = vector.load %arg14[%c0_63, %c0_64] : memref<1x32xf32, #tpu.memory_space<vmem>>, vector<1x32xf32>
    %cst_65 = arith.constant dense<0.000000e+00> : vector<8xf32>
    %173 = vector.multi_reduction <add>, %170, %cst_65 [1] : vector<8x32xf32> to vector<8xf32>
    %174 = vector.shape_cast %173 : vector<8xf32> to vector<8x1xf32>
    %cst_66 = arith.constant 3.200000e+01 : f32
    %175 = vector.broadcast %cst_66 : f32 to vector<8x1xf32>
    %176 = arith.divf %174, %175 : vector<8x1xf32>
    %177 = vector.broadcast %176 : vector<8x1xf32> to vector<8x32xf32>
    %178 = arith.subf %170, %177 : vector<8x32xf32>
    %179 = arith.mulf %178, %178 : vector<8x32xf32>
    %cst_67 = arith.constant dense<0.000000e+00> : vector<8xf32>
    %180 = vector.multi_reduction <add>, %179, %cst_67 [1] : vector<8x32xf32> to vector<8xf32>
    %181 = vector.shape_cast %180 : vector<8xf32> to vector<8x1xf32>
    %cst_68 = arith.constant 3.200000e+01 : f32
    %182 = vector.broadcast %cst_68 : f32 to vector<8x1xf32>
    %183 = arith.divf %181, %182 : vector<8x1xf32>
    %184 = vector.broadcast %176 : vector<8x1xf32> to vector<8x32xf32>
    %185 = arith.subf %170, %184 : vector<8x32xf32>
    %cst_69 = arith.constant 9.99999996E-13 : f32
    %186 = vector.broadcast %cst_69 : f32 to vector<8x1xf32>
    %187 = arith.addf %183, %186 : vector<8x1xf32>
    %188 = math.rsqrt %187 : vector<8x1xf32>
    %189 = vector.broadcast %188 : vector<8x1xf32> to vector<8x32xf32>
    %190 = arith.mulf %185, %189 : vector<8x32xf32>
    %191 = vector.broadcast %171 : vector<1x32xf32> to vector<8x32xf32>
    %192 = arith.mulf %190, %191 : vector<8x32xf32>
    %193 = vector.broadcast %172 : vector<1x32xf32> to vector<8x32xf32>
    %194 = arith.addf %192, %193 : vector<8x32xf32>
    %c0_70 = arith.constant 0 : index
    %c0_71 = arith.constant 0 : index
    %195 = vector.load %arg15[%c0_70, %c0_71] : memref<32x64xbf16, #tpu.memory_space<vmem>>, vector<32x64xbf16>
    %196 = arith.truncf %11 : vector<1x32xf32> to vector<1x32xbf16>
    %cst_72 = arith.constant dense<0.000000e+00> : vector<1x64xf32>
    %197 = tpu.matmul %196, %195, %cst_72 {dimension_numbers = #tpu.dot_dimension_numbers<[1], [0], [0], [1], [0, 0, 1, 1], [], []>} : vector<1x32xbf16>, vector<32x64xbf16>, vector<1x64xf32> -> vector<1x64xf32>
    %c0_73 = arith.constant 0 : index
    %c0_74 = arith.constant 0 : index
    %198 = vector.load %arg16[%c0_73, %c0_74] : memref<1x64xf32, #tpu.memory_space<vmem>>, vector<1x64xf32>
    %199 = arith.addf %197, %198 : vector<1x64xf32>
    %200 = vector.extract_strided_slice %199 {offsets = [0, 32], sizes = [1, 32], strides = [1, 1]} : vector<1x64xf32> to vector<1x32xf32>
    %c0_75 = arith.constant 0 : index
    %c0_76 = arith.constant 0 : index
    %201 = vector.load %arg17[%c0_75, %c0_76] : memref<32x32xbf16, #tpu.memory_space<vmem>>, vector<32x32xbf16>
    %202 = arith.truncf %200 : vector<1x32xf32> to vector<1x32xbf16>
    %cst_77 = arith.constant dense<0.000000e+00> : vector<1x32xf32>
    %203 = tpu.matmul %202, %201, %cst_77 {dimension_numbers = #tpu.dot_dimension_numbers<[1], [0], [0], [1], [0, 0, 1, 1], [], []>} : vector<1x32xbf16>, vector<32x32xbf16>, vector<1x32xf32> -> vector<1x32xf32>
    %c0_78 = arith.constant 0 : index
    %c0_79 = arith.constant 0 : index
    %204 = vector.load %arg18[%c0_78, %c0_79] : memref<1x32xf32, #tpu.memory_space<vmem>>, vector<1x32xf32>
    %205 = arith.addf %203, %204 : vector<1x32xf32>
    %206 = vector.broadcast %205 : vector<1x32xf32> to vector<8x32xf32>
    %207 = arith.addf %206, %194 : vector<8x32xf32>
    %c0_80 = arith.constant 0 : index
    %c0_81 = arith.constant 0 : index
    %208 = vector.load %arg19[%c0_80, %c0_81] : memref<1x32xf32, #tpu.memory_space<vmem>>, vector<1x32xf32>
    %c0_82 = arith.constant 0 : index
    %c0_83 = arith.constant 0 : index
    %209 = vector.load %arg20[%c0_82, %c0_83] : memref<1x32xf32, #tpu.memory_space<vmem>>, vector<1x32xf32>
    %cst_84 = arith.constant dense<0.000000e+00> : vector<8xf32>
    %210 = vector.multi_reduction <add>, %207, %cst_84 [1] : vector<8x32xf32> to vector<8xf32>
    %211 = vector.shape_cast %210 : vector<8xf32> to vector<8x1xf32>
    %cst_85 = arith.constant 3.200000e+01 : f32
    %212 = vector.broadcast %cst_85 : f32 to vector<8x1xf32>
    %213 = arith.divf %211, %212 : vector<8x1xf32>
    %214 = vector.broadcast %213 : vector<8x1xf32> to vector<8x32xf32>
    %215 = arith.subf %207, %214 : vector<8x32xf32>
    %216 = arith.mulf %215, %215 : vector<8x32xf32>
    %cst_86 = arith.constant dense<0.000000e+00> : vector<8xf32>
    %217 = vector.multi_reduction <add>, %216, %cst_86 [1] : vector<8x32xf32> to vector<8xf32>
    %218 = vector.shape_cast %217 : vector<8xf32> to vector<8x1xf32>
    %cst_87 = arith.constant 3.200000e+01 : f32
    %219 = vector.broadcast %cst_87 : f32 to vector<8x1xf32>
    %220 = arith.divf %218, %219 : vector<8x1xf32>
    %221 = vector.broadcast %213 : vector<8x1xf32> to vector<8x32xf32>
    %222 = arith.subf %207, %221 : vector<8x32xf32>
    %cst_88 = arith.constant 9.99999996E-13 : f32
    %223 = vector.broadcast %cst_88 : f32 to vector<8x1xf32>
    %224 = arith.addf %220, %223 : vector<8x1xf32>
    %225 = math.rsqrt %224 : vector<8x1xf32>
    %226 = vector.broadcast %225 : vector<8x1xf32> to vector<8x32xf32>
    %227 = arith.mulf %222, %226 : vector<8x32xf32>
    %228 = vector.broadcast %208 : vector<1x32xf32> to vector<8x32xf32>
    %229 = arith.mulf %227, %228 : vector<8x32xf32>
    %230 = vector.broadcast %209 : vector<1x32xf32> to vector<8x32xf32>
    %231 = arith.addf %229, %230 : vector<8x32xf32>
    %c0_89 = arith.constant 0 : index
    %c0_90 = arith.constant 0 : index
    %232 = vector.load %arg21[%c0_89, %c0_90] : memref<32x64xbf16, #tpu.memory_space<vmem>>, vector<32x64xbf16>
    %233 = arith.truncf %231 : vector<8x32xf32> to vector<8x32xbf16>
    %cst_91 = arith.constant dense<0.000000e+00> : vector<8x64xf32>
    %234 = tpu.matmul %233, %232, %cst_91 {dimension_numbers = #tpu.dot_dimension_numbers<[1], [0], [0], [1], [0, 0, 1, 1], [], []>} : vector<8x32xbf16>, vector<32x64xbf16>, vector<8x64xf32> -> vector<8x64xf32>
    %c0_92 = arith.constant 0 : index
    %c0_93 = arith.constant 0 : index
    %235 = vector.load %arg22[%c0_92, %c0_93] : memref<1x64xf32, #tpu.memory_space<vmem>>, vector<1x64xf32>
    %236 = vector.broadcast %235 : vector<1x64xf32> to vector<8x64xf32>
    %237 = arith.addf %234, %236 : vector<8x64xf32>
    %cst_94 = arith.constant 5.000000e-01 : f32
    %238 = vector.broadcast %cst_94 : f32 to vector<8x64xf32>
    %239 = arith.mulf %238, %237 : vector<8x64xf32>
    %cst_95 = arith.constant 4.471500e-02 : f32
    %240 = vector.broadcast %cst_95 : f32 to vector<8x64xf32>
    %241 = arith.mulf %240, %237 : vector<8x64xf32>
    %242 = arith.mulf %241, %237 : vector<8x64xf32>
    %243 = arith.mulf %242, %237 : vector<8x64xf32>
    %244 = arith.addf %237, %243 : vector<8x64xf32>
    %cst_96 = arith.constant 0.797884583 : f32
    %245 = vector.broadcast %cst_96 : f32 to vector<8x64xf32>
    %246 = arith.mulf %245, %244 : vector<8x64xf32>
    %247 = math.tanh %246 : vector<8x64xf32>
    %cst_97 = arith.constant 1.000000e+00 : f32
    %248 = vector.broadcast %cst_97 : f32 to vector<8x64xf32>
    %249 = arith.addf %248, %247 : vector<8x64xf32>
    %250 = arith.mulf %239, %249 : vector<8x64xf32>
    %c0_98 = arith.constant 0 : index
    %c0_99 = arith.constant 0 : index
    %251 = vector.load %arg23[%c0_98, %c0_99] : memref<64x32xbf16, #tpu.memory_space<vmem>>, vector<64x32xbf16>
    %252 = arith.truncf %250 : vector<8x64xf32> to vector<8x64xbf16>
    %cst_100 = arith.constant dense<0.000000e+00> : vector<8x32xf32>
    %253 = tpu.matmul %252, %251, %cst_100 {dimension_numbers = #tpu.dot_dimension_numbers<[1], [0], [0], [1], [0, 0, 1, 1], [], []>} : vector<8x64xbf16>, vector<64x32xbf16>, vector<8x32xf32> -> vector<8x32xf32>
    %c0_101 = arith.constant 0 : index
    %c0_102 = arith.constant 0 : index
    %254 = vector.load %arg24[%c0_101, %c0_102] : memref<1x32xf32, #tpu.memory_space<vmem>>, vector<1x32xf32>
    %255 = vector.broadcast %254 : vector<1x32xf32> to vector<8x32xf32>
    %256 = arith.addf %253, %255 : vector<8x32xf32>
    %257 = arith.addf %256, %231 : vector<8x32xf32>
    %c0_103 = arith.constant 0 : index
    %c0_104 = arith.constant 0 : index
    %258 = vector.load %arg25[%c0_103, %c0_104] : memref<1x32xf32, #tpu.memory_space<vmem>>, vector<1x32xf32>
    %c0_105 = arith.constant 0 : index
    %c0_106 = arith.constant 0 : index
    %259 = vector.load %arg26[%c0_105, %c0_106] : memref<1x32xf32, #tpu.memory_space<vmem>>, vector<1x32xf32>
    %cst_107 = arith.constant dense<0.000000e+00> : vector<8xf32>
    %260 = vector.multi_reduction <add>, %257, %cst_107 [1] : vector<8x32xf32> to vector<8xf32>
    %261 = vector.shape_cast %260 : vector<8xf32> to vector<8x1xf32>
    %cst_108 = arith.constant 3.200000e+01 : f32
    %262 = vector.broadcast %cst_108 : f32 to vector<8x1xf32>
    %263 = arith.divf %261, %262 : vector<8x1xf32>
    %264 = vector.broadcast %263 : vector<8x1xf32> to vector<8x32xf32>
    %265 = arith.subf %257, %264 : vector<8x32xf32>
    %266 = arith.mulf %265, %265 : vector<8x32xf32>
    %cst_109 = arith.constant dense<0.000000e+00> : vector<8xf32>
    %267 = vector.multi_reduction <add>, %266, %cst_109 [1] : vector<8x32xf32> to vector<8xf32>
    %268 = vector.shape_cast %267 : vector<8xf32> to vector<8x1xf32>
    %cst_110 = arith.constant 3.200000e+01 : f32
    %269 = vector.broadcast %cst_110 : f32 to vector<8x1xf32>
    %270 = arith.divf %268, %269 : vector<8x1xf32>
    %271 = vector.broadcast %263 : vector<8x1xf32> to vector<8x32xf32>
    %272 = arith.subf %257, %271 : vector<8x32xf32>
    %cst_111 = arith.constant 9.99999996E-13 : f32
    %273 = vector.broadcast %cst_111 : f32 to vector<8x1xf32>
    %274 = arith.addf %270, %273 : vector<8x1xf32>
    %275 = math.rsqrt %274 : vector<8x1xf32>
    %276 = vector.broadcast %275 : vector<8x1xf32> to vector<8x32xf32>
    %277 = arith.mulf %272, %276 : vector<8x32xf32>
    %278 = vector.broadcast %258 : vector<1x32xf32> to vector<8x32xf32>
    %279 = arith.mulf %277, %278 : vector<8x32xf32>
    %280 = vector.broadcast %259 : vector<1x32xf32> to vector<8x32xf32>
    %281 = arith.addf %279, %280 : vector<8x32xf32>
    %c0_112 = arith.constant 0 : index
    %c0_113 = arith.constant 0 : index
    %282 = vector.load %arg27[%c0_112, %c0_113] : memref<32x128xbf16, #tpu.memory_space<vmem>>, vector<32x128xbf16>
    %283 = arith.truncf %281 : vector<8x32xf32> to vector<8x32xbf16>
    %cst_114 = arith.constant dense<0.000000e+00> : vector<8x128xf32>
    %284 = tpu.matmul %283, %282, %cst_114 {dimension_numbers = #tpu.dot_dimension_numbers<[1], [0], [0], [1], [0, 0, 1, 1], [], []>} : vector<8x32xbf16>, vector<32x128xbf16>, vector<8x128xf32> -> vector<8x128xf32>
    %c0_115 = arith.constant 0 : index
    %c0_116 = arith.constant 0 : index
    %285 = vector.load %arg28[%c0_115, %c0_116] : memref<1x128xf32, #tpu.memory_space<vmem>>, vector<1x128xf32>
    %286 = vector.broadcast %285 : vector<1x128xf32> to vector<8x128xf32>
    %287 = arith.addf %284, %286 : vector<8x128xf32>
    %c0_117 = arith.constant 0 : index
    %c0_118 = arith.constant 0 : index
    %c0_119 = arith.constant 0 : index
    %288 = vector.load %arg29[%c0_117, %c0_118, %c0_119] : memref<1x8x128xf32, #tpu.memory_space<vmem>>, vector<1x8x128xf32>
    %289 = vector.shape_cast %288 : vector<1x8x128xf32> to vector<8x128xf32>
    %290 = vector.shape_cast %287 : vector<8x128xf32> to vector<1x8x128xf32>
    tpu.vector_store %arg29[%c0_117, %c0_118, %c0_119], %290 {strides = array<i32>} : memref<1x8x128xf32, #tpu.memory_space<vmem>>, vector<1x8x128xf32>,
    return
  }
  func.func @transform_0(%arg0: i32) -> (i32, i32, i32) {
    %c0_i32 = arith.constant 0 : i32
    %c0_i32_0 = arith.constant 0 : i32
    %c0_i32_1 = arith.constant 0 : i32
    return %arg0, %c0_i32, %c0_i32_0 : i32, i32, i32
  }
  func.func @transform_1(%arg0: i32) -> (i32, i32, i32) {
    %c0_i32 = arith.constant 0 : i32
    %c0_i32_0 = arith.constant 0 : i32
    %c0_i32_1 = arith.constant 0 : i32
    return %arg0, %c0_i32, %c0_i32_0 : i32, i32, i32
  }
  func.func @transform_2(%arg0: i32) -> (i32, i32) {
    %c0_i32 = arith.constant 0 : i32
    %c0_i32_0 = arith.constant 0 : i32
    %c0_i32_1 = arith.constant 0 : i32
    return %c0_i32, %c0_i32_0 : i32, i32
  }
  func.func @transform_3(%arg0: i32) -> (i32, i32) {
    %c0_i32 = arith.constant 0 : i32
    %c0_i32_0 = arith.constant 0 : i32
    %c0_i32_1 = arith.constant 0 : i32
    return %c0_i32, %c0_i32_0 : i32, i32
  }
  func.func @transform_4(%arg0: i32) -> (i32, i32) {
    %c0_i32 = arith.constant 0 : i32
    %c0_i32_0 = arith.constant 0 : i32
    %c0_i32_1 = arith.constant 0 : i32
    return %c0_i32, %c0_i32_0 : i32, i32
  }
  func.func @transform_5(%arg0: i32) -> (i32, i32) {
    %c0_i32 = arith.constant 0 : i32
    %c0_i32_0 = arith.constant 0 : i32
    %c0_i32_1 = arith.constant 0 : i32
    return %c0_i32, %c0_i32_0 : i32, i32
  }
  func.func @transform_6(%arg0: i32) -> (i32, i32) {
    %c0_i32 = arith.constant 0 : i32
    %c0_i32_0 = arith.constant 0 : i32
    %c0_i32_1 = arith.constant 0 : i32
    return %c0_i32, %c0_i32_0 : i32, i32
  }
  func.func @transform_7(%arg0: i32) -> (i32, i32) {
    %c0_i32 = arith.constant 0 : i32
    %c0_i32_0 = arith.constant 0 : i32
    %c0_i32_1 = arith.constant 0 : i32
    return %c0_i32, %c0_i32_0 : i32, i32
  }
  func.func @transform_8(%arg0: i32) -> (i32, i32) {
    %c0_i32 = arith.constant 0 : i32
    %c0_i32_0 = arith.constant 0 : i32
    %c0_i32_1 = arith.constant 0 : i32
    return %c0_i32, %c0_i32_0 : i32, i32
  }
  func.func @transform_9(%arg0: i32) -> (i32, i32) {
    %c0_i32 = arith.constant 0 : i32
    %c0_i32_0 = arith.constant 0 : i32
    %c0_i32_1 = arith.constant 0 : i32
    return %c0_i32, %c0_i32_0 : i32, i32
  }
  func.func @transform_10(%arg0: i32) -> (i32, i32) {
    %c0_i32 = arith.constant 0 : i32
    %c0_i32_0 = arith.constant 0 : i32
    %c0_i32_1 = arith.constant 0 : i32
    return %c0_i32, %c0_i32_0 : i32, i32
  }
  func.func @transform_11(%arg0: i32) -> (i32, i32) {
    %c0_i32 = arith.constant 0 : i32
    %c0_i32_0 = arith.constant 0 : i32
    %c0_i32_1 = arith.constant 0 : i32
    return %c0_i32, %c0_i32_0 : i32, i32
  }
  func.func @transform_12(%arg0: i32) -> (i32, i32) {
    %c0_i32 = arith.constant 0 : i32
    %c0_i32_0 = arith.constant 0 : i32
    %c0_i32_1 = arith.constant 0 : i32
    return %c0_i32, %c0_i32_0 : i32, i32
  }
  func.func @transform_13(%arg0: i32) -> (i32, i32) {
    %c0_i32 = arith.constant 0 : i32
    %c0_i32_0 = arith.constant 0 : i32
    %c0_i32_1 = arith.constant 0 : i32
    return %c0_i32, %c0_i32_0 : i32, i32
  }
  func.func @transform_14(%arg0: i32) -> (i32, i32) {
    %c0_i32 = arith.constant 0 : i32
    %c0_i32_0 = arith.constant 0 : i32
    %c0_i32_1 = arith.constant 0 : i32
    return %c0_i32, %c0_i32_0 : i32, i32
  }
  func.func @transform_15(%arg0: i32) -> (i32, i32) {
    %c0_i32 = arith.constant 0 : i32
    %c0_i32_0 = arith.constant 0 : i32
    %c0_i32_1 = arith.constant 0 : i32
    return %c0_i32, %c0_i32_0 : i32, i32
  }
  func.func @transform_16(%arg0: i32) -> (i32, i32) {
    %c0_i32 = arith.constant 0 : i32
    %c0_i32_0 = arith.constant 0 : i32
    %c0_i32_1 = arith.constant 0 : i32
    return %c0_i32, %c0_i32_0 : i32, i32
  }
  func.func @transform_17(%arg0: i32) -> (i32, i32) {
    %c0_i32 = arith.constant 0 : i32
    %c0_i32_0 = arith.constant 0 : i32
    %c0_i32_1 = arith.constant 0 : i32
    return %c0_i32, %c0_i32_0 : i32, i32
  }
  func.func @transform_18(%arg0: i32) -> (i32, i32) {
    %c0_i32 = arith.constant 0 : i32
    %c0_i32_0 = arith.constant 0 : i32
    %c0_i32_1 = arith.constant 0 : i32
    return %c0_i32, %c0_i32_0 : i32, i32
  }
  func.func @transform_19(%arg0: i32) -> (i32, i32) {
    %c0_i32 = arith.constant 0 : i32
    %c0_i32_0 = arith.constant 0 : i32
    %c0_i32_1 = arith.constant 0 : i32
    return %c0_i32, %c0_i32_0 : i32, i32
  }
  func.func @transform_20(%arg0: i32) -> (i32, i32) {
    %c0_i32 = arith.constant 0 : i32
    %c0_i32_0 = arith.constant 0 : i32
    %c0_i32_1 = arith.constant 0 : i32
    return %c0_i32, %c0_i32_0 : i32, i32
  }
  func.func @transform_21(%arg0: i32) -> (i32, i32) {
    %c0_i32 = arith.constant 0 : i32
    %c0_i32_0 = arith.constant 0 : i32
    %c0_i32_1 = arith.constant 0 : i32
    return %c0_i32, %c0_i32_0 : i32, i32
  }
  func.func @transform_22(%arg0: i32) -> (i32, i32) {
    %c0_i32 = arith.constant 0 : i32
    %c0_i32_0 = arith.constant 0 : i32
    %c0_i32_1 = arith.constant 0 : i32
    return %c0_i32, %c0_i32_0 : i32, i32
  }
  func.func @transform_23(%arg0: i32) -> (i32, i32) {
    %c0_i32 = arith.constant 0 : i32
    %c0_i32_0 = arith.constant 0 : i32
    %c0_i32_1 = arith.constant 0 : i32
    return %c0_i32, %c0_i32_0 : i32, i32
  }
  func.func @transform_24(%arg0: i32) -> (i32, i32) {
    %c0_i32 = arith.constant 0 : i32
    %c0_i32_0 = arith.constant 0 : i32
    %c0_i32_1 = arith.constant 0 : i32
    return %c0_i32, %c0_i32_0 : i32, i32
  }
  func.func @transform_25(%arg0: i32) -> (i32, i32) {
    %c0_i32 = arith.constant 0 : i32
    %c0_i32_0 = arith.constant 0 : i32
    %c0_i32_1 = arith.constant 0 : i32
    return %c0_i32, %c0_i32_0 : i32, i32
  }
  func.func @transform_26(%arg0: i32) -> (i32, i32) {
    %c0_i32 = arith.constant 0 : i32
    %c0_i32_0 = arith.constant 0 : i32
    %c0_i32_1 = arith.constant 0 : i32
    return %c0_i32, %c0_i32_0 : i32, i32
  }
  func.func @transform_27(%arg0: i32) -> (i32, i32) {
    %c0_i32 = arith.constant 0 : i32
    %c0_i32_0 = arith.constant 0 : i32
    %c0_i32_1 = arith.constant 0 : i32
    return %c0_i32, %c0_i32_0 : i32, i32
  }
  func.func @transform_28(%arg0: i32) -> (i32, i32, i32) {
    %c0_i32 = arith.constant 0 : i32
    %c0_i32_0 = arith.constant 0 : i32
    %c0_i32_1 = arith.constant 0 : i32
    return %arg0, %c0_i32, %c0_i32_0 : i32, i32, i32
  }
}

module attributes {stable_mosaic.version = 11 : i64} {
  func.func @_encoder_vq_kernel(%arg0: i32, %arg1: memref<1x8x32xf32, #tpu.memory_space<vmem>>, %arg2: memref<1x32xf32, #tpu.memory_space<vmem>>, %arg3: memref<1x32xf32, #tpu.memory_space<vmem>>, %arg4: memref<1x32xf32, #tpu.memory_space<vmem>>, %arg5: memref<32x96xbf16, #tpu.memory_space<vmem>>, %arg6: memref<1x96xf32, #tpu.memory_space<vmem>>, %arg7: memref<32x32xf32, #tpu.memory_space<vmem>>, %arg8: memref<1x32xf32, #tpu.memory_space<vmem>>, %arg9: memref<1x32xf32, #tpu.memory_space<vmem>>, %arg10: memref<1x32xf32, #tpu.memory_space<vmem>>, %arg11: memref<32x64xbf16, #tpu.memory_space<vmem>>, %arg12: memref<1x64xf32, #tpu.memory_space<vmem>>, %arg13: memref<64x32xbf16, #tpu.memory_space<vmem>>, %arg14: memref<1x32xf32, #tpu.memory_space<vmem>>, %arg15: memref<1x32xf32, #tpu.memory_space<vmem>>, %arg16: memref<1x32xf32, #tpu.memory_space<vmem>>, %arg17: memref<32x32xbf16, #tpu.memory_space<vmem>>, %arg18: memref<1x32xf32, #tpu.memory_space<vmem>>, %arg19: memref<32x8xbf16, #tpu.memory_space<vmem>>, %arg20: memref<16x4xf32, #tpu.memory_space<vmem>>, %arg21: memref<1x16xf32, #tpu.memory_space<vmem>>, %arg22: memref<1x1x8xf32, #tpu.memory_space<vmem>>, %arg23: memref<1x1x2xi32, #tpu.memory_space<vmem>>, %arg24: memref<1x1x128xf32, #tpu.memory_space<vmem>>) attributes {dimension_semantics = [#tpu.dimension_semantics<parallel>], iteration_bounds = array<i64: 2>, scalar_prefetch = 0 : i64, scratch_operands = 0 : i64, tpu.core_type = #tpu.core_type<tc>, window_params = [{transform_indices = @transform_0, window_bounds = array<i64: 1, 8, 32>}, {pipeline_mode = #tpu.pipeline_mode<synchronous>, transform_indices = @transform_1, window_bounds = array<i64: 1, 32>}, {pipeline_mode = #tpu.pipeline_mode<synchronous>, transform_indices = @transform_2, window_bounds = array<i64: 1, 32>}, {pipeline_mode = #tpu.pipeline_mode<synchronous>, transform_indices = @transform_3, window_bounds = array<i64: 1, 32>}, {pipeline_mode = #tpu.pipeline_mode<synchronous>, transform_indices = @transform_4, window_bounds = array<i64: 32, 96>}, {pipeline_mode = #tpu.pipeline_mode<synchronous>, transform_indices = @transform_5, window_bounds = array<i64: 1, 96>}, {pipeline_mode = #tpu.pipeline_mode<synchronous>, transform_indices = @transform_6, window_bounds = array<i64: 32, 32>}, {pipeline_mode = #tpu.pipeline_mode<synchronous>, transform_indices = @transform_7, window_bounds = array<i64: 1, 32>}, {pipeline_mode = #tpu.pipeline_mode<synchronous>, transform_indices = @transform_8, window_bounds = array<i64: 1, 32>}, {pipeline_mode = #tpu.pipeline_mode<synchronous>, transform_indices = @transform_9, window_bounds = array<i64: 1, 32>}, {pipeline_mode = #tpu.pipeline_mode<synchronous>, transform_indices = @transform_10, window_bounds = array<i64: 32, 64>}, {pipeline_mode = #tpu.pipeline_mode<synchronous>, transform_indices = @transform_11, window_bounds = array<i64: 1, 64>}, {pipeline_mode = #tpu.pipeline_mode<synchronous>, transform_indices = @transform_12, window_bounds = array<i64: 64, 32>}, {pipeline_mode = #tpu.pipeline_mode<synchronous>, transform_indices = @transform_13, window_bounds = array<i64: 1, 32>}, {pipeline_mode = #tpu.pipeline_mode<synchronous>, transform_indices = @transform_14, window_bounds = array<i64: 1, 32>}, {pipeline_mode = #tpu.pipeline_mode<synchronous>, transform_indices = @transform_15, window_bounds = array<i64: 1, 32>}, {pipeline_mode = #tpu.pipeline_mode<synchronous>, transform_indices = @transform_16, window_bounds = array<i64: 32, 32>}, {pipeline_mode = #tpu.pipeline_mode<synchronous>, transform_indices = @transform_17, window_bounds = array<i64: 1, 32>}, {pipeline_mode = #tpu.pipeline_mode<synchronous>, transform_indices = @transform_18, window_bounds = array<i64: 32, 8>}, {pipeline_mode = #tpu.pipeline_mode<synchronous>, transform_indices = @transform_19, window_bounds = array<i64: 16, 4>}, {pipeline_mode = #tpu.pipeline_mode<synchronous>, transform_indices = @transform_20, window_bounds = array<i64: 1, 16>}, {transform_indices = @transform_21, window_bounds = array<i64: 1, 1, 8>}, {transform_indices = @transform_22, window_bounds = array<i64: 1, 1, 2>}, {transform_indices = @transform_23, window_bounds = array<i64: 1, 1, 128>}]} {
    %c0 = arith.constant 0 : index
    %c0_0 = arith.constant 0 : index
    %c0_1 = arith.constant 0 : index
    %0 = vector.load %arg1[%c0, %c0_0, %c0_1] : memref<1x8x32xf32, #tpu.memory_space<vmem>>, vector<1x8x32xf32>
    %1 = vector.shape_cast %0 : vector<1x8x32xf32> to vector<8x32xf32>
    %c0_2 = arith.constant 0 : index
    %c0_3 = arith.constant 0 : index
    %2 = vector.load %arg2[%c0_2, %c0_3] : memref<1x32xf32, #tpu.memory_space<vmem>>, vector<1x32xf32>
    %3 = vector.broadcast %2 : vector<1x32xf32> to vector<8x32xf32>
    %4 = arith.addf %1, %3 : vector<8x32xf32>
    %c0_4 = arith.constant 0 : index
    %c0_5 = arith.constant 0 : index
    %5 = vector.load %arg3[%c0_4, %c0_5] : memref<1x32xf32, #tpu.memory_space<vmem>>, vector<1x32xf32>
    %c0_6 = arith.constant 0 : index
    %c0_7 = arith.constant 0 : index
    %6 = vector.load %arg4[%c0_6, %c0_7] : memref<1x32xf32, #tpu.memory_space<vmem>>, vector<1x32xf32>
    %cst = arith.constant dense<0.000000e+00> : vector<8xf32>
    %7 = vector.multi_reduction <add>, %4, %cst [1] : vector<8x32xf32> to vector<8xf32>
    %8 = vector.shape_cast %7 : vector<8xf32> to vector<8x1xf32>
    %cst_8 = arith.constant 3.200000e+01 : f32
    %9 = vector.broadcast %cst_8 : f32 to vector<8x1xf32>
    %10 = arith.divf %8, %9 : vector<8x1xf32>
    %11 = vector.broadcast %10 : vector<8x1xf32> to vector<8x32xf32>
    %12 = arith.subf %4, %11 : vector<8x32xf32>
    %13 = arith.mulf %12, %12 : vector<8x32xf32>
    %cst_9 = arith.constant dense<0.000000e+00> : vector<8xf32>
    %14 = vector.multi_reduction <add>, %13, %cst_9 [1] : vector<8x32xf32> to vector<8xf32>
    %15 = vector.shape_cast %14 : vector<8xf32> to vector<8x1xf32>
    %cst_10 = arith.constant 3.200000e+01 : f32
    %16 = vector.broadcast %cst_10 : f32 to vector<8x1xf32>
    %17 = arith.divf %15, %16 : vector<8x1xf32>
    %18 = vector.broadcast %10 : vector<8x1xf32> to vector<8x32xf32>
    %19 = arith.subf %4, %18 : vector<8x32xf32>
    %cst_11 = arith.constant 9.99999996E-13 : f32
    %20 = vector.broadcast %cst_11 : f32 to vector<8x1xf32>
    %21 = arith.addf %17, %20 : vector<8x1xf32>
    %22 = math.rsqrt %21 : vector<8x1xf32>
    %23 = vector.broadcast %22 : vector<8x1xf32> to vector<8x32xf32>
    %24 = arith.mulf %19, %23 : vector<8x32xf32>
    %25 = vector.broadcast %5 : vector<1x32xf32> to vector<8x32xf32>
    %26 = arith.mulf %24, %25 : vector<8x32xf32>
    %27 = vector.broadcast %6 : vector<1x32xf32> to vector<8x32xf32>
    %28 = arith.addf %26, %27 : vector<8x32xf32>
    %c0_12 = arith.constant 0 : index
    %c0_13 = arith.constant 0 : index
    %29 = vector.load %arg5[%c0_12, %c0_13] : memref<32x96xbf16, #tpu.memory_space<vmem>>, vector<32x96xbf16>
    %c0_14 = arith.constant 0 : index
    %c0_15 = arith.constant 0 : index
    %30 = vector.load %arg6[%c0_14, %c0_15] : memref<1x96xf32, #tpu.memory_space<vmem>>, vector<1x96xf32>
    %c0_16 = arith.constant 0 : index
    %c0_17 = arith.constant 0 : index
    %31 = vector.load %arg7[%c0_16, %c0_17] : memref<32x32xf32, #tpu.memory_space<vmem>>, vector<32x32xf32>
    %c0_18 = arith.constant 0 : index
    %c0_19 = arith.constant 0 : index
    %32 = vector.load %arg8[%c0_18, %c0_19] : memref<1x32xf32, #tpu.memory_space<vmem>>, vector<1x32xf32>
    %33 = arith.truncf %28 : vector<8x32xf32> to vector<8x32xbf16>
    %cst_20 = arith.constant dense<0.000000e+00> : vector<8x96xf32>
    %34 = tpu.matmul %33, %29, %cst_20 {dimension_numbers = #tpu.dot_dimension_numbers<[1], [0], [0], [1], [0, 0, 1, 1], [], []>} : vector<8x32xbf16>, vector<32x96xbf16>, vector<8x96xf32> -> vector<8x96xf32>
    %35 = vector.broadcast %30 : vector<1x96xf32> to vector<8x96xf32>
    %36 = arith.addf %34, %35 : vector<8x96xf32>
    %cst_21 = arith.constant 0.000000e+00 : f32
    %37 = vector.broadcast %cst_21 : f32 to vector<8x32xf32>
    %38 = vector.extract_strided_slice %36 {offsets = [0, 0], sizes = [8, 8], strides = [1, 1]} : vector<8x96xf32> to vector<8x8xf32>
    %39 = vector.extract_strided_slice %36 {offsets = [0, 32], sizes = [8, 8], strides = [1, 1]} : vector<8x96xf32> to vector<8x8xf32>
    %40 = vector.extract_strided_slice %36 {offsets = [0, 64], sizes = [8, 8], strides = [1, 1]} : vector<8x96xf32> to vector<8x8xf32>
    %41 = arith.truncf %38 : vector<8x8xf32> to vector<8x8xbf16>
    %42 = arith.truncf %39 : vector<8x8xf32> to vector<8x8xbf16>
    %cst_22 = arith.constant dense<0.000000e+00> : vector<8x8xf32>
    %43 = tpu.matmul %41, %42, %cst_22 {dimension_numbers = #tpu.dot_dimension_numbers<[1], [1], [0], [0], [0, 0, 1, 0], [], []>} : vector<8x8xbf16>, vector<8x8xbf16>, vector<8x8xf32> -> vector<8x8xf32>
    %cst_23 = arith.constant 0.353553385 : f32
    %44 = vector.broadcast %cst_23 : f32 to vector<8x8xf32>
    %45 = arith.mulf %43, %44 : vector<8x8xf32>
    %cst_24 = arith.constant dense<0xFF800000> : vector<8xf32>
    %46 = vector.multi_reduction <maximumf>, %45, %cst_24 [1] : vector<8x8xf32> to vector<8xf32>
    %47 = vector.shape_cast %46 : vector<8xf32> to vector<8x1xf32>
    %48 = vector.broadcast %47 : vector<8x1xf32> to vector<8x8xf32>
    %49 = arith.subf %45, %48 : vector<8x8xf32>
    %50 = math.exp %49 : vector<8x8xf32>
    %cst_25 = arith.constant dense<0.000000e+00> : vector<8xf32>
    %51 = vector.multi_reduction <add>, %50, %cst_25 [1] : vector<8x8xf32> to vector<8xf32>
    %52 = vector.shape_cast %51 : vector<8xf32> to vector<8x1xf32>
    %53 = tpu.reciprocal %52 {approx = true} : vector<8x1xf32> -> vector<8x1xf32>
    %54 = vector.broadcast %53 : vector<8x1xf32> to vector<8x8xf32>
    %55 = arith.mulf %50, %54 : vector<8x8xf32>
    %56 = arith.truncf %55 : vector<8x8xf32> to vector<8x8xbf16>
    %57 = arith.truncf %40 : vector<8x8xf32> to vector<8x8xbf16>
    %cst_26 = arith.constant dense<0.000000e+00> : vector<8x8xf32>
    %58 = tpu.matmul %56, %57, %cst_26 {dimension_numbers = #tpu.dot_dimension_numbers<[1], [0], [0], [1], [0, 0, 1, 1], [], []>} : vector<8x8xbf16>, vector<8x8xbf16>, vector<8x8xf32> -> vector<8x8xf32>
    %59 = vector.extract_strided_slice %31 {offsets = [0, 0], sizes = [8, 32], strides = [1, 1]} : vector<32x32xf32> to vector<8x32xf32>
    %60 = arith.truncf %58 : vector<8x8xf32> to vector<8x8xbf16>
    %61 = arith.truncf %59 : vector<8x32xf32> to vector<8x32xbf16>
    %cst_27 = arith.constant dense<0.000000e+00> : vector<8x32xf32>
    %62 = tpu.matmul %60, %61, %cst_27 {dimension_numbers = #tpu.dot_dimension_numbers<[1], [0], [0], [1], [0, 0, 1, 1], [], []>} : vector<8x8xbf16>, vector<8x32xbf16>, vector<8x32xf32> -> vector<8x32xf32>
    %63 = arith.addf %37, %62 : vector<8x32xf32>
    %64 = vector.extract_strided_slice %36 {offsets = [0, 8], sizes = [8, 8], strides = [1, 1]} : vector<8x96xf32> to vector<8x8xf32>
    %65 = vector.extract_strided_slice %36 {offsets = [0, 40], sizes = [8, 8], strides = [1, 1]} : vector<8x96xf32> to vector<8x8xf32>
    %66 = vector.extract_strided_slice %36 {offsets = [0, 72], sizes = [8, 8], strides = [1, 1]} : vector<8x96xf32> to vector<8x8xf32>
    %67 = arith.truncf %64 : vector<8x8xf32> to vector<8x8xbf16>
    %68 = arith.truncf %65 : vector<8x8xf32> to vector<8x8xbf16>
    %cst_28 = arith.constant dense<0.000000e+00> : vector<8x8xf32>
    %69 = tpu.matmul %67, %68, %cst_28 {dimension_numbers = #tpu.dot_dimension_numbers<[1], [1], [0], [0], [0, 0, 1, 0], [], []>} : vector<8x8xbf16>, vector<8x8xbf16>, vector<8x8xf32> -> vector<8x8xf32>
    %cst_29 = arith.constant 0.353553385 : f32
    %70 = vector.broadcast %cst_29 : f32 to vector<8x8xf32>
    %71 = arith.mulf %69, %70 : vector<8x8xf32>
    %cst_30 = arith.constant dense<0xFF800000> : vector<8xf32>
    %72 = vector.multi_reduction <maximumf>, %71, %cst_30 [1] : vector<8x8xf32> to vector<8xf32>
    %73 = vector.shape_cast %72 : vector<8xf32> to vector<8x1xf32>
    %74 = vector.broadcast %73 : vector<8x1xf32> to vector<8x8xf32>
    %75 = arith.subf %71, %74 : vector<8x8xf32>
    %76 = math.exp %75 : vector<8x8xf32>
    %cst_31 = arith.constant dense<0.000000e+00> : vector<8xf32>
    %77 = vector.multi_reduction <add>, %76, %cst_31 [1] : vector<8x8xf32> to vector<8xf32>
    %78 = vector.shape_cast %77 : vector<8xf32> to vector<8x1xf32>
    %79 = tpu.reciprocal %78 {approx = true} : vector<8x1xf32> -> vector<8x1xf32>
    %80 = vector.broadcast %79 : vector<8x1xf32> to vector<8x8xf32>
    %81 = arith.mulf %76, %80 : vector<8x8xf32>
    %82 = arith.truncf %81 : vector<8x8xf32> to vector<8x8xbf16>
    %83 = arith.truncf %66 : vector<8x8xf32> to vector<8x8xbf16>
    %cst_32 = arith.constant dense<0.000000e+00> : vector<8x8xf32>
    %84 = tpu.matmul %82, %83, %cst_32 {dimension_numbers = #tpu.dot_dimension_numbers<[1], [0], [0], [1], [0, 0, 1, 1], [], []>} : vector<8x8xbf16>, vector<8x8xbf16>, vector<8x8xf32> -> vector<8x8xf32>
    %85 = vector.extract_strided_slice %31 {offsets = [8, 0], sizes = [8, 32], strides = [1, 1]} : vector<32x32xf32> to vector<8x32xf32>
    %86 = arith.truncf %84 : vector<8x8xf32> to vector<8x8xbf16>
    %87 = arith.truncf %85 : vector<8x32xf32> to vector<8x32xbf16>
    %cst_33 = arith.constant dense<0.000000e+00> : vector<8x32xf32>
    %88 = tpu.matmul %86, %87, %cst_33 {dimension_numbers = #tpu.dot_dimension_numbers<[1], [0], [0], [1], [0, 0, 1, 1], [], []>} : vector<8x8xbf16>, vector<8x32xbf16>, vector<8x32xf32> -> vector<8x32xf32>
    %89 = arith.addf %63, %88 : vector<8x32xf32>
    %90 = vector.extract_strided_slice %36 {offsets = [0, 16], sizes = [8, 8], strides = [1, 1]} : vector<8x96xf32> to vector<8x8xf32>
    %91 = vector.extract_strided_slice %36 {offsets = [0, 48], sizes = [8, 8], strides = [1, 1]} : vector<8x96xf32> to vector<8x8xf32>
    %92 = vector.extract_strided_slice %36 {offsets = [0, 80], sizes = [8, 8], strides = [1, 1]} : vector<8x96xf32> to vector<8x8xf32>
    %93 = arith.truncf %90 : vector<8x8xf32> to vector<8x8xbf16>
    %94 = arith.truncf %91 : vector<8x8xf32> to vector<8x8xbf16>
    %cst_34 = arith.constant dense<0.000000e+00> : vector<8x8xf32>
    %95 = tpu.matmul %93, %94, %cst_34 {dimension_numbers = #tpu.dot_dimension_numbers<[1], [1], [0], [0], [0, 0, 1, 0], [], []>} : vector<8x8xbf16>, vector<8x8xbf16>, vector<8x8xf32> -> vector<8x8xf32>
    %cst_35 = arith.constant 0.353553385 : f32
    %96 = vector.broadcast %cst_35 : f32 to vector<8x8xf32>
    %97 = arith.mulf %95, %96 : vector<8x8xf32>
    %cst_36 = arith.constant dense<0xFF800000> : vector<8xf32>
    %98 = vector.multi_reduction <maximumf>, %97, %cst_36 [1] : vector<8x8xf32> to vector<8xf32>
    %99 = vector.shape_cast %98 : vector<8xf32> to vector<8x1xf32>
    %100 = vector.broadcast %99 : vector<8x1xf32> to vector<8x8xf32>
    %101 = arith.subf %97, %100 : vector<8x8xf32>
    %102 = math.exp %101 : vector<8x8xf32>
    %cst_37 = arith.constant dense<0.000000e+00> : vector<8xf32>
    %103 = vector.multi_reduction <add>, %102, %cst_37 [1] : vector<8x8xf32> to vector<8xf32>
    %104 = vector.shape_cast %103 : vector<8xf32> to vector<8x1xf32>
    %105 = tpu.reciprocal %104 {approx = true} : vector<8x1xf32> -> vector<8x1xf32>
    %106 = vector.broadcast %105 : vector<8x1xf32> to vector<8x8xf32>
    %107 = arith.mulf %102, %106 : vector<8x8xf32>
    %108 = arith.truncf %107 : vector<8x8xf32> to vector<8x8xbf16>
    %109 = arith.truncf %92 : vector<8x8xf32> to vector<8x8xbf16>
    %cst_38 = arith.constant dense<0.000000e+00> : vector<8x8xf32>
    %110 = tpu.matmul %108, %109, %cst_38 {dimension_numbers = #tpu.dot_dimension_numbers<[1], [0], [0], [1], [0, 0, 1, 1], [], []>} : vector<8x8xbf16>, vector<8x8xbf16>, vector<8x8xf32> -> vector<8x8xf32>
    %111 = vector.extract_strided_slice %31 {offsets = [16, 0], sizes = [8, 32], strides = [1, 1]} : vector<32x32xf32> to vector<8x32xf32>
    %112 = arith.truncf %110 : vector<8x8xf32> to vector<8x8xbf16>
    %113 = arith.truncf %111 : vector<8x32xf32> to vector<8x32xbf16>
    %cst_39 = arith.constant dense<0.000000e+00> : vector<8x32xf32>
    %114 = tpu.matmul %112, %113, %cst_39 {dimension_numbers = #tpu.dot_dimension_numbers<[1], [0], [0], [1], [0, 0, 1, 1], [], []>} : vector<8x8xbf16>, vector<8x32xbf16>, vector<8x32xf32> -> vector<8x32xf32>
    %115 = arith.addf %89, %114 : vector<8x32xf32>
    %116 = vector.extract_strided_slice %36 {offsets = [0, 24], sizes = [8, 8], strides = [1, 1]} : vector<8x96xf32> to vector<8x8xf32>
    %117 = vector.extract_strided_slice %36 {offsets = [0, 56], sizes = [8, 8], strides = [1, 1]} : vector<8x96xf32> to vector<8x8xf32>
    %118 = vector.extract_strided_slice %36 {offsets = [0, 88], sizes = [8, 8], strides = [1, 1]} : vector<8x96xf32> to vector<8x8xf32>
    %119 = arith.truncf %116 : vector<8x8xf32> to vector<8x8xbf16>
    %120 = arith.truncf %117 : vector<8x8xf32> to vector<8x8xbf16>
    %cst_40 = arith.constant dense<0.000000e+00> : vector<8x8xf32>
    %121 = tpu.matmul %119, %120, %cst_40 {dimension_numbers = #tpu.dot_dimension_numbers<[1], [1], [0], [0], [0, 0, 1, 0], [], []>} : vector<8x8xbf16>, vector<8x8xbf16>, vector<8x8xf32> -> vector<8x8xf32>
    %cst_41 = arith.constant 0.353553385 : f32
    %122 = vector.broadcast %cst_41 : f32 to vector<8x8xf32>
    %123 = arith.mulf %121, %122 : vector<8x8xf32>
    %cst_42 = arith.constant dense<0xFF800000> : vector<8xf32>
    %124 = vector.multi_reduction <maximumf>, %123, %cst_42 [1] : vector<8x8xf32> to vector<8xf32>
    %125 = vector.shape_cast %124 : vector<8xf32> to vector<8x1xf32>
    %126 = vector.broadcast %125 : vector<8x1xf32> to vector<8x8xf32>
    %127 = arith.subf %123, %126 : vector<8x8xf32>
    %128 = math.exp %127 : vector<8x8xf32>
    %cst_43 = arith.constant dense<0.000000e+00> : vector<8xf32>
    %129 = vector.multi_reduction <add>, %128, %cst_43 [1] : vector<8x8xf32> to vector<8xf32>
    %130 = vector.shape_cast %129 : vector<8xf32> to vector<8x1xf32>
    %131 = tpu.reciprocal %130 {approx = true} : vector<8x1xf32> -> vector<8x1xf32>
    %132 = vector.broadcast %131 : vector<8x1xf32> to vector<8x8xf32>
    %133 = arith.mulf %128, %132 : vector<8x8xf32>
    %134 = arith.truncf %133 : vector<8x8xf32> to vector<8x8xbf16>
    %135 = arith.truncf %118 : vector<8x8xf32> to vector<8x8xbf16>
    %cst_44 = arith.constant dense<0.000000e+00> : vector<8x8xf32>
    %136 = tpu.matmul %134, %135, %cst_44 {dimension_numbers = #tpu.dot_dimension_numbers<[1], [0], [0], [1], [0, 0, 1, 1], [], []>} : vector<8x8xbf16>, vector<8x8xbf16>, vector<8x8xf32> -> vector<8x8xf32>
    %137 = vector.extract_strided_slice %31 {offsets = [24, 0], sizes = [8, 32], strides = [1, 1]} : vector<32x32xf32> to vector<8x32xf32>
    %138 = arith.truncf %136 : vector<8x8xf32> to vector<8x8xbf16>
    %139 = arith.truncf %137 : vector<8x32xf32> to vector<8x32xbf16>
    %cst_45 = arith.constant dense<0.000000e+00> : vector<8x32xf32>
    %140 = tpu.matmul %138, %139, %cst_45 {dimension_numbers = #tpu.dot_dimension_numbers<[1], [0], [0], [1], [0, 0, 1, 1], [], []>} : vector<8x8xbf16>, vector<8x32xbf16>, vector<8x32xf32> -> vector<8x32xf32>
    %141 = arith.addf %115, %140 : vector<8x32xf32>
    %142 = vector.broadcast %32 : vector<1x32xf32> to vector<8x32xf32>
    %143 = arith.addf %141, %142 : vector<8x32xf32>
    %144 = arith.addf %143, %28 : vector<8x32xf32>
    %c0_46 = arith.constant 0 : index
    %c0_47 = arith.constant 0 : index
    %145 = vector.load %arg9[%c0_46, %c0_47] : memref<1x32xf32, #tpu.memory_space<vmem>>, vector<1x32xf32>
    %c0_48 = arith.constant 0 : index
    %c0_49 = arith.constant 0 : index
    %146 = vector.load %arg10[%c0_48, %c0_49] : memref<1x32xf32, #tpu.memory_space<vmem>>, vector<1x32xf32>
    %cst_50 = arith.constant dense<0.000000e+00> : vector<8xf32>
    %147 = vector.multi_reduction <add>, %144, %cst_50 [1] : vector<8x32xf32> to vector<8xf32>
    %148 = vector.shape_cast %147 : vector<8xf32> to vector<8x1xf32>
    %cst_51 = arith.constant 3.200000e+01 : f32
    %149 = vector.broadcast %cst_51 : f32 to vector<8x1xf32>
    %150 = arith.divf %148, %149 : vector<8x1xf32>
    %151 = vector.broadcast %150 : vector<8x1xf32> to vector<8x32xf32>
    %152 = arith.subf %144, %151 : vector<8x32xf32>
    %153 = arith.mulf %152, %152 : vector<8x32xf32>
    %cst_52 = arith.constant dense<0.000000e+00> : vector<8xf32>
    %154 = vector.multi_reduction <add>, %153, %cst_52 [1] : vector<8x32xf32> to vector<8xf32>
    %155 = vector.shape_cast %154 : vector<8xf32> to vector<8x1xf32>
    %cst_53 = arith.constant 3.200000e+01 : f32
    %156 = vector.broadcast %cst_53 : f32 to vector<8x1xf32>
    %157 = arith.divf %155, %156 : vector<8x1xf32>
    %158 = vector.broadcast %150 : vector<8x1xf32> to vector<8x32xf32>
    %159 = arith.subf %144, %158 : vector<8x32xf32>
    %cst_54 = arith.constant 9.99999996E-13 : f32
    %160 = vector.broadcast %cst_54 : f32 to vector<8x1xf32>
    %161 = arith.addf %157, %160 : vector<8x1xf32>
    %162 = math.rsqrt %161 : vector<8x1xf32>
    %163 = vector.broadcast %162 : vector<8x1xf32> to vector<8x32xf32>
    %164 = arith.mulf %159, %163 : vector<8x32xf32>
    %165 = vector.broadcast %145 : vector<1x32xf32> to vector<8x32xf32>
    %166 = arith.mulf %164, %165 : vector<8x32xf32>
    %167 = vector.broadcast %146 : vector<1x32xf32> to vector<8x32xf32>
    %168 = arith.addf %166, %167 : vector<8x32xf32>
    %c0_55 = arith.constant 0 : index
    %c0_56 = arith.constant 0 : index
    %169 = vector.load %arg11[%c0_55, %c0_56] : memref<32x64xbf16, #tpu.memory_space<vmem>>, vector<32x64xbf16>
    %170 = arith.truncf %168 : vector<8x32xf32> to vector<8x32xbf16>
    %cst_57 = arith.constant dense<0.000000e+00> : vector<8x64xf32>
    %171 = tpu.matmul %170, %169, %cst_57 {dimension_numbers = #tpu.dot_dimension_numbers<[1], [0], [0], [1], [0, 0, 1, 1], [], []>} : vector<8x32xbf16>, vector<32x64xbf16>, vector<8x64xf32> -> vector<8x64xf32>
    %c0_58 = arith.constant 0 : index
    %c0_59 = arith.constant 0 : index
    %172 = vector.load %arg12[%c0_58, %c0_59] : memref<1x64xf32, #tpu.memory_space<vmem>>, vector<1x64xf32>
    %173 = vector.broadcast %172 : vector<1x64xf32> to vector<8x64xf32>
    %174 = arith.addf %171, %173 : vector<8x64xf32>
    %cst_60 = arith.constant 5.000000e-01 : f32
    %175 = vector.broadcast %cst_60 : f32 to vector<8x64xf32>
    %176 = arith.mulf %175, %174 : vector<8x64xf32>
    %cst_61 = arith.constant 4.471500e-02 : f32
    %177 = vector.broadcast %cst_61 : f32 to vector<8x64xf32>
    %178 = arith.mulf %177, %174 : vector<8x64xf32>
    %179 = arith.mulf %178, %174 : vector<8x64xf32>
    %180 = arith.mulf %179, %174 : vector<8x64xf32>
    %181 = arith.addf %174, %180 : vector<8x64xf32>
    %cst_62 = arith.constant 0.797884583 : f32
    %182 = vector.broadcast %cst_62 : f32 to vector<8x64xf32>
    %183 = arith.mulf %182, %181 : vector<8x64xf32>
    %184 = math.tanh %183 : vector<8x64xf32>
    %cst_63 = arith.constant 1.000000e+00 : f32
    %185 = vector.broadcast %cst_63 : f32 to vector<8x64xf32>
    %186 = arith.addf %185, %184 : vector<8x64xf32>
    %187 = arith.mulf %176, %186 : vector<8x64xf32>
    %c0_64 = arith.constant 0 : index
    %c0_65 = arith.constant 0 : index
    %188 = vector.load %arg13[%c0_64, %c0_65] : memref<64x32xbf16, #tpu.memory_space<vmem>>, vector<64x32xbf16>
    %189 = arith.truncf %187 : vector<8x64xf32> to vector<8x64xbf16>
    %cst_66 = arith.constant dense<0.000000e+00> : vector<8x32xf32>
    %190 = tpu.matmul %189, %188, %cst_66 {dimension_numbers = #tpu.dot_dimension_numbers<[1], [0], [0], [1], [0, 0, 1, 1], [], []>} : vector<8x64xbf16>, vector<64x32xbf16>, vector<8x32xf32> -> vector<8x32xf32>
    %c0_67 = arith.constant 0 : index
    %c0_68 = arith.constant 0 : index
    %191 = vector.load %arg14[%c0_67, %c0_68] : memref<1x32xf32, #tpu.memory_space<vmem>>, vector<1x32xf32>
    %192 = vector.broadcast %191 : vector<1x32xf32> to vector<8x32xf32>
    %193 = arith.addf %190, %192 : vector<8x32xf32>
    %194 = arith.addf %193, %168 : vector<8x32xf32>
    %c0_69 = arith.constant 0 : index
    %c0_70 = arith.constant 0 : index
    %195 = vector.load %arg15[%c0_69, %c0_70] : memref<1x32xf32, #tpu.memory_space<vmem>>, vector<1x32xf32>
    %c0_71 = arith.constant 0 : index
    %c0_72 = arith.constant 0 : index
    %196 = vector.load %arg16[%c0_71, %c0_72] : memref<1x32xf32, #tpu.memory_space<vmem>>, vector<1x32xf32>
    %cst_73 = arith.constant dense<0.000000e+00> : vector<8xf32>
    %197 = vector.multi_reduction <add>, %194, %cst_73 [1] : vector<8x32xf32> to vector<8xf32>
    %198 = vector.shape_cast %197 : vector<8xf32> to vector<8x1xf32>
    %cst_74 = arith.constant 3.200000e+01 : f32
    %199 = vector.broadcast %cst_74 : f32 to vector<8x1xf32>
    %200 = arith.divf %198, %199 : vector<8x1xf32>
    %201 = vector.broadcast %200 : vector<8x1xf32> to vector<8x32xf32>
    %202 = arith.subf %194, %201 : vector<8x32xf32>
    %203 = arith.mulf %202, %202 : vector<8x32xf32>
    %cst_75 = arith.constant dense<0.000000e+00> : vector<8xf32>
    %204 = vector.multi_reduction <add>, %203, %cst_75 [1] : vector<8x32xf32> to vector<8xf32>
    %205 = vector.shape_cast %204 : vector<8xf32> to vector<8x1xf32>
    %cst_76 = arith.constant 3.200000e+01 : f32
    %206 = vector.broadcast %cst_76 : f32 to vector<8x1xf32>
    %207 = arith.divf %205, %206 : vector<8x1xf32>
    %208 = vector.broadcast %200 : vector<8x1xf32> to vector<8x32xf32>
    %209 = arith.subf %194, %208 : vector<8x32xf32>
    %cst_77 = arith.constant 9.99999996E-13 : f32
    %210 = vector.broadcast %cst_77 : f32 to vector<8x1xf32>
    %211 = arith.addf %207, %210 : vector<8x1xf32>
    %212 = math.rsqrt %211 : vector<8x1xf32>
    %213 = vector.broadcast %212 : vector<8x1xf32> to vector<8x32xf32>
    %214 = arith.mulf %209, %213 : vector<8x32xf32>
    %215 = vector.broadcast %195 : vector<1x32xf32> to vector<8x32xf32>
    %216 = arith.mulf %214, %215 : vector<8x32xf32>
    %217 = vector.broadcast %196 : vector<1x32xf32> to vector<8x32xf32>
    %218 = arith.addf %216, %217 : vector<8x32xf32>
    %219 = vector.extract_strided_slice %218 {offsets = [0, 0], sizes = [1, 32], strides = [1, 1]} : vector<8x32xf32> to vector<1x32xf32>
    %c0_78 = arith.constant 0 : index
    %c0_79 = arith.constant 0 : index
    %220 = vector.load %arg17[%c0_78, %c0_79] : memref<32x32xbf16, #tpu.memory_space<vmem>>, vector<32x32xbf16>
    %221 = arith.truncf %219 : vector<1x32xf32> to vector<1x32xbf16>
    %cst_80 = arith.constant dense<0.000000e+00> : vector<1x32xf32>
    %222 = tpu.matmul %221, %220, %cst_80 {dimension_numbers = #tpu.dot_dimension_numbers<[1], [0], [0], [1], [0, 0, 1, 1], [], []>} : vector<1x32xbf16>, vector<32x32xbf16>, vector<1x32xf32> -> vector<1x32xf32>
    %c0_81 = arith.constant 0 : index
    %c0_82 = arith.constant 0 : index
    %223 = vector.load %arg18[%c0_81, %c0_82] : memref<1x32xf32, #tpu.memory_space<vmem>>, vector<1x32xf32>
    %224 = arith.addf %222, %223 : vector<1x32xf32>
    %225 = math.tanh %224 : vector<1x32xf32>
    %c0_83 = arith.constant 0 : index
    %c0_84 = arith.constant 0 : index
    %226 = vector.load %arg19[%c0_83, %c0_84] : memref<32x8xbf16, #tpu.memory_space<vmem>>, vector<32x8xbf16>
    %227 = arith.truncf %225 : vector<1x32xf32> to vector<1x32xbf16>
    %cst_85 = arith.constant dense<0.000000e+00> : vector<1x8xf32>
    %228 = tpu.matmul %227, %226, %cst_85 {dimension_numbers = #tpu.dot_dimension_numbers<[1], [0], [0], [1], [0, 0, 1, 1], [], []>} : vector<1x32xbf16>, vector<32x8xbf16>, vector<1x8xf32> -> vector<1x8xf32>
    %c0_86 = arith.constant 0 : index
    %c0_87 = arith.constant 0 : index
    %229 = vector.load %arg20[%c0_86, %c0_87] : memref<16x4xf32, #tpu.memory_space<vmem>>, vector<16x4xf32>
    %230 = tpu.iota {dimensions = array<i32: 1>} : vector<1x16xi32>
    %231 = tpu.iota {dimensions = array<i32: 1>} : vector<1x128xi32>
    %cst_88 = arith.constant 0.000000e+00 : f32
    %232 = vector.broadcast %cst_88 : f32 to vector<1x1xf32>
    %cst_89 = arith.constant 0.000000e+00 : f32
    %233 = vector.broadcast %cst_89 : f32 to vector<1x128xf32>
    %234 = vector.extract_strided_slice %228 {offsets = [0, 0], sizes = [1, 4], strides = [1, 1]} : vector<1x8xf32> to vector<1x4xf32>
    %235 = arith.mulf %234, %234 : vector<1x4xf32>
    %cst_90 = arith.constant dense<0.000000e+00> : vector<1xf32>
    %236 = vector.multi_reduction <add>, %235, %cst_90 [1] : vector<1x4xf32> to vector<1xf32>
    %237 = vector.shape_cast %236 : vector<1xf32> to vector<1x1xf32>
    %cst_91 = arith.constant dense<0.000000e+00> : vector<1x16xf32>
    %238 = tpu.matmul %234, %229, %cst_91 {dimension_numbers = #tpu.dot_dimension_numbers<[1], [1], [0], [0], [0, 0, 1, 0], [], []>} : vector<1x4xf32>, vector<16x4xf32>, vector<1x16xf32> -> vector<1x16xf32>
    %cst_92 = arith.constant 2.000000e+00 : f32
    %239 = vector.broadcast %cst_92 : f32 to vector<1x16xf32>
    %240 = arith.mulf %239, %238 : vector<1x16xf32>
    %241 = vector.broadcast %237 : vector<1x1xf32> to vector<1x16xf32>
    %242 = arith.subf %241, %240 : vector<1x16xf32>
    %c0_93 = arith.constant 0 : index
    %c0_94 = arith.constant 0 : index
    %243 = vector.load %arg21[%c0_93, %c0_94] : memref<1x16xf32, #tpu.memory_space<vmem>>, vector<1x16xf32>
    %244 = arith.addf %242, %243 : vector<1x16xf32>
    %cst_95 = arith.constant 0.000000e+00 : f32
    %245 = vector.broadcast %cst_95 : f32 to vector<1x16xf32>
    %246 = arith.subf %245, %244 : vector<1x16xf32>
    %cst_96 = arith.constant dense<0xFF800000> : vector<1xf32>
    %247 = vector.multi_reduction <maximumf>, %246, %cst_96 [1] : vector<1x16xf32> to vector<1xf32>
    %248 = vector.shape_cast %247 : vector<1xf32> to vector<1x1xf32>
    %249 = vector.broadcast %248 : vector<1x1xf32> to vector<1x16xf32>
    %250 = arith.cmpf oge, %246, %249 : vector<1x16xf32>
    %251 = arith.sitofp %230 : vector<1x16xi32> to vector<1x16xf32>
    %cst_97 = arith.constant 1.600000e+01 : f32
    %252 = vector.broadcast %cst_97 : f32 to vector<1x16xf32>
    %253 = arith.select %250, %251, %252 : vector<1x16xi1>, vector<1x16xf32>
    %cst_98 = arith.constant dense<0x7F800000> : vector<1xf32>
    %254 = vector.multi_reduction <minimumf>, %253, %cst_98 [1] : vector<1x16xf32> to vector<1xf32>
    %255 = vector.shape_cast %254 : vector<1xf32> to vector<1x1xf32>
    %256 = arith.fptosi %255 : vector<1x1xf32> to vector<1x1xi32>
    %257 = vector.broadcast %256 : vector<1x1xi32> to vector<1x16xi32>
    %258 = arith.cmpi eq, %230, %257 : vector<1x16xi32>
    %259 = arith.extui %258 : vector<1x16xi1> to vector<1x16xi32>
    %260 = arith.sitofp %259 : vector<1x16xi32> to vector<1x16xf32>
    %cst_99 = arith.constant dense<0.000000e+00> : vector<1x4xf32>
    %261 = tpu.matmul %260, %229, %cst_99 {dimension_numbers = #tpu.dot_dimension_numbers<[1], [0], [0], [1], [0, 0, 1, 1], [], []>} : vector<1x16xf32>, vector<16x4xf32>, vector<1x4xf32> -> vector<1x4xf32>
    %262 = arith.subf %261, %234 : vector<1x4xf32>
    %263 = arith.mulf %262, %262 : vector<1x4xf32>
    %cst_100 = arith.constant dense<0.000000e+00> : vector<1xf32>
    %264 = vector.multi_reduction <add>, %263, %cst_100 [1] : vector<1x4xf32> to vector<1xf32>
    %265 = vector.shape_cast %264 : vector<1xf32> to vector<1x1xf32>
    %266 = arith.addf %232, %265 : vector<1x1xf32>
    %c1_i32 = arith.constant 1 : i32
    %267 = vector.broadcast %c1_i32 : i32 to vector<1x1xi32>
    %268 = arith.addi %256, %267 : vector<1x1xi32>
    %269 = vector.broadcast %268 : vector<1x1xi32> to vector<1x128xi32>
    %270 = arith.cmpi eq, %231, %269 : vector<1x128xi32>
    %271 = arith.extui %270 : vector<1x128xi1> to vector<1x128xi32>
    %272 = arith.sitofp %271 : vector<1x128xi32> to vector<1x128xf32>
    %273 = arith.addf %233, %272 : vector<1x128xf32>
    %c0_101 = arith.constant 0 : index
    %c0_102 = arith.constant 0 : index
    %c0_103 = arith.constant 0 : index
    %274 = vector.load %arg22[%c0_101, %c0_102, %c0_103] : memref<1x1x8xf32, #tpu.memory_space<vmem>>, vector<1x1x4xf32>
    %275 = vector.shape_cast %274 : vector<1x1x4xf32> to vector<1x4xf32>
    %276 = vector.shape_cast %261 : vector<1x4xf32> to vector<1x1x4xf32>
    tpu.vector_store %arg22[%c0_101, %c0_102, %c0_103], %276 {strides = array<i32>} : memref<1x1x8xf32, #tpu.memory_space<vmem>>, vector<1x1x4xf32>,
    %c0_104 = arith.constant 0 : index
    %c0_105 = arith.constant 0 : index
    %c0_106 = arith.constant 0 : index
    %277 = vector.load %arg23[%c0_104, %c0_105, %c0_106] : memref<1x1x2xi32, #tpu.memory_space<vmem>>, vector<1x1x1xi32>
    %278 = vector.shape_cast %277 : vector<1x1x1xi32> to vector<1x1xi32>
    %279 = vector.shape_cast %256 : vector<1x1xi32> to vector<1x1x1xi32>
    tpu.vector_store %arg23[%c0_104, %c0_105, %c0_106], %279 {strides = array<i32>} : memref<1x1x2xi32, #tpu.memory_space<vmem>>, vector<1x1x1xi32>,
    %280 = vector.extract_strided_slice %228 {offsets = [0, 4], sizes = [1, 4], strides = [1, 1]} : vector<1x8xf32> to vector<1x4xf32>
    %281 = arith.mulf %280, %280 : vector<1x4xf32>
    %cst_107 = arith.constant dense<0.000000e+00> : vector<1xf32>
    %282 = vector.multi_reduction <add>, %281, %cst_107 [1] : vector<1x4xf32> to vector<1xf32>
    %283 = vector.shape_cast %282 : vector<1xf32> to vector<1x1xf32>
    %cst_108 = arith.constant dense<0.000000e+00> : vector<1x16xf32>
    %284 = tpu.matmul %280, %229, %cst_108 {dimension_numbers = #tpu.dot_dimension_numbers<[1], [1], [0], [0], [0, 0, 1, 0], [], []>} : vector<1x4xf32>, vector<16x4xf32>, vector<1x16xf32> -> vector<1x16xf32>
    %cst_109 = arith.constant 2.000000e+00 : f32
    %285 = vector.broadcast %cst_109 : f32 to vector<1x16xf32>
    %286 = arith.mulf %285, %284 : vector<1x16xf32>
    %287 = vector.broadcast %283 : vector<1x1xf32> to vector<1x16xf32>
    %288 = arith.subf %287, %286 : vector<1x16xf32>
    %c0_110 = arith.constant 0 : index
    %c0_111 = arith.constant 0 : index
    %289 = vector.load %arg21[%c0_110, %c0_111] : memref<1x16xf32, #tpu.memory_space<vmem>>, vector<1x16xf32>
    %290 = arith.addf %288, %289 : vector<1x16xf32>
    %cst_112 = arith.constant 0.000000e+00 : f32
    %291 = vector.broadcast %cst_112 : f32 to vector<1x16xf32>
    %292 = arith.subf %291, %290 : vector<1x16xf32>
    %cst_113 = arith.constant dense<0xFF800000> : vector<1xf32>
    %293 = vector.multi_reduction <maximumf>, %292, %cst_113 [1] : vector<1x16xf32> to vector<1xf32>
    %294 = vector.shape_cast %293 : vector<1xf32> to vector<1x1xf32>
    %295 = vector.broadcast %294 : vector<1x1xf32> to vector<1x16xf32>
    %296 = arith.cmpf oge, %292, %295 : vector<1x16xf32>
    %297 = arith.sitofp %230 : vector<1x16xi32> to vector<1x16xf32>
    %cst_114 = arith.constant 1.600000e+01 : f32
    %298 = vector.broadcast %cst_114 : f32 to vector<1x16xf32>
    %299 = arith.select %296, %297, %298 : vector<1x16xi1>, vector<1x16xf32>
    %cst_115 = arith.constant dense<0x7F800000> : vector<1xf32>
    %300 = vector.multi_reduction <minimumf>, %299, %cst_115 [1] : vector<1x16xf32> to vector<1xf32>
    %301 = vector.shape_cast %300 : vector<1xf32> to vector<1x1xf32>
    %302 = arith.fptosi %301 : vector<1x1xf32> to vector<1x1xi32>
    %303 = vector.broadcast %302 : vector<1x1xi32> to vector<1x16xi32>
    %304 = arith.cmpi eq, %230, %303 : vector<1x16xi32>
    %305 = arith.extui %304 : vector<1x16xi1> to vector<1x16xi32>
    %306 = arith.sitofp %305 : vector<1x16xi32> to vector<1x16xf32>
    %cst_116 = arith.constant dense<0.000000e+00> : vector<1x4xf32>
    %307 = tpu.matmul %306, %229, %cst_116 {dimension_numbers = #tpu.dot_dimension_numbers<[1], [0], [0], [1], [0, 0, 1, 1], [], []>} : vector<1x16xf32>, vector<16x4xf32>, vector<1x4xf32> -> vector<1x4xf32>
    %308 = arith.subf %307, %280 : vector<1x4xf32>
    %309 = arith.mulf %308, %308 : vector<1x4xf32>
    %cst_117 = arith.constant dense<0.000000e+00> : vector<1xf32>
    %310 = vector.multi_reduction <add>, %309, %cst_117 [1] : vector<1x4xf32> to vector<1xf32>
    %311 = vector.shape_cast %310 : vector<1xf32> to vector<1x1xf32>
    %312 = arith.addf %266, %311 : vector<1x1xf32>
    %c1_i32_118 = arith.constant 1 : i32
    %313 = vector.broadcast %c1_i32_118 : i32 to vector<1x1xi32>
    %314 = arith.addi %302, %313 : vector<1x1xi32>
    %315 = vector.broadcast %314 : vector<1x1xi32> to vector<1x128xi32>
    %316 = arith.cmpi eq, %231, %315 : vector<1x128xi32>
    %317 = arith.extui %316 : vector<1x128xi1> to vector<1x128xi32>
    %318 = arith.sitofp %317 : vector<1x128xi32> to vector<1x128xf32>
    %319 = arith.addf %273, %318 : vector<1x128xf32>
    %c0_119 = arith.constant 0 : index
    %c0_120 = arith.constant 0 : index
    %c4 = arith.constant 4 : index
    %320 = vector.load %arg22[%c0_119, %c0_120, %c4] : memref<1x1x8xf32, #tpu.memory_space<vmem>>, vector<1x1x4xf32>
    %321 = vector.shape_cast %320 : vector<1x1x4xf32> to vector<1x4xf32>
    %322 = vector.shape_cast %307 : vector<1x4xf32> to vector<1x1x4xf32>
    tpu.vector_store %arg22[%c0_119, %c0_120, %c4], %322 {strides = array<i32>} : memref<1x1x8xf32, #tpu.memory_space<vmem>>, vector<1x1x4xf32>,
    %c0_121 = arith.constant 0 : index
    %c0_122 = arith.constant 0 : index
    %c1 = arith.constant 1 : index
    %323 = vector.load %arg23[%c0_121, %c0_122, %c1] : memref<1x1x2xi32, #tpu.memory_space<vmem>>, vector<1x1x1xi32>
    %324 = vector.shape_cast %323 : vector<1x1x1xi32> to vector<1x1xi32>
    %325 = vector.shape_cast %302 : vector<1x1xi32> to vector<1x1x1xi32>
    tpu.vector_store %arg23[%c0_121, %c0_122, %c1], %325 {strides = array<i32>} : memref<1x1x2xi32, #tpu.memory_space<vmem>>, vector<1x1x1xi32>,
    %c0_i32 = arith.constant 0 : i32
    %326 = vector.broadcast %c0_i32 : i32 to vector<1x128xi32>
    %327 = arith.cmpi eq, %231, %326 : vector<1x128xi32>
    %328 = vector.shape_cast %312 : vector<1x1xf32> to vector<1x1xf32>
    %329 = vector.broadcast %328 : vector<1x1xf32> to vector<1x128xf32>
    %330 = arith.select %327, %329, %319 : vector<1x128xi1>, vector<1x128xf32>
    %c0_123 = arith.constant 0 : index
    %c0_124 = arith.constant 0 : index
    %c0_125 = arith.constant 0 : index
    %331 = vector.load %arg24[%c0_123, %c0_124, %c0_125] : memref<1x1x128xf32, #tpu.memory_space<vmem>>, vector<1x1x128xf32>
    %332 = vector.shape_cast %331 : vector<1x1x128xf32> to vector<1x128xf32>
    %333 = vector.shape_cast %330 : vector<1x128xf32> to vector<1x1x128xf32>
    tpu.vector_store %arg24[%c0_123, %c0_124, %c0_125], %333 {strides = array<i32>} : memref<1x1x128xf32, #tpu.memory_space<vmem>>, vector<1x1x128xf32>,
    return
  }
  func.func @transform_0(%arg0: i32) -> (i32, i32, i32) {
    %c0_i32 = arith.constant 0 : i32
    %c0_i32_0 = arith.constant 0 : i32
    %c0_i32_1 = arith.constant 0 : i32
    return %arg0, %c0_i32, %c0_i32_0 : i32, i32, i32
  }
  func.func @transform_1(%arg0: i32) -> (i32, i32) {
    %c0_i32 = arith.constant 0 : i32
    %c0_i32_0 = arith.constant 0 : i32
    %c0_i32_1 = arith.constant 0 : i32
    return %c0_i32, %c0_i32_0 : i32, i32
  }
  func.func @transform_2(%arg0: i32) -> (i32, i32) {
    %c0_i32 = arith.constant 0 : i32
    %c0_i32_0 = arith.constant 0 : i32
    %c0_i32_1 = arith.constant 0 : i32
    return %c0_i32, %c0_i32_0 : i32, i32
  }
  func.func @transform_3(%arg0: i32) -> (i32, i32) {
    %c0_i32 = arith.constant 0 : i32
    %c0_i32_0 = arith.constant 0 : i32
    %c0_i32_1 = arith.constant 0 : i32
    return %c0_i32, %c0_i32_0 : i32, i32
  }
  func.func @transform_4(%arg0: i32) -> (i32, i32) {
    %c0_i32 = arith.constant 0 : i32
    %c0_i32_0 = arith.constant 0 : i32
    %c0_i32_1 = arith.constant 0 : i32
    return %c0_i32, %c0_i32_0 : i32, i32
  }
  func.func @transform_5(%arg0: i32) -> (i32, i32) {
    %c0_i32 = arith.constant 0 : i32
    %c0_i32_0 = arith.constant 0 : i32
    %c0_i32_1 = arith.constant 0 : i32
    return %c0_i32, %c0_i32_0 : i32, i32
  }
  func.func @transform_6(%arg0: i32) -> (i32, i32) {
    %c0_i32 = arith.constant 0 : i32
    %c0_i32_0 = arith.constant 0 : i32
    %c0_i32_1 = arith.constant 0 : i32
    return %c0_i32, %c0_i32_0 : i32, i32
  }
  func.func @transform_7(%arg0: i32) -> (i32, i32) {
    %c0_i32 = arith.constant 0 : i32
    %c0_i32_0 = arith.constant 0 : i32
    %c0_i32_1 = arith.constant 0 : i32
    return %c0_i32, %c0_i32_0 : i32, i32
  }
  func.func @transform_8(%arg0: i32) -> (i32, i32) {
    %c0_i32 = arith.constant 0 : i32
    %c0_i32_0 = arith.constant 0 : i32
    %c0_i32_1 = arith.constant 0 : i32
    return %c0_i32, %c0_i32_0 : i32, i32
  }
  func.func @transform_9(%arg0: i32) -> (i32, i32) {
    %c0_i32 = arith.constant 0 : i32
    %c0_i32_0 = arith.constant 0 : i32
    %c0_i32_1 = arith.constant 0 : i32
    return %c0_i32, %c0_i32_0 : i32, i32
  }
  func.func @transform_10(%arg0: i32) -> (i32, i32) {
    %c0_i32 = arith.constant 0 : i32
    %c0_i32_0 = arith.constant 0 : i32
    %c0_i32_1 = arith.constant 0 : i32
    return %c0_i32, %c0_i32_0 : i32, i32
  }
  func.func @transform_11(%arg0: i32) -> (i32, i32) {
    %c0_i32 = arith.constant 0 : i32
    %c0_i32_0 = arith.constant 0 : i32
    %c0_i32_1 = arith.constant 0 : i32
    return %c0_i32, %c0_i32_0 : i32, i32
  }
  func.func @transform_12(%arg0: i32) -> (i32, i32) {
    %c0_i32 = arith.constant 0 : i32
    %c0_i32_0 = arith.constant 0 : i32
    %c0_i32_1 = arith.constant 0 : i32
    return %c0_i32, %c0_i32_0 : i32, i32
  }
  func.func @transform_13(%arg0: i32) -> (i32, i32) {
    %c0_i32 = arith.constant 0 : i32
    %c0_i32_0 = arith.constant 0 : i32
    %c0_i32_1 = arith.constant 0 : i32
    return %c0_i32, %c0_i32_0 : i32, i32
  }
  func.func @transform_14(%arg0: i32) -> (i32, i32) {
    %c0_i32 = arith.constant 0 : i32
    %c0_i32_0 = arith.constant 0 : i32
    %c0_i32_1 = arith.constant 0 : i32
    return %c0_i32, %c0_i32_0 : i32, i32
  }
  func.func @transform_15(%arg0: i32) -> (i32, i32) {
    %c0_i32 = arith.constant 0 : i32
    %c0_i32_0 = arith.constant 0 : i32
    %c0_i32_1 = arith.constant 0 : i32
    return %c0_i32, %c0_i32_0 : i32, i32
  }
  func.func @transform_16(%arg0: i32) -> (i32, i32) {
    %c0_i32 = arith.constant 0 : i32
    %c0_i32_0 = arith.constant 0 : i32
    %c0_i32_1 = arith.constant 0 : i32
    return %c0_i32, %c0_i32_0 : i32, i32
  }
  func.func @transform_17(%arg0: i32) -> (i32, i32) {
    %c0_i32 = arith.constant 0 : i32
    %c0_i32_0 = arith.constant 0 : i32
    %c0_i32_1 = arith.constant 0 : i32
    return %c0_i32, %c0_i32_0 : i32, i32
  }
  func.func @transform_18(%arg0: i32) -> (i32, i32) {
    %c0_i32 = arith.constant 0 : i32
    %c0_i32_0 = arith.constant 0 : i32
    %c0_i32_1 = arith.constant 0 : i32
    return %c0_i32, %c0_i32_0 : i32, i32
  }
  func.func @transform_19(%arg0: i32) -> (i32, i32) {
    %c0_i32 = arith.constant 0 : i32
    %c0_i32_0 = arith.constant 0 : i32
    %c0_i32_1 = arith.constant 0 : i32
    return %c0_i32, %c0_i32_0 : i32, i32
  }
  func.func @transform_20(%arg0: i32) -> (i32, i32) {
    %c0_i32 = arith.constant 0 : i32
    %c0_i32_0 = arith.constant 0 : i32
    %c0_i32_1 = arith.constant 0 : i32
    return %c0_i32, %c0_i32_0 : i32, i32
  }
  func.func @transform_21(%arg0: i32) -> (i32, i32, i32) {
    %c0_i32 = arith.constant 0 : i32
    %c0_i32_0 = arith.constant 0 : i32
    %c0_i32_1 = arith.constant 0 : i32
    return %arg0, %c0_i32, %c0_i32_0 : i32, i32, i32
  }
  func.func @transform_22(%arg0: i32) -> (i32, i32, i32) {
    %c0_i32 = arith.constant 0 : i32
    %c0_i32_0 = arith.constant 0 : i32
    %c0_i32_1 = arith.constant 0 : i32
    return %arg0, %c0_i32, %c0_i32_0 : i32, i32, i32
  }
  func.func @transform_23(%arg0: i32) -> (i32, i32, i32) {
    %c0_i32 = arith.constant 0 : i32
    %c0_i32_0 = arith.constant 0 : i32
    %c0_i32_1 = arith.constant 0 : i32
    return %arg0, %c0_i32, %c0_i32_0 : i32, i32, i32
  }
}

</mosaic_0001>

<bundles_post_ra>
// kernel: vqvae_forward.3
= control target key start
LH: loop header
LB: loop body
LE: loop exit
PB: predicated region body
PF: predicated region fallthrough
CT: control target
= control target key end

     0   :  { %s3217_s0 = inlined_call_operand.vmem [shape: f32[2,8,32], index: 0, kind: input, shape index: {}]   ;;  %s3218_s1 = inlined_call_operand.vmem [shape: f32[2,1,8], index: 1, kind: input, shape index: {}]   ;;  %s3219_s2 = inlined_call_operand.vmem [shape: bf16[8,32], index: 2, kind: input, shape index: {}]   ;;  %s3220_s3 = inlined_call_operand.vmem [shape: bf16[32,32], index: 3, kind: input, shape index: {}]   ;;  %s3221_s4 = inlined_call_operand.vmem [shape: f32[1,32], index: 4, kind: input, shape index: {}]   ;;  %s3222_s5 = inlined_call_operand.vmem [shape: f32[1,32], index: 5, kind: input, shape index: {}]   ;;  %s3223_s6 = inlined_call_operand.vmem [shape: f32[1,32], index: 6, kind: input, shape index: {}]   ;;  %s3224_s7 = inlined_call_operand.vmem [shape: f32[1,32], index: 7, kind: input, shape index: {}]   ;;  %s3225_s8 = inlined_call_operand.vmem [shape: bf16[32,96], index: 8, kind: input, shape index: {}]   ;;  %s3226_s9 = inlined_call_operand.vmem [shape: f32[1,96], index: 9, kind: input, shape index: {}]   ;;  %s3227_s10 = inlined_call_operand.vmem [shape: f32[32,32], index: 10, kind: input, shape index: {}]   ;;  %s3228_s11 = inlined_call_operand.vmem [shape: f32[1,32], index: 11, kind: input, shape index: {}]   ;;  %s3229_s12 = inlined_call_operand.vmem [shape: f32[1,32], index: 12, kind: input, shape index: {}]   ;;  %s3230_s13 = inlined_call_operand.vmem [shape: f32[1,32], index: 13, kind: input, shape index: {}]   ;;  %s3231_s14 = inlined_call_operand.vmem [shape: bf16[32,64], index: 14, kind: input, shape index: {}]   ;;  %s3232_s15 = inlined_call_operand.vmem [shape: f32[1,64], index: 15, kind: input, shape index: {}]   ;;  %s3233_s16 = inlined_call_operand.vmem [shape: bf16[32,32], index: 16, kind: input, shape index: {}]   ;;  %s3234_s17 = inlined_call_operand.vmem [shape: f32[1,32], index: 17, kind: input, shape index: {}]   ;;  %s3235_s18 = inlined_call_operand.vmem [shape: f32[1,32], index: 18, kind: input, shape index: {}]   ;;  %s3236_s19 = inlined_call_operand.vmem [shape: f32[1,32], index: 19, kind: input, shape index: {}]   ;;  %s3237_s20 = inlined_call_operand.vmem [shape: bf16[32,64], index: 20, kind: input, shape index: {}]   ;;  %s3238_s21 = inlined_call_operand.vmem [shape: f32[1,64], index: 21, kind: input, shape index: {}]   ;;  %s3239_s22 = inlined_call_operand.vmem [shape: bf16[64,32], index: 22, kind: input, shape index: {}]   ;;  %s3240_s23 = inlined_call_operand.vmem [shape: f32[1,32], index: 23, kind: input, shape index: {}]   ;;  %s3241_s24 = inlined_call_operand.vmem [shape: f32[1,32], index: 24, kind: input, shape index: {}]   ;;  %s3242_s25 = inlined_call_operand.vmem [shape: f32[1,32], index: 25, kind: input, shape index: {}]   ;;  %s3243_s26 = inlined_call_operand.vmem [shape: bf16[32,128], index: 26, kind: input, shape index: {}]   ;;  %s3244_s27 = inlined_call_operand.vmem [shape: f32[1,128], index: 27, kind: input, shape index: {}]   ;;  %s3245_s28 = inlined_call_operand.hbm [shape: f32[2,8,128], index: 28, kind: output, shape index: {}]  }
   0x1   :  { %3256 = sst [smem:[#allocation8_spill]] %s3217_s0 }
   0x2   :  { %3257 = sst [smem:[#allocation9_spill]] %s3218_s1 }
   0x3   :  { %3258 = sst [smem:[#allocation10_spill]] %s3219_s2 }
   0x4   :  { %3259 = sst [smem:[#allocation11_spill]] %s3220_s3 }
   0x5   :  { %3260 = sst [smem:[#allocation12_spill]] %s3221_s4 }
   0x6   :  { %3261 = sst [smem:[#allocation13_spill]] %s3222_s5 }
   0x7   :  { %3262 = sst [smem:[#allocation14_spill]] %s3223_s6 }
   0x8   :  { %3263 = sst [smem:[#allocation15_spill]] %s3224_s7 }
   0x9   :  { %3264 = sst [smem:[#allocation16_spill]] %s3225_s8 }
   0xa   :  { %3265 = sst [smem:[#allocation17_spill]] %s3226_s9 }
   0xb   :  { %3266 = sst [smem:[#allocation18_spill]] %s3227_s10 }
   0xc   :  { %3267 = sst [smem:[#allocation19_spill]] %s3228_s11 }
   0xd   :  { %3268 = sst [smem:[#allocation20_spill]] %s3229_s12 }
   0xe   :  { %3269 = sst [smem:[#allocation21_spill]] %s3230_s13 }
   0xf   :  { %33 = vsyncpa [#allocation3], 0 }
  0x10   :  { %35 = vsyncpa [#allocation3 + $0x1], 0  ;;  %s2834_s8 = smov 0   ;;  %s2836_s5 = smov 0  }
  0x11   :  { %s2838_s9 = smov 0   ;;  %s2840_s30 = smov 0  }
  0x12 LB: > { %3270 = sst [smem:[#allocation5_spill]] %s2669_s9  ;;  %s2855_s3 = sadd.s32 4294967295, %s2673_s30   ;;  %s2673_s30 = sphi %s2840_s30, %s3292_s30   ;;  %s2669_s9 = sphi %s2838_s9, %s3294_s9   ;;  %s2665_s5 = sphi %s2836_s5, %s3296_s5   ;;  %s2661_s8 = sphi %s2834_s8, %s3295_s8  }
  0x13   : > { %s2270_s6 = sadd.s32 4294967294, %s2673_s30   ;;  %s2859_s10 = sadd.s32 1, %s2673_s30  }
  0x14   : > { %3271 = sst [smem:[#allocation6_spill]] %s2859_s10  ;;  %s646_s0 = sadd.s32 1, %s2669_s9 }
  0x15   : > { %s643_s11 = ssub.s32 %s2673_s30, %s2859_s10  ;;  %p656_p0 = scmp.ne.s32.totalorder %s2669_s9, %s2665_s5 }
  0x16   : > { %p644_p1 = scmp.eq.s32.totalorder %s643_s11, 0  ;;  %p657_p2 = scmp.eq.s32.totalorder %s2855_s3, 1 }
  0x17   : > { %p662_p3 = scmp.ne.s32.totalorder %s2665_s5, %s2661_s8  ;;  %p663_p4 = scmp.eq.s32.totalorder %s2270_s6, 1 }
  0x18   : > { %s2870_s29 = scalar_select %p644_p1, %s2669_s9, %s646_s0  }
  0x19   : > { %p2872_p5 = por %p657_p2, %p656_p0  ;;  %p2876_p6 = por %p663_p4, %p662_p3 }
  0x1a   : > { %3272 = sst [smem:[#allocation7_spill]] %s2870_s29  ;;  %p2273_p7 = scmp.ge.s32.totalorder %s2673_s30, 1 }
  0x1b   : > { %p772_p8 = scmp.lt.s32.totalorder %s2673_s30, 3 }
  0x1d   : > { %p773_p9 = pnand %p2273_p7, %p772_p8 }
  0x1e   : > { %s3275_s4 = sld [smem:[#allocation10_spill]] (!%p773_p9)  ;;  %vm864_vm0 = vcmask (!%p773_p9), 1043456   ;;  %p848_p10 = scmp.lt.s32.totalorder (!%p773_p9), %s2855_s3, 1  ;;  %v2675_v1 = vmov (!%p773_p9), 0.0   ;;  %vm2676_vm1 = vmmov (!%p773_p9), 0   ;;  %vm860_vm2 = vcmask (!%p773_p9), 64512  }
  0x1f   : > { %776 = sbr.rel (%p773_p9) target bundleno = 4810 (0x12ca), region = 132  ;;  %2379 = vmatprep.subr.bf16.mxu0 (!%p773_p9), %v2675_v1  ;;  %2381 = vmatprep.mubr.msk.bf16.mxu0 (!%p773_p9), %vm2676_vm1, %v2675_v1  ;;  %s3276_s12 = sld [smem:[#allocation11_spill]] (!%p773_p9)  ;;  %v970_v7 = vlaneseq (!%p773_p9)  ;;  %vm926_vm3 = vcmask (!%p773_p9), 261120   ;;  %vm2046_vm7 = vcmask (!%p773_p9), 523264  }
  0x20   : > { %2385 = vmatprep.subr.bf16.mxu1 (!%p773_p9), %v2675_v1  ;;  %2389 = vmatprep.mubr.msk.bf16.mxu1 (!%p773_p9), %vm2676_vm1, %v2675_v1  ;;  %s3277_s29 = sld [smem:[#allocation9_spill]] (!%p773_p9)  ;;  %s3281_s0 = sld [smem:[#allocation14_spill]] (!%p773_p9) }
  0x21   : > { %v2910_v8 = vshrl.u32 (!%p773_p9), %v970_v7, 7  ;;  %s3283_s1 = sld [smem:[#allocation17_spill]] (!%p773_p9)  ;;  %s2679_s11 = smov (!%p773_p9), 88   ;;  %v1016_v54 = vand.u32 (!%p773_p9), 127, %v970_v7 }
  0x22   : > { %s3291_s13 = sld [smem:[#allocation21_spill]] (!%p773_p9) }
  0x23   : > { %v972_v9 = vsub.s32 (!%p773_p9), 0, %v2910_v8  ;;  %vm1017_vm4 = vcmp.le.s32.totalorder (!%p773_p9), %v1016_v54, %v2910_v8  ;;  %vm1018_vm5 = vcmp.eq.s32.totalorder (!%p773_p9), %v1016_v54, 0  ;;  %v2578_v8 = vld [vmem:[%s3237_s20 + $0x8] sm:$0xff] (!%p773_p9)  }
  0x24   : > { %v858_v0 = vld [vmem:[%s3275_s4] sm:$0xf] (!%p773_p9)  ;;  %s3278_s4 = sld [smem:[#allocation8_spill]] (!%p773_p9)  ;;  %vm2971_vm6 = vmor (!%p773_p9), %vm1017_vm4, %vm1018_vm5 }
  0x25   : > { %v866_v2 = vsel (!%p773_p9), %vm864_vm0, %v858_v0, 0  ;;  %v2569_v3 = vld [vmem:[%s3276_s12] sm:$0xff] (!%p773_p9)   ;;  %v2570_v6 = vld [vmem:[%s3276_s12 + $0x8] sm:$0xff] (!%p773_p9)   ;;  %s3279_s12 = sld [smem:[#allocation13_spill]] (!%p773_p9) }
  0x26   : > { %2380 = vmatpush3.bf16.msra.mxu0 %v866_v2  ;;  %s849_s6 = scalar_select %p848_p10, %s2855_s3, 1  ;;  %2386 = vmatpush3.bf16.msra.mxu1 %v2569_v3  ;;  %v2281_v36 = vld [vmem:[%s3281_s0] ss:$0 sm:$0xff] }
  0x27   : > { %2393 = vmatprep.subr.bf16.mxu0 %v2675_v1  ;;  %2387 = vmatprep.subr.bf16.mxu1 %v2675_v1  ;;  %v2283_v42 = vld [vmem:[%s3283_s1] ss:$0 sm:$0xff]  ;;  %s3253_s0 = smov 96   ;;  %s2686_s1 = smov 72  }
  0x28   : > { %s854_s9 = scalar_lea.vmem %s3277_s29, %s849_s6  ;;  %s2683_s29 = smov 112  }
  0x29   : > { %v857_v4 = vld [vmem:[%s854_s9] sm:$0x1]  ;;  %s2275_s9 = sshll.u32 %s849_s6, 3  ;;  %s3282_s6 = sld [smem:[#allocation15_spill]] }
  0x2a   : > { %v859_v5 = vpack.c.bf16 %v857_v4, %v857_v4  ;;  %2388 = vmatpush3.bf16.msra.mxu1 %v2570_v6  ;;  %s851_s10 = scalar_lea.vmem %s3278_s4, %s2275_s9  ;;  %s2677_s4 = smov 120  }
  0x2b   : > { %2401 = vmatprep.subr.bf16.mxu1 %v2675_v1  ;;  %v856_v11 = vld [vmem:[%s851_s10] sm:$0xff]  ;;  %s2680_s10 = smov 56   ;;  %s2682_s9 = smov 80  }
  0x2c   : > { %2382 = vmatmul.mubr.msk.bf16.vlgmr.msra.gmra.mrb[0].mxu0 %vm860_vm2, %v859_v5  ;;  %v2280_v16 = vld [vmem:[%s3279_s12] ss:$0 sm:$0xff]  ;;  %s3280_s12 = sld [smem:[#allocation16_spill]] }
  0x2d   : > { %2397 = vmatprep.mubr.msk.bf16.mxu0 %vm2676_vm1, %v2675_v1 }
  0x2f   : > { %v2282_v38 = vld [vmem:[%s3282_s6] ss:$0 sm:$0xff]  ;;  %s2681_s6 = smov 64  }
  0x32   : > { %v2571_v26 = vld [vmem:[%s3280_s12] sm:$0xff]   ;;  %v2572_v27 = vld [vmem:[%s3280_s12 + $0x8] sm:$0xff]   ;;  %s2327_s12 = sshll.u32 %s2855_s3, 7 }
  0x33   : > { %2394 = vmatpush3.bf16.msra.mxu0 %v2571_v26 }
  0x34   : > { %2395 = vmatprep.subr.bf16.mxu0 %v2675_v1 }
  0x37   : > { %2396 = vmatpush3.bf16.msra.mxu0 %v2572_v27 }
  0x38   : > { %2407 = vmatprep.subr.bf16.mxu0 %v2675_v1 }
  0xff   : > { %v902_v10 = vpop.f32.mrb[0].mxu0 }
 0x100   : > { %v912_v12 = vpack.c.bf16 %v902_v10, %v902_v10  ;;  %v973_v13 = vrot.slane %v902_v10, %v972_v9  ;;  %v2383_v14 = vpop.f32.mrb[1].mxu0 }
 0x101   : > { %v905_v15 = vpop.f32.mrb[2].mxu0 }
 0x102   : > { %v2384_v17 = vpop.f32.mrb[3].mxu0  ;;  %2390 = vmatmul.mubr.msk.bf16.vlgmr.msra.gmra.mrb[0].mxu1 %vm926_vm3, %v912_v12  ;;  %v974_v18 = vadd.f32 %v973_v13, %v856_v11 }
 0x103   : > { %2403 = vmatprep.mubr.msk.bf16.mxu1 %vm2676_vm1, %v2675_v1 }
 0x104   : > { %v982_v19 = vadd.f32 %v2280_v16, %v974_v18 }
 0x106   : > { %v985_v20 = vsel %vm926_vm3, %v982_v19, 0.0 }
 0x107   : > { %986 = vadd.xlane.f32.xlu0 %v985_v20 }
 0x194   : > { %v987_v21 = vpop.xlane.xlu0 %986 }
 0x195   : > { %v989_v22 = vmul.f32 0.03125, %v987_v21 }
 0x197   : > { %v990_v23 = vsub.f32 %v982_v19, %v989_v22 }
 0x199   : > { %v991_v24 = vmul.f32 %v990_v23, %v990_v23 }
 0x19b   : > { %v992_v25 = vsel %vm926_vm3, %v991_v24, 0.0 }
 0x19c   : > { %993 = vadd.xlane.f32.xlu0 %v992_v25 }
 0x1d5   : > { %v2934_v28 = vpop.f32.mrb[0].mxu1 }
 0x1d6   : > { %v2391_v29 = vpop.f32.mrb[1].mxu1 }
 0x1d7   : > { %v967_v30 = vpop.f32.mrb[2].mxu1 }
 0x1d8   : > { %v2392_v31 = vpop.f32.mrb[3].mxu1 }
 0x229   : > { %v994_v32 = vpop.xlane.xlu0 %993 }
 0x22a   : > { %v995_v33 = vmul.f32 0.03125, %v994_v32 }
 0x22c   : > { %v996_v34 = vadd.f32 1e-12, %v995_v33 }
 0x22e   : > { %2585 = vrsqrt.f32 %v996_v34 }
 0x238   : > { %v2586_v35 = vpop.eup %2585 }
 0x239   : > { %v998_v37 = vmul.f32 %v2586_v35, %v990_v23 }
 0x23b   : > { %v1005_v39 = vmul.f32 %v2281_v36, %v998_v37 }
 0x23d   : > { %v2942_v40 = vadd.f32 %v2282_v38, %v1005_v39 }
 0x23f   : > { %v1030_v41 = vpack.c.bf16 %v2942_v40, %v2942_v40 }
 0x241   : > { %2398 = vmatmul.mubr.msk.bf16.vlgmr.msra.gmra.mrb[4].mxu0 %vm926_vm3, %v1030_v41 }
 0x242   : > { %2409 = vmatprep.mubr.msk.bf16.mxu0 %vm2676_vm1, %v2675_v1 }
 0x314   : > { %v1086_v43 = vpop.f32.mrb[4].mxu0 }
 0x315   : > { %v1087_v44 = vadd.f32 %v2283_v42, %v1086_v43  ;;  %v2399_v45 = vpop.f32.mrb[5].mxu0 }
 0x316   : > { %v1089_v46 = vpop.f32.mrb[6].mxu0 }
 0x317   : > { %v2952_v47 = vpack.c.bf16 %v1087_v44, %v1087_v44  ;;  %v2400_v48 = vpop.f32.mrb[7].mxu0 }
 0x319   : > { %1206 = vrot.lane.b32.xlu0 %v2952_v47, %s2677_s4  ;;  %1094 = vrot.lane.b32.xlu1 %v2952_v47, %s3253_s0  ;;  %s3289_s4 = sld [smem:[#allocation19_spill]]  ;;  %s3290_s0 = sld [smem:[#allocation20_spill]] }
 0x31d   : > { %1208 = vrot.lane.b32.xlu1 %v2952_v47, %s2679_s11  ;;  %s3286_s11 = sld [smem:[#allocation18_spill]] }
 0x323   : > { %v1025_v32 = vld [vmem:[%s3286_s11] sm:$0xff]  ;;  %v1026_v34 = vld [vmem:[%s3286_s11 + $0x8] sm:$0xff] }
 0x324   : > { %v1205_v33 = vpack.c.bf16 %v1025_v32, %v1025_v32  ;;  %v1319_v36 = vpack.c.bf16 %v1026_v34, %v1026_v34 }
 0x326   : > { %v1370_v35 = vsel %vm864_vm0, %v1205_v33, 0  ;;  %v1324_v37 = vsel %vm864_vm0, %v1319_v36, 0 }
 0x38b   : > { %v1095_v49 = vpop.permute.xlu1 %1094  ;;  %v1207_v53 = vpop.permute.xlu0 %1206 }
 0x38c   : > { %v1100_v50 = vsel %vm860_vm2, %v1095_v49, 0 }
 0x38d   : > { %2402 = vmatpush3.bf16.xpose.msra.mxu1 %v1100_v50 }
 0x38e   : > { %2413 = vmatprep.subr.bf16.mxu1 %v2675_v1 }
 0x38f   : > { %v1209_v51 = vpop.permute.xlu1 %1208 }
 0x390   : > { %v1214_v52 = vsel %vm860_vm2, %v1209_v51, 0 }
 0x394   : > { %2404 = vmatmul.mubr.msk.bf16.vlgmr.msra.gmra.mrb[4].mxu1 %vm860_vm2, %v2952_v47 }
 0x395   : > { %2414 = vmatpush3.bf16.xpose.msra.mxu1 %v1214_v52  ;;  %2415 = vmatprep.mubr.msk.bf16.mxu1 %vm2676_vm1, %v2675_v1 }
 0x396   : > { %2425 = vmatprep.subr.bf16.mxu1 %v2675_v1 }
 0x39c   : > { %2416 = vmatmul.mubr.msk.bf16.vlgmr.msra.gmra.mrb[8].mxu1 %vm860_vm2, %v1207_v53 }
 0x39d   : > { %2427 = vmatprep.mubr.msk.bf16.mxu1 %vm2676_vm1, %v2675_v1  ;;  %2426 = vmatpush3.bf16.msra.mxu1 %v1324_v37 }
 0x39e   : > { %2437 = vmatprep.subr.bf16.mxu1 %v2675_v1 }
 0x467   : > { %v1136_v55 = vpop.f32.mrb[4].mxu1 }
 0x468   : > { %v1142_v57 = vmul.f32 0.35355338, %v1136_v55  ;;  %v2405_v58 = vpop.f32.mrb[5].mxu1 }
 0x469   : > { %v1139_v59 = vpop.f32.mrb[6].mxu1 }
 0x46a   : > { %v2406_v60 = vpop.f32.mrb[7].mxu1  ;;  %v1143_v61 = vsel %vm2971_vm6, %v1142_v57, -1e+30 }
 0x46b   : > { %v1144_v62 = vsel %vm860_vm2, %v1143_v61, -inf }
 0x46c   : > { %1145 = vmax.xlane.f32.xlu1 %v1144_v62 }
 0x46f   : > { %v1250_v63 = vpop.f32.mrb[8].mxu1 }
 0x470   : > { %v1256_v0 = vmul.f32 0.35355338, %v1250_v63  ;;  %v2417_v2 = vpop.f32.mrb[9].mxu1 }
 0x471   : > { %v1253_v3 = vpop.f32.mrb[10].mxu1 }
 0x472   : > { %v2418_v4 = vpop.f32.mrb[11].mxu1  ;;  %v1257_v5 = vsel %vm2971_vm6, %v1256_v0, -1e+30 }
 0x473   : > { %v1258_v6 = vsel %vm860_vm2, %v1257_v5, -inf }
 0x474   : > { %1259 = vmax.xlane.f32.xlu0 %v1258_v6 }
 0x48a   : > { %1270 = vrot.lane.b32.xlu0 %v2952_v47, %s2680_s10  ;;  %s3287_s10 = sld [smem:[#allocation12_spill]] }
 0x4f9   : > { %v1146_v7 = vpop.xlane.xlu1 %1145 }
 0x4fa   : > { %v1147_v10 = vsub.f32 %v1143_v61, %v1146_v7 }
 0x4fc   : > { %v1148_v11 = vmul.f32 1.442695, %v1147_v10 }
 0x4fe   : > { %2587 = vpow2.f32 %v1148_v11 }
 0x501   : > { %v1260_v12 = vpop.xlane.xlu0 %1259 }
 0x502   : > { %v1261_v13 = vsub.f32 %v1257_v5, %v1260_v12 }
 0x504   : > { %v1262_v14 = vmul.f32 1.442695, %v1261_v13 }
 0x505   : > { %v1271_v25 = vpop.permute.xlu0 %1270 }
 0x506   : > { %2589 = vpow2.f32 %v1262_v14  ;;  %v1276_v27 = vsel %vm864_vm0, %v1271_v25, 0 }
 0x508   : > { %v2588_v15 = vpop.eup %2587 }
 0x509   : > { %v1150_v16 = vsel %vm860_vm2, %v2588_v15, 0.0 }
 0x50a   : > { %1151 = vadd.xlane.f32.xlu1 %v1150_v16 }
 0x510   : > { %v2590_v17 = vpop.eup %2589 }
 0x511   : > { %v1264_v18 = vsel %vm860_vm2, %v2590_v17, 0.0 }
 0x512   : > { %1265 = vadd.xlane.f32.xlu1 %v1264_v18 }
 0x523   : > { %1156 = vrot.lane.b32.xlu1 %v2952_v47, %s2681_s6  ;;  %s2687_s6 = smov 40  }
 0x527   : > { %1414 = vrot.lane.b32.xlu1 %v2952_v47, %s2682_s9  ;;  %s2684_s9 = smov 48  }
 0x52b   : > { %1412 = vrot.lane.b32.xlu1 %v2952_v47, %s2683_s29  ;;  %s2685_s29 = smov 104  }
 0x597   : > { %v1152_v19 = vpop.xlane.xlu1 %1151 }
 0x598   : > { %2591 = vrcp.f32 %v1152_v19 }
 0x59f   : > { %v1266_v20 = vpop.xlane.xlu1 %1265 }
 0x5a0   : > { %2593 = vrcp.f32 %v1266_v20 }
 0x5a2   : > { %v2592_v21 = vpop.eup %2591 }
 0x5a3   : > { %v1154_v22 = vmul.f32 %v2592_v21, %v2588_v15  ;;  %v1157_v23 = vpop.permute.xlu1 %1156 }
 0x5a4   : > { %v1162_v24 = vsel %vm864_vm0, %v1157_v23, 0  ;;  %v1027_v23 = vld [vmem:[%s3286_s11 + $0x10] sm:$0xff] }
 0x5a5   : > { %2408 = vmatpush3.bf16.msra.mxu0 %v1162_v24  ;;  %v1155_v26 = vpack.c.bf16 %v1154_v22, %v1154_v22  ;;  %v1525_v24 = vpack.c.bf16 %v1027_v23, %v1027_v23 }
 0x5a6   : > { %2419 = vmatprep.subr.bf16.mxu0 %v2675_v1 }
 0x5a7   : > { %v1415_v44 = vpop.permute.xlu1 %1414  ;;  %v1530_v25 = vsel %vm864_vm0, %v1525_v24, 0 }
 0x5a8   : > { %2410 = vmatmul.mubr.msk.bf16.vlgmr.msra.gmra.mrb[8].mxu0 %vm860_vm2, %v1155_v26  ;;  %v1420_v50 = vsel %vm860_vm2, %v1415_v44, 0 }
 0x5a9   : > { %2420 = vmatpush3.bf16.msra.mxu0 %v1276_v27  ;;  %2421 = vmatprep.mubr.msk.bf16.mxu0 %vm2676_vm1, %v2675_v1 }
 0x5aa   : > { %v2594_v29 = vpop.eup %2593  ;;  %2431 = vmatprep.subr.bf16.mxu0 %v2675_v1 }
 0x5ab   : > { %v1268_v30 = vmul.f32 %v2594_v29, %v2590_v17  ;;  %v1413_v52 = vpop.permute.xlu1 %1412 }
 0x5ad   : > { %v1269_v31 = vpack.c.bf16 %v1268_v30, %v1268_v30 }
 0x5b0   : > { %2422 = vmatmul.mubr.msk.bf16.vlgmr.msra.gmra.mrb[12].mxu0 %vm860_vm2, %v1269_v31 }
 0x5b1   : > { %2433 = vmatprep.mubr.msk.bf16.mxu0 %vm2676_vm1, %v2675_v1  ;;  %2432 = vmatpush3.bf16.msra.mxu0 %v1370_v35 }
 0x5b2   : > { %2443 = vmatprep.subr.bf16.mxu0 %v2675_v1 }
 0x67b   : > { %v1198_v38 = vpop.f32.mrb[8].mxu0 }
 0x67c   : > { %v1204_v39 = vpack.c.bf16 %v1198_v38, %v1198_v38  ;;  %v2411_v41 = vpop.f32.mrb[9].mxu0 }
 0x67d   : > { %v1201_v42 = vpop.f32.mrb[10].mxu0 }
 0x67e   : > { %v2412_v43 = vpop.f32.mrb[11].mxu0  ;;  %2434 = vmatmul.mubr.msk.bf16.vlgmr.msra.gmra.mrb[16].mxu0 %vm860_vm2, %v1204_v39 }
 0x67f   : > { %2445 = vmatprep.mubr.msk.bf16.mxu0 %vm2676_vm1, %v2675_v1 }
 0x683   : > { %v1312_v45 = vpop.f32.mrb[12].mxu0 }
 0x684   : > { %v1318_v46 = vpack.c.bf16 %v1312_v45, %v1312_v45  ;;  %v2423_v48 = vpop.f32.mrb[13].mxu0 }
 0x685   : > { %v1315_v49 = vpop.f32.mrb[14].mxu0 }
 0x686   : > { %v2424_v51 = vpop.f32.mrb[15].mxu0  ;;  %2428 = vmatmul.mubr.msk.bf16.vlgmr.msra.gmra.mrb[12].mxu1 %vm860_vm2, %v1318_v46 }
 0x687   : > { %2438 = vmatpush3.bf16.xpose.msra.mxu1 %v1420_v50  ;;  %2439 = vmatprep.mubr.msk.bf16.mxu1 %vm2676_vm1, %v2675_v1 }
 0x688   : > { %2449 = vmatprep.subr.bf16.mxu1 %v2675_v1 }
 0x68e   : > { %2440 = vmatmul.mubr.msk.bf16.vlgmr.msra.gmra.mrb[16].mxu1 %vm860_vm2, %v1413_v52 }
 0x68f   : > { %2451 = vmatprep.mubr.msk.bf16.mxu1 %vm2676_vm1, %v2675_v1  ;;  %2450 = vmatpush3.bf16.msra.mxu1 %v1530_v25 }
 0x690   : > { %2461 = vmatprep.subr.bf16.mxu1 %v2675_v1 }
 0x751   : > { %v1406_v53 = vpop.f32.mrb[16].mxu0 }
 0x752   : > { %v2435_v54 = vpop.f32.mrb[17].mxu0 }
 0x753   : > { %v1409_v55 = vpop.f32.mrb[18].mxu0 }
 0x754   : > { %v2436_v57 = vpop.f32.mrb[19].mxu0 }
 0x755   : > { %v913_v57 = vld [vmem:[%s3287_s10] sm:$0x1] }
 0x759   : > { %v1360_v58 = vpop.f32.mrb[12].mxu1 }
 0x75a   : > { %v3018_v59 = vadd.f32 %v1406_v53, %v1360_v58  ;;  %v2429_v60 = vpop.f32.mrb[13].mxu1  ;;  %v2574_v58 = vld [vmem:[%s3231_s14 + $0x8] sm:$0xff]  }
 0x75b   : > { %v1363_v61 = vpop.f32.mrb[14].mxu1 }
 0x75c   : > { %v2430_v62 = vpop.f32.mrb[15].mxu1  ;;  %v1028_v61 = vld [vmem:[%s3286_s11 + $0x18] sm:$0xff] }
 0x75d   : > { %v1686_v62 = vpack.c.bf16 %v1028_v61, %v1028_v61  ;;  %v2309_v61 = vld [vmem:[%s3236_s19] ss:$0 sm:$0xff] }
 0x761   : > { %v1456_v63 = vpop.f32.mrb[16].mxu1 }
 0x762   : > { %v1462_v0 = vmul.f32 0.35355338, %v1456_v63  ;;  %v2441_v2 = vpop.f32.mrb[17].mxu1  ;;  %v1691_v63 = vsel %vm864_vm0, %v1686_v62, 0 }
 0x763   : > { %v1459_v3 = vpop.f32.mrb[18].mxu1 }
 0x764   : > { %v2442_v4 = vpop.f32.mrb[19].mxu1  ;;  %v1463_v5 = vsel %vm2971_vm6, %v1462_v0, -1e+30  ;;  %v2575_v0 = vld [vmem:[%s3233_s16] sm:$0xff]  }
 0x765   : > { %v1464_v6 = vsel %vm860_vm2, %v1463_v5, -inf }
 0x766   : > { %1465 = vmax.xlane.f32.xlu1 %v1464_v6  ;;  %v2576_v6 = vld [vmem:[%s3233_s16 + $0x8] sm:$0xff]  }
 0x777   : > { %1476 = vrot.lane.b32.xlu1 %v2952_v47, %s2684_s9 }
 0x77b   : > { %1573 = vrot.lane.b32.xlu1 %v2952_v47, %s2685_s29  ;;  %s3288_s29 = smov 96  }
 0x7f3   : > { %v1466_v7 = vpop.xlane.xlu1 %1465 }
 0x7f4   : > { %v1467_v10 = vsub.f32 %v1463_v5, %v1466_v7  ;;  %v1776_v7 = vld [vmem:[%s3232_s15] sm:$0x1] }
 0x7f6   : > { %v1468_v11 = vmul.f32 1.442695, %v1467_v10 }
 0x7f7   : > { %v1477_v12 = vpop.permute.xlu1 %1476 }
 0x7f8   : > { %2595 = vpow2.f32 %v1468_v11  ;;  %v1482_v13 = vsel %vm864_vm0, %v1477_v12, 0 }
 0x7f9   : > { %2444 = vmatpush3.bf16.msra.mxu0 %v1482_v13 }
 0x7fa   : > { %2455 = vmatprep.subr.bf16.mxu0 %v2675_v1 }
 0x7fb   : > { %v1574_v22 = vpop.permute.xlu1 %1573 }
 0x802   : > { %v2596_v14 = vpop.eup %2595 }
 0x803   : > { %v1470_v15 = vsel %vm860_vm2, %v2596_v14, 0.0 }
 0x804   : > { %1471 = vadd.xlane.f32.xlu0 %v1470_v15 }
 0x81a   : > { %1575 = vrot.lane.b32.xlu0 %v2952_v47, %s2686_s1 }
 0x891   : > { %v1472_v16 = vpop.xlane.xlu0 %1471 }
 0x892   : > { %2597 = vrcp.f32 %v1472_v16 }
 0x895   : > { %v1576_v19 = vpop.permute.xlu0 %1575 }
 0x896   : > { %v1581_v21 = vsel %vm860_vm2, %v1576_v19, 0 }
 0x89c   : > { %v2598_v17 = vpop.eup %2597 }
 0x89d   : > { %v1474_v18 = vmul.f32 %v2598_v17, %v2596_v14  ;;  %v2299_v17 = vld [vmem:[%s3289_s4] ss:$0 sm:$0xff] }
 0x89f   : > { %v1475_v20 = vpack.c.bf16 %v1474_v18, %v1474_v18 }
 0x8a1   : > { %2446 = vmatmul.mubr.msk.bf16.vlgmr.msra.gmra.mrb[20].mxu0 %vm860_vm2, %v1475_v20 }
 0x8a2   : > { %2456 = vmatpush3.bf16.xpose.msra.mxu0 %v1581_v21  ;;  %2457 = vmatprep.mubr.msk.bf16.mxu0 %vm2676_vm1, %v2675_v1 }
 0x8a3   : > { %2467 = vmatprep.subr.bf16.mxu0 %v2675_v1 }
 0x8a9   : > { %2458 = vmatmul.mubr.msk.bf16.vlgmr.msra.gmra.mrb[24].mxu0 %vm860_vm2, %v1574_v22 }
 0x8aa   : > { %2469 = vmatprep.mubr.msk.bf16.mxu0 %vm2676_vm1, %v2675_v1  ;;  %2468 = vmatpush3.bf16.msra.mxu0 %v1691_v63 }
 0x8ab   : > { %2481 = vmatprep.subr.bf16.mxu0 %v2675_v1 }
 0x974   : > { %v1518_v26 = vpop.f32.mrb[20].mxu0 }
 0x975   : > { %v1524_v27 = vpack.c.bf16 %v1518_v26, %v1518_v26  ;;  %v2447_v29 = vpop.f32.mrb[21].mxu0 }
 0x976   : > { %v1521_v30 = vpop.f32.mrb[22].mxu0 }
 0x977   : > { %v2448_v31 = vpop.f32.mrb[23].mxu0  ;;  %2452 = vmatmul.mubr.msk.bf16.vlgmr.msra.gmra.mrb[20].mxu1 %vm860_vm2, %v1524_v27 }
 0x978   : > { %2463 = vmatprep.mubr.msk.bf16.mxu1 %vm2676_vm1, %v2675_v1 }
 0x97c   : > { %v1617_v32 = vpop.f32.mrb[24].mxu0 }
 0x97d   : > { %v1623_v33 = vmul.f32 0.35355338, %v1617_v32  ;;  %v2459_v34 = vpop.f32.mrb[25].mxu0 }
 0x97e   : > { %v1620_v35 = vpop.f32.mrb[26].mxu0 }
 0x97f   : > { %v2460_v36 = vpop.f32.mrb[27].mxu0  ;;  %v1624_v37 = vsel %vm2971_vm6, %v1623_v33, -1e+30 }
 0x980   : > { %v1625_v38 = vsel %vm860_vm2, %v1624_v37, -inf }
 0x981   : > { %1626 = vmax.xlane.f32.xlu1 %v1625_v38 }
 0xa0e   : > { %v1627_v39 = vpop.xlane.xlu1 %1626 }
 0xa0f   : > { %v1628_v41 = vsub.f32 %v1624_v37, %v1627_v39 }
 0xa11   : > { %v1629_v42 = vmul.f32 1.442695, %v1628_v41  ;;  %v2300_v41 = vld [vmem:[%s3290_s0] ss:$0 sm:$0xff]  ;;  %s845_s0 = sand.u32 1, %s2665_s5  }
 0xa12   : > { %s2274_s1 = sshll.u32 %s845_s0, 3  ;;  %s2189_s4 = scalar_lea.sflag [#allocation3], %s845_s0 }
 0xa13   : > { %2599 = vpow2.f32 %v1629_v42 }
 0xa1d   : > { %v2600_v43 = vpop.eup %2599 }
 0xa1e   : > { %v1631_v44 = vsel %vm860_vm2, %v2600_v43, 0.0 }
 0xa1f   : > { %1632 = vadd.xlane.f32.xlu0 %v1631_v44  ;;  %v2301_v44 = vld [vmem:[%s3291_s13] ss:$0 sm:$0xff]  ;;  %s3175_s13 = scalar_lea.hbm %s3245_s28, %s2327_s12 }
 0xa35   : > { %1637 = vrot.lane.b32.xlu0 %v2952_v47, %s2687_s6  ;;  %v2573_v47 = vld [vmem:[%s3231_s14] sm:$0xff]   ;;  %s847_s6 = scalar_lea.vmem [#allocation2], %s2274_s1  ;;  %s2688_s1 = smov [#allocation2]  }
 0xa36   : > { %s2202_s9 = sshll.u32 %s847_s6, 4  ;;  %s2615_s10 = sshll.u32 %s2688_s1, 4  ;;  %s3177_s9 = int_to_ptr.vmem [resolvable:$true] %s2202_s9  ;;  %s2616_s10 = int_to_ptr.vmem [resolvable:$false] %s2615_s10 }
 0xa37   : > { %s2611_s3 = scalar_lea.vmem %s3177_s9, 128  ;;  %s2617_s11 = scalar_lea.vmem %s2616_s10, 256 }
 0xa38   : > { %p2612_p11 = scmp.ne.s32.totalorder %s3177_s9, %s2611_s3  ;;  %p2618_p0 = scmp.lt.s32.totalorder %s3177_s9, %s2616_s10 }
 0xa39   : > { %p2619_p1 = scmp.lt.s32.totalorder %s2617_s11, %s2611_s3 }
 0xa3a   : > { %p2613_p12 = pnand %p2612_p11, %p2872_p5 }
 0xa3b   : > { %p2620_p2 = por %p2619_p1, %p2618_p0 }
 0xa3c   : > { %p2614_p13 = pneg %p2613_p12 }
 0xa3e   : > { %p2621_p3 = pnand %p2620_p2, %p2614_p13 }
 0xa4a   : > { %v1566_v45 = vpop.f32.mrb[20].mxu1 }
 0xa4b   : > { %v1572_v46 = vadd.f32 %v1566_v45, %v3018_v59  ;;  %v2453_v48 = vpop.f32.mrb[21].mxu1  ;;  %v965_v59 = vadd.f32 %v2934_v28, %v913_v57 }
 0xa4c   : > { %v1569_v56 = vpop.f32.mrb[22].mxu1 }
 0xa4d   : > { %v2454_v49 = vpop.f32.mrb[23].mxu1  ;;  %v1775_v60 = vpack.c.bf16 %v965_v59, %v965_v59  ;;  %v2308_v59 = vld [vmem:[%s3235_s18] ss:$0 sm:$0xff] }
 0xaac   : > { %v1633_v50 = vpop.xlane.xlu0 %1632 }
 0xaad   : > { %2601 = vrcp.f32 %v1633_v50 }
 0xab0   : > { %v1638_v51 = vpop.permute.xlu0 %1637 }
 0xab1   : > { %v1643_v52 = vsel %vm864_vm0, %v1638_v51, 0 }
 0xab2   : > { %2462 = vmatpush3.bf16.msra.mxu1 %v1643_v52 }
 0xab3   : > { %2473 = vmatprep.subr.bf16.mxu1 %v2675_v1 }
 0xab7   : > { %v2602_v53 = vpop.eup %2601 }
 0xab8   : > { %v1635_v54 = vmul.f32 %v2602_v53, %v2600_v43 }
 0xaba   : > { %v1636_v55 = vpack.c.bf16 %v1635_v54, %v1635_v54 }
 0xabc   : > { %2464 = vmatmul.mubr.msk.bf16.vlgmr.msra.gmra.mrb[24].mxu1 %vm860_vm2, %v1636_v55 }
 0xabd   : > { %2474 = vmatpush3.bf16.msra.mxu1 %v2573_v47  ;;  %2477 = vmatprep.mubr.msk.bf16.mxu1 %vm2676_vm1, %v2675_v1  ;;  %v2577_v47 = vld [vmem:[%s3237_s20] sm:$0xff]  }
 0xabe   : > { %2475 = vmatprep.subr.bf16.mxu1 %v2675_v1 }
 0xac1   : > { %2476 = vmatpush3.bf16.msra.mxu1 %v2574_v58 }
 0xac2   : > { %2489 = vmatprep.subr.bf16.mxu1 %v2675_v1 }
 0xac4   : > { %2478 = vmatmul.mubr.msk.bf16.vlgmr.msra.gmra.mrb[28].mxu1 %vm926_vm3, %v1775_v60 }
 0xac5   : > { %2493 = vmatprep.mubr.msk.bf16.mxu1 %vm2676_vm1, %v2675_v1  ;;  %2490 = vmatpush3.bf16.msra.mxu1 %v2577_v47 }
 0xac6   : > { %2491 = vmatprep.subr.bf16.mxu1 %v2675_v1 }
 0xac9   : > { %2492 = vmatpush3.bf16.msra.mxu1 %v2578_v8 }
 0xaca   : > { %2509 = vmatprep.subr.bf16.mxu1 %v2675_v1 }
 0xb8f   : > { %v1679_v28 = vpop.f32.mrb[24].mxu1 }
 0xb90   : > { %v1685_v2 = vpack.c.bf16 %v1679_v28, %v1679_v28  ;;  %v2465_v3 = vpop.f32.mrb[25].mxu1 }
 0xb91   : > { %v1682_v4 = vpop.f32.mrb[26].mxu1  ;;  %v2581_v3 = vld [vmem:[%s3239_s22 + $0x10] sm:$0xff]  }
 0xb92   : > { %v2466_v5 = vpop.f32.mrb[27].mxu1  ;;  %2470 = vmatmul.mubr.msk.bf16.vlgmr.msra.gmra.mrb[28].mxu0 %vm860_vm2, %v1685_v2  ;;  %v2580_v2 = vld [vmem:[%s3239_s22 + $0x8] sm:$0xff]   ;;  %v2582_v4 = vld [vmem:[%s3239_s22 + $0x18] sm:$0xff]  }
 0xb93   : > { %2482 = vmatpush3.bf16.msra.mxu0 %v2575_v0  ;;  %2485 = vmatprep.mubr.msk.bf16.mxu0 %vm2676_vm1, %v2675_v1  ;;  %v2579_v0 = vld [vmem:[%s3239_s22] sm:$0xff]  }
 0xb94   : > { %2483 = vmatprep.subr.bf16.mxu0 %v2675_v1  ;;  %v2310_v5 = vld [vmem:[%s3238_s21] ss:$0 sm:$0xff] }
 0xb97   : > { %v1826_v10 = vpop.f32.mrb[28].mxu1  ;;  %2484 = vmatpush3.bf16.msra.mxu0 %v2576_v6 }
 0xb98   : > { %v1827_v11 = vadd.f32 %v1826_v10, %v1776_v7  ;;  %v2479_v12 = vpop.f32.mrb[29].mxu1  ;;  %2497 = vmatprep.subr.bf16.mxu0 %v2675_v1 }
 0xb99   : > { %v1829_v13 = vpop.f32.mrb[30].mxu1 }
 0xb9a   : > { %v1836_v14 = vpack.c.bf16 %v1827_v11, %v1827_v11  ;;  %v2480_v15 = vpop.f32.mrb[31].mxu1 }
 0xb9c   : > { %1839 = vrot.lane.b32.xlu1 %v1836_v14, %s3288_s29 }
 0xc0e   : > { %v1840_v16 = vpop.permute.xlu1 %1839 }
 0xc0f   : > { %2486 = vmatmul.mubr.msk.bf16.vlgmr.msra.gmra.mrb[32].mxu0 %vm926_vm3, %v1840_v16 }
 0xc10   : > { %2505 = vmatprep.mubr.msk.bf16.mxu0 %vm2676_vm1, %v2675_v1  ;;  %2498 = vmatpush3.bf16.msra.mxu0 %v2579_v0 }
 0xc11   : > { %2499 = vmatprep.subr.bf16.mxu0 %v2675_v1 }
 0xc14   : > { %2500 = vmatpush3.bf16.msra.mxu0 %v2580_v2 }
 0xc15   : > { %2501 = vmatprep.subr.bf16.mxu0 %v2675_v1 }
 0xc18   : > { %2502 = vmatpush3.bf16.msra.mxu0 %v2581_v3 }
 0xc19   : > { %2503 = vmatprep.subr.bf16.mxu0 %v2675_v1 }
 0xc1c   : > { %2504 = vmatpush3.bf16.msra.mxu0 %v2582_v4 }
 0xc65   : > { %v1727_v18 = vpop.f32.mrb[28].mxu0 }
 0xc66   : > { %v1733_v19 = vadd.f32 %v1727_v18, %v1572_v46  ;;  %v2471_v20 = vpop.f32.mrb[29].mxu0 }
 0xc67   : > { %v1730_v21 = vpop.f32.mrb[30].mxu0 }
 0xc68   : > { %v1740_v22 = vadd.f32 %v2299_v17, %v1733_v19  ;;  %v2472_v23 = vpop.f32.mrb[31].mxu0 }
 0xc69   : > { %v2314_v23 = vld [vmem:[%s3240_s23] ss:$0 sm:$0xff] }
 0xc6a   : > { %v1741_v24 = vadd.f32 %v1740_v22, %v2942_v40  ;;  %v1837_v40 = vld [vmem:[%s3234_s17] sm:$0x1] }
 0xc6c   : > { %v1744_v25 = vsel %vm926_vm3, %v1741_v24, 0.0 }
 0xc6d   : > { %1745 = vadd.xlane.f32.xlu1 %v1744_v25 }
 0xce2   : > { %v1890_v26 = vpop.f32.mrb[32].mxu0 }
 0xce3   : > { %v2487_v27 = vpop.f32.mrb[33].mxu0  ;;  %v1891_v42 = vadd.f32 %v1890_v26, %v1837_v40 }
 0xce4   : > { %v1893_v29 = vpop.f32.mrb[34].mxu0 }
 0xce5   : > { %v2488_v30 = vpop.f32.mrb[35].mxu0  ;;  %v1899_v46 = vrot.slane %v1891_v42, %v972_v9 }
 0xcfa   : > { %v1746_v31 = vpop.xlane.xlu1 %1745 }
 0xcfb   : > { %v1747_v32 = vmul.f32 0.03125, %v1746_v31 }
 0xcfd   : > { %v1748_v33 = vsub.f32 %v1741_v24, %v1747_v32 }
 0xcff   : > { %v1749_v34 = vmul.f32 %v1748_v33, %v1748_v33 }
 0xd01   : > { %v1750_v35 = vsel %vm926_vm3, %v1749_v34, 0.0 }
 0xd02   : > { %1751 = vadd.xlane.f32.xlu0 %v1750_v35 }
 0xd8f   : > { %v1752_v36 = vpop.xlane.xlu0 %1751 }
 0xd90   : > { %v1753_v37 = vmul.f32 0.03125, %v1752_v36 }
 0xd92   : > { %v1754_v38 = vadd.f32 1e-12, %v1753_v37  ;;  %v2583_v37 = vld [vmem:[%s3243_s26] sm:$0xff]  }
 0xd94   : > { %2603 = vrsqrt.f32 %v1754_v38  ;;  %v2584_v38 = vld [vmem:[%s3243_s26 + $0x8] sm:$0xff]  }
 0xd9e   : > { %v2604_v39 = vpop.eup %2603 }
 0xd9f   : > { %v1756_v43 = vmul.f32 %v2604_v39, %v1748_v33 }
 0xda1   : > { %v1763_v45 = vmul.f32 %v2300_v41, %v1756_v43  ;;  %v2320_v43 = vld [vmem:[%s3241_s24] ss:$0 sm:$0xff] }
 0xda3   : > { %v1770_v48 = vadd.f32 %v2301_v44, %v1763_v45  ;;  %v2321_v45 = vld [vmem:[%s3242_s25] ss:$0 sm:$0xff] }
 0xda5   : > { %v1900_v56 = vadd.f32 %v1899_v46, %v1770_v48 }
 0xda7   : > { %v1903_v49 = vsel %vm926_vm3, %v1900_v56, 0.0 }
 0xda8   : > { %1904 = vadd.xlane.f32.xlu0 %v1903_v49 }
 0xe35   : > { %v1905_v50 = vpop.xlane.xlu0 %1904 }
 0xe36   : > { %v1906_v51 = vmul.f32 0.03125, %v1905_v50 }
 0xe38   : > { %v1907_v52 = vsub.f32 %v1900_v56, %v1906_v51 }
 0xe3a   : > { %v1908_v53 = vmul.f32 %v1907_v52, %v1907_v52 }
 0xe3c   : > { %v1909_v54 = vsel %vm926_vm3, %v1908_v53, 0.0 }
 0xe3d   : > { %1910 = vadd.xlane.f32.xlu1 %v1909_v54 }
 0xeca   : > { %v1911_v9 = vpop.xlane.xlu1 %1910 }
 0xecb   : > { %v1912_v55 = vmul.f32 0.03125, %v1911_v9 }
 0xecd   : > { %v1913_v57 = vadd.f32 1e-12, %v1912_v55 }
 0xecf   : > { %2605 = vrsqrt.f32 %v1913_v57 }
 0xed9   : > { %v2606_v58 = vpop.eup %2605 }
 0xeda   : > { %v1915_v60 = vmul.f32 %v2606_v58, %v1907_v52 }
 0xedc   : > { %v1922_v62 = vmul.f32 %v2308_v59, %v1915_v60 }
 0xede   : > { %v1929_v63 = vadd.f32 %v2309_v61, %v1922_v62 }
 0xee0   : > { %v1934_v28 = vpack.c.bf16 %v1929_v63, %v1929_v63 }
 0xee2   : > { %2494 = vmatmul.mubr.msk.bf16.vlgmr.msra.gmra.mrb[32].mxu1 %vm926_vm3, %v1934_v28 }
 0xee3   : > { %2513 = vmatprep.mubr.msk.bf16.mxu1 %vm2676_vm1, %v2675_v1  ;;  %2510 = vmatpush3.bf16.msra.mxu1 %v2583_v37 }
 0xee4   : > { %2511 = vmatprep.subr.bf16.mxu1 %v2675_v1  ;;  %v2322_v1 = vld [vmem:[%s3244_s27] ss:$0 sm:$0xff] }
 0xee7   : > { %2512 = vmatpush3.bf16.msra.mxu1 %v2584_v38 }
 0xfb5   : > { %v1991_v6 = vpop.f32.mrb[32].mxu1 }
 0xfb6   : > { %v1992_v7 = vadd.f32 %v2310_v5, %v1991_v6  ;;  %v2495_v10 = vpop.f32.mrb[33].mxu1 }
 0xfb7   : > { %v1994_v11 = vpop.f32.mrb[34].mxu1 }
 0xfb8   : > { %v1998_v12 = vmul.f32 0.044715, %v1992_v7  ;;  %v2496_v13 = vpop.f32.mrb[35].mxu1  ;;  %v1997_v19 = vmul.f32 0.5, %v1992_v7 }
 0xfba   : > { %v1999_v14 = vmul.f32 %v1998_v12, %v1992_v7 }
 0xfbc   : > { %v2000_v15 = vmul.f32 %v1999_v14, %v1992_v7 }
 0xfbe   : > { %v2001_v16 = vadd.f32 %v2000_v15, %v1992_v7 }
 0xfc0   : > { %v2002_v17 = vmul.f32 0.7978846, %v2001_v16 }
 0xfc2   : > { %2607 = vtanh.f32 %v2002_v17 }
 0xfcc   : > { %v2608_v18 = vpop.eup %2607 }
 0xfcd   : > { %v2004_v20 = vadd.f32 1.0, %v2608_v18 }
 0xfcf   : > { %v2005_v21 = vmul.f32 %v2004_v20, %v1997_v19 }
 0xfd1   : > { %v2014_v22 = vpack.c.bf16 %v2005_v21, %v2005_v21 }
 0xfd3   : > { %2506 = vmatmul.mubr.msk.bf16.vlgmr.msra.gmra.mrb[36].mxu0 %vm2046_vm7, %v2014_v22 }
0x10a6   : > { %v2084_v24 = vpop.f32.mrb[36].mxu0 }
0x10a7   : > { %v2085_v25 = vadd.f32 %v2314_v23, %v2084_v24  ;;  %v2507_v26 = vpop.f32.mrb[37].mxu0 }
0x10a8   : > { %v2087_v27 = vpop.f32.mrb[38].mxu0 }
0x10a9   : > { %v2508_v29 = vpop.f32.mrb[39].mxu0  ;;  %v2090_v30 = vadd.f32 %v2085_v25, %v1929_v63 }
0x10ab   : > { %v2093_v31 = vsel %vm926_vm3, %v2090_v30, 0.0 }
0x10ac   : > { %2094 = vadd.xlane.f32.xlu0 %v2093_v31 }
0x1139   : > { %v2095_v32 = vpop.xlane.xlu0 %2094 }
0x113a   : > { %v2096_v33 = vmul.f32 0.03125, %v2095_v32 }
0x113c   : > { %v2097_v34 = vsub.f32 %v2090_v30, %v2096_v33 }
0x113e   : > { %v2098_v35 = vmul.f32 %v2097_v34, %v2097_v34 }
0x1140   : > { %v2099_v36 = vsel %vm926_vm3, %v2098_v35, 0.0 }
0x1141   : > { %2100 = vadd.xlane.f32.xlu1 %v2099_v36 }
0x11ce   : > { %v2101_v40 = vpop.xlane.xlu1 %2100 }
0x11cf   : > { %v2102_v39 = vmul.f32 0.03125, %v2101_v40 }
0x11d1   : > { %v2103_v41 = vadd.f32 1e-12, %v2102_v39 }
0x11d3   : > { %2609 = vrsqrt.f32 %v2103_v41 }
0x11dd   : > { %v2610_v42 = vpop.eup %2609 }
0x11de   : > { %v2105_v44 = vmul.f32 %v2610_v42, %v2097_v34 }
0x11e0   : > { %v2112_v46 = vmul.f32 %v2320_v43, %v2105_v44 }
0x11e2   : > { %v2119_v48 = vadd.f32 %v2321_v45, %v2112_v46 }
0x11e4   : > { %v2124_v56 = vpack.c.bf16 %v2119_v48, %v2119_v48 }
0x11e6   : > { %2514 = vmatmul.mubr.msk.bf16.vlgmr.msra.gmra.mrb[36].mxu1 %vm926_vm3, %v2124_v56 }
0x12b9   : > { %v2181_v49 = vpop.f32.mrb[36].mxu1 }
0x12ba   : > { %v2182_v50 = vadd.f32 %v2322_v1, %v2181_v49  ;;  %v2515_v51 = vpop.f32.mrb[37].mxu1 }
0x12bb   : > { %v2184_v52 = vpop.f32.mrb[38].mxu1 }
0x12bc   : > { %2187 = vst [vmem:[%s847_s6] sm:$0xff] %v2182_v50  ;;  %v2516_v53 = vpop.f32.mrb[39].mxu1 }
0x12bd   : > { %2624 = shalt.err (!%p2621_p3)
}
0x12be   : > { %s2625_s12 = scalar_lea.hbm %s3175_s13, 128  ;;  %s2629_s29 = scalar_lea.hbm %s3245_s28, 256 }
0x12bf   : > { %p2626_p4 = scmp.ne.s32.totalorder %s3175_s13, %s2625_s12  ;;  %p2630_p9 = scmp.lt.u32.totalorder %s3175_s13, %s3245_s28 }
0x12c0   : > { %p2631_p10 = scmp.lt.u32.totalorder %s2629_s29, %s2625_s12  ;;  %p2633_p12 = scmp.lt.u32.totalorder %s2625_s12, %s3175_s13 }
0x12c1   : > { %p2627_p7 = pnand %p2626_p4, %p2872_p5 }
0x12c2   : > { %p2632_p11 = por %p2631_p10, %p2630_p9 }
0x12c3   : > { %p2628_p8 = pneg %p2627_p7 }
0x12c4   : > { %p2634_p13 = por %p2633_p12, %p2632_p11 }
0x12c6   : > { %p2635_p0 = pnand %p2634_p13, %p2628_p8 }
0x12c8   : > { %2638 = shalt.err (!%p2635_p0)
}
0x12c9   : > { %2517 = dma.vmem_to_hbm [thread:$0]  (%p2872_p5), %s3177_s9, 128, %s3175_s13, %s2189_s4  }
0x12ca PF: > { %p2523_p1 = scmp.ge.s32.totalorder %s2673_s30, 2  ;;  %s2214_s3 = sand.u32 1, %s2661_s8  }
0x12cb   : > { %s2215_s11 = scalar_lea.sflag [#allocation3], %s2214_s3 }
0x12cc   : > { %p2520_p2 = pnand %p2523_p1, %p2876_p6 }
0x12ce   : > { %2656 = dma.done.wait (!%p2520_p2), %s2215_s11, 128  }
0x12cf   : > { %2658 = vsyncadd (!%p2520_p2), %s2215_s11, 4294967168  ;;  %s3292_s30 = sld [smem:[#allocation6_spill]]  ;;  %s3293_s12 = sld [smem:[#allocation5_spill]] }
0x12d0   : > { %s3294_s9 = sld [smem:[#allocation7_spill]]  ;;  %s3295_s8 = smov %s2665_s5 }
0x12d5   : > { %p38_p3 = scmp.ge.s32.totalorder %s3292_s30, 4   ;;  %s3296_s5 = smov %s3293_s12 }
0x12d7   :  { %40 = sbr.rel (!%p38_p3) target bundleno = 18 (0x12), region = 170 }
0x12de   :  { %2220 = vsyncpa [#allocation3], 1 }
0x12df   :  { %2222 = vsyncpa [#allocation3 + $0x1], 1 }

// kernel: vqvae_forward.2
= control target key start
LH: loop header
LB: loop body
LE: loop exit
PB: predicated region body
PF: predicated region fallthrough
CT: control target
= control target key end

     0   :  { %s3297_s0 = inlined_call_operand.vmem [shape: f32[2,8,32], index: 0, kind: input, shape index: {}]   ;;  %s3298_s1 = inlined_call_operand.vmem [shape: f32[1,32], index: 1, kind: input, shape index: {}]   ;;  %s3299_s2 = inlined_call_operand.vmem [shape: f32[1,32], index: 2, kind: input, shape index: {}]   ;;  %s3300_s3 = inlined_call_operand.vmem [shape: f32[1,32], index: 3, kind: input, shape index: {}]   ;;  %s3301_s4 = inlined_call_operand.vmem [shape: bf16[32,96], index: 4, kind: input, shape index: {}]   ;;  %s3302_s5 = inlined_call_operand.vmem [shape: f32[1,96], index: 5, kind: input, shape index: {}]   ;;  %s3303_s6 = inlined_call_operand.vmem [shape: f32[32,32], index: 6, kind: input, shape index: {}]   ;;  %s3304_s7 = inlined_call_operand.vmem [shape: f32[1,32], index: 7, kind: input, shape index: {}]   ;;  %s3305_s8 = inlined_call_operand.vmem [shape: f32[1,32], index: 8, kind: input, shape index: {}]   ;;  %s3306_s9 = inlined_call_operand.vmem [shape: f32[1,32], index: 9, kind: input, shape index: {}]   ;;  %s3307_s10 = inlined_call_operand.vmem [shape: bf16[32,64], index: 10, kind: input, shape index: {}]   ;;  %s3308_s11 = inlined_call_operand.vmem [shape: f32[1,64], index: 11, kind: input, shape index: {}]   ;;  %s3309_s12 = inlined_call_operand.vmem [shape: bf16[64,32], index: 12, kind: input, shape index: {}]   ;;  %s3310_s13 = inlined_call_operand.vmem [shape: f32[1,32], index: 13, kind: input, shape index: {}]   ;;  %s3311_s14 = inlined_call_operand.vmem [shape: f32[1,32], index: 14, kind: input, shape index: {}]   ;;  %s3312_s15 = inlined_call_operand.vmem [shape: f32[1,32], index: 15, kind: input, shape index: {}]   ;;  %s3313_s16 = inlined_call_operand.vmem [shape: bf16[32,32], index: 16, kind: input, shape index: {}]   ;;  %s3314_s17 = inlined_call_operand.vmem [shape: f32[1,32], index: 17, kind: input, shape index: {}]   ;;  %s3315_s18 = inlined_call_operand.vmem [shape: bf16[32,8], index: 18, kind: input, shape index: {}]   ;;  %s3316_s19 = inlined_call_operand.vmem [shape: f32[16,4], index: 19, kind: input, shape index: {}]   ;;  %s3317_s20 = inlined_call_operand.vmem [shape: f32[1,16], index: 20, kind: input, shape index: {}]   ;;  %s3318_s21 = inlined_call_operand.vmem [shape: f32[2,1,8], index: 21, kind: output, shape index: {0}]   ;;  %s3319_s22 = inlined_call_operand.hbm [shape: s32[2,1,2], index: 22, kind: output, shape index: {1}]   ;;  %s3320_s23 = inlined_call_operand.vmem [shape: f32[2,1,128], index: 23, kind: output, shape index: {2}]  }
   0x1   :  { %3329 = sst [smem:[#allocation8_spill]] %s3297_s0 }
   0x2   :  { %3330 = sst [smem:[#allocation9_spill]] %s3298_s1 }
   0x3   :  { %3331 = sst [smem:[#allocation10_spill]] %s3299_s2 }
   0x4   :  { %3332 = sst [smem:[#allocation11_spill]] %s3300_s3 }
   0x5   :  { %3333 = sst [smem:[#allocation12_spill]] %s3301_s4 }
   0x6   :  { %3334 = sst [smem:[#allocation13_spill]] %s3302_s5 }
   0x7   :  { %3335 = sst [smem:[#allocation14_spill]] %s3303_s6 }
   0x8   :  { %3336 = sst [smem:[#allocation15_spill]] %s3304_s7 }
   0x9   :  { %3337 = sst [smem:[#allocation16_spill]] %s3305_s8 }
   0xa   :  { %3338 = sst [smem:[#allocation17_spill]] %s3306_s9 }
   0xb   :  { %3339 = sst [smem:[#allocation18_spill]] %s3307_s10 }
   0xc   :  { %3340 = sst [smem:[#allocation19_spill]] %s3308_s11 }
   0xd   :  { %3341 = sst [smem:[#allocation20_spill]] %s3309_s12 }
   0xe   :  { %29 = vsyncpa [#allocation3], 0 }
   0xf   :  { %31 = vsyncpa [#allocation3 + $0x1], 0  ;;  %s2901_s4 = smov 0   ;;  %s2903_s30 = smov 0  }
  0x10   :  { %s2905_s24 = smov 0   ;;  %s2907_s25 = smov 0  }
  0x11 LB: > { %3342 = sst [smem:[#allocation5_spill]] %s2758_s24  ;;  %s2922_s5 = sadd.s32 4294967295, %s2762_s25   ;;  %s2762_s25 = sphi %s2907_s25, %s3363_s25   ;;  %s2758_s24 = sphi %s2905_s24, %s3365_s24   ;;  %s2754_s30 = sphi %s2903_s30, %s3367_s30   ;;  %s2750_s4 = sphi %s2901_s4, %s3366_s4  }
  0x12   : > { %s2332_s1 = sadd.s32 4294967294, %s2762_s25   ;;  %s2926_s26 = sadd.s32 1, %s2762_s25  }
  0x13   : > { %3343 = sst [smem:[#allocation6_spill]] %s2926_s26  ;;  %s516_s2 = sadd.s32 1, %s2758_s24 }
  0x14   : > { %s513_s6 = ssub.s32 %s2762_s25, %s2926_s26  ;;  %p526_p0 = scmp.ne.s32.totalorder %s2758_s24, %s2754_s30 }
  0x15   : > { %p514_p1 = scmp.eq.s32.totalorder %s513_s6, 0  ;;  %p527_p2 = scmp.eq.s32.totalorder %s2922_s5, 1 }
  0x16   : > { %p532_p3 = scmp.ne.s32.totalorder %s2754_s30, %s2750_s4  ;;  %p533_p4 = scmp.eq.s32.totalorder %s2332_s1, 1 }
  0x17   : > { %s2937_s27 = scalar_select %p514_p1, %s2758_s24, %s516_s2  }
  0x18   : > { %p2939_p5 = por %p527_p2, %p526_p0  ;;  %p2943_p6 = por %p533_p4, %p532_p3 }
  0x19   : > { %3344 = sst [smem:[#allocation7_spill]] %s2937_s27  ;;  %p2335_p7 = scmp.ge.s32.totalorder %s2762_s25, 1 }
  0x1a   : > { %p644_p8 = scmp.lt.s32.totalorder %s2762_s25, 3 }
  0x1c   : > { %p645_p9 = pnand %p2335_p7, %p644_p8 }
  0x1d   : > { %p712_p10 = scmp.lt.s32.totalorder (!%p645_p9), %s2922_s5, 1  ;;  %s3347_s1 = sld [smem:[#allocation9_spill]] (!%p645_p9)  ;;  %vm734_vm0 = vcmask (!%p645_p9), 261120   ;;  %v2764_v10 = vmov (!%p645_p9), 0.0   ;;  %vm2765_vm1 = vmmov (!%p645_p9), 0   ;;  %vm839_vm2 = vcmask (!%p645_p9), 64512  }
  0x1e   : > { %648 = sbr.rel (%p645_p9) target bundleno = 5477 (0x1565), region = 104  ;;  %s3348_s24 = sld [smem:[#allocation8_spill]] (!%p645_p9)  ;;  %2445 = vmatprep.subr.bf16.mxu0 (!%p645_p9), %v2764_v10  ;;  %2453 = vmatprep.subr.bf16.mxu1 (!%p645_p9), %v2764_v10  ;;  %vm904_vm3 = vcmask (!%p645_p9), 1043456   ;;  %vm1628_vm4 = vcmask (!%p645_p9), 523264   ;;  %vm1833_vm5 = vcmask (!%p645_p9), 31744   ;;  %vm1829_vm7 = vcmask (!%p645_p9), 24576  }
  0x1f   : > { %2449 = vmatprep.mubr.msk.bf16.mxu0 (!%p645_p9), %vm2765_vm1, %v2764_v10  ;;  %2455 = vmatprep.mubr.msk.bf16.mxu1 (!%p645_p9), %vm2765_vm1, %v2764_v10  ;;  %s3350_s6 = sld [smem:[#allocation10_spill]] (!%p645_p9)  ;;  %s3352_s27 = sld [smem:[#allocation13_spill]] (!%p645_p9)  ;;  %vm3171_vm6 = vmpackc.low (!%p645_p9), %vm1833_vm5, %vm1833_vm5  ;;  %vm1918_vm8 = vcmask (!%p645_p9), 122880   ;;  %vm2018_vm11 = vcmask (!%p645_p9), 0   ;;  %vm1932_vm12 = vcmask (!%p645_p9), 130048   ;;  %vm2209_vm14 = vcmask (!%p645_p9), 8200  }
  0x20   : > { %s2768_s3 = smov (!%p645_p9), 88   ;;  %s2770_s0 = smov (!%p645_p9), 64  }
  0x21   : > { %s3355_s10 = sld [smem:[#allocation18_spill]] (!%p645_p9)  ;;  %s3356_s8 = sld [smem:[#allocation16_spill]] (!%p645_p9) }
  0x22   : > { %s3357_s9 = sld [smem:[#allocation17_spill]] (!%p645_p9)  ;;  %s3358_s12 = sld [smem:[#allocation20_spill]] (!%p645_p9) }
  0x23   : > { %v2337_v0 = vld [vmem:[%s3347_s1] ss:$0 sm:$0xff] (!%p645_p9)  ;;  %s3349_s1 = sld [smem:[#allocation12_spill]] (!%p645_p9)  ;;  %s3359_s11 = sld [smem:[#allocation19_spill]] (!%p645_p9) }
  0x25   : > { %s2951_s29 = scalar_select %p712_p10, %s2922_s5, 1  ;;  %v2338_v16 = vld [vmem:[%s3350_s6] ss:$0 sm:$0xff] }
  0x26   : > { %v2340_v22 = vld [vmem:[%s3352_s27] ss:$0 sm:$0xff]  ;;  %s2767_s6 = smov 96   ;;  %s3354_s27 = sld [smem:[#allocation15_spill]] }
  0x27   : > { %s2336_s2 = sshll.u32 %s2951_s29, 3 }
  0x28   : > { %s715_s26 = scalar_lea.vmem %s3348_s24, %s2336_s2  ;;  %s3351_s24 = sld [smem:[#allocation11_spill]] }
  0x29   : > { %v723_v1 = vld [vmem:[%s715_s26] sm:$0xff]  ;;  %v2663_v11 = vld [vmem:[%s3349_s1 + $0x8] sm:$0xff]   ;;  %s2766_s2 = smov 120   ;;  %s2772_s26 = smov 112  }
  0x2a   : > { %v731_v2 = vadd.f32 %v2337_v0, %v723_v1  ;;  %v2662_v9 = vld [vmem:[%s3349_s1] sm:$0xff]   ;;  %s2769_s1 = smov 56  }
  0x2b   : > { %2446 = vmatpush3.bf16.msra.mxu0 %v2662_v9 }
  0x2c   : > { %v735_v3 = vsel %vm734_vm0, %v731_v2, 0.0  ;;  %2447 = vmatprep.subr.bf16.mxu0 %v2764_v10 }
  0x2d   : > { %736 = vadd.xlane.f32.xlu0 %v735_v3 }
  0x2e   : > { %v2339_v18 = vld [vmem:[%s3351_s24] ss:$0 sm:$0xff]  ;;  %s2771_s24 = smov 80  }
  0x2f   : > { %2448 = vmatpush3.bf16.msra.mxu0 %v2663_v11 }
  0x30   : > { %2459 = vmatprep.subr.bf16.mxu0 %v2764_v10 }
  0xba   : > { %v737_v4 = vpop.xlane.xlu0 %736 }
  0xbb   : > { %v739_v5 = vmul.f32 0.03125, %v737_v4 }
  0xbd   : > { %v740_v6 = vsub.f32 %v731_v2, %v739_v5 }
  0xbf   : > { %v741_v7 = vmul.f32 %v740_v6, %v740_v6 }
  0xc1   : > { %v742_v8 = vsel %vm734_vm0, %v741_v7, 0.0 }
  0xc2   : > { %743 = vadd.xlane.f32.xlu0 %v742_v8 }
 0x14f   : > { %v744_v12 = vpop.xlane.xlu0 %743 }
 0x150   : > { %v745_v13 = vmul.f32 0.03125, %v744_v12 }
 0x152   : > { %v746_v14 = vadd.f32 1e-12, %v745_v13 }
 0x154   : > { %2674 = vrsqrt.f32 %v746_v14 }
 0x15e   : > { %v2675_v15 = vpop.eup %2674 }
 0x15f   : > { %v748_v17 = vmul.f32 %v2675_v15, %v740_v6 }
 0x161   : > { %v755_v19 = vmul.f32 %v2338_v16, %v748_v17 }
 0x163   : > { %v2982_v20 = vadd.f32 %v2339_v18, %v755_v19 }
 0x165   : > { %v773_v21 = vpack.c.bf16 %v2982_v20, %v2982_v20 }
 0x167   : > { %2450 = vmatmul.mubr.msk.bf16.vlgmr.msra.gmra.mrb[0].mxu0 %vm734_vm0, %v773_v21 }
 0x168   : > { %2461 = vmatprep.mubr.msk.bf16.mxu0 %vm2765_vm1, %v2764_v10 }
 0x23a   : > { %v829_v23 = vpop.f32.mrb[0].mxu0 }
 0x23b   : > { %v830_v24 = vadd.f32 %v2340_v22, %v829_v23  ;;  %v2451_v25 = vpop.f32.mrb[1].mxu0 }
 0x23c   : > { %v832_v26 = vpop.f32.mrb[2].mxu0 }
 0x23d   : > { %v2992_v27 = vpack.c.bf16 %v830_v24, %v830_v24  ;;  %v2452_v28 = vpop.f32.mrb[3].mxu0 }
 0x23f   : > { %950 = vrot.lane.b32.xlu0 %v2992_v27, %s2766_s2  ;;  %837 = vrot.lane.b32.xlu1 %v2992_v27, %s2767_s6  ;;  %s3353_s6 = sld [smem:[#allocation14_spill]]  ;;  %s3240_s2 = scalar_lea.vmem %s3318_s21, %s2951_s29 }
 0x243   : > { %952 = vrot.lane.b32.xlu1 %v2992_v27, %s2768_s3  ;;  %s2776_s3 = smov 40  }
 0x245   : > { %v768_v4 = vld [vmem:[%s3353_s6] sm:$0xff]  ;;  %v769_v6 = vld [vmem:[%s3353_s6 + $0x8] sm:$0xff] }
 0x246   : > { %v949_v5 = vpack.c.bf16 %v768_v4, %v768_v4  ;;  %v1062_v8 = vpack.c.bf16 %v769_v6, %v769_v6 }
 0x248   : > { %v1113_v7 = vsel %vm904_vm3, %v949_v5, 0  ;;  %v1067_v9 = vsel %vm904_vm3, %v1062_v8, 0 }
 0x2b1   : > { %v838_v29 = vpop.permute.xlu1 %837  ;;  %v951_v33 = vpop.permute.xlu0 %950 }
 0x2b2   : > { %v844_v30 = vsel %vm839_vm2, %v838_v29, 0 }
 0x2b3   : > { %2454 = vmatpush3.bf16.xpose.msra.mxu1 %v844_v30 }
 0x2b4   : > { %2465 = vmatprep.subr.bf16.mxu1 %v2764_v10 }
 0x2b5   : > { %v953_v31 = vpop.permute.xlu1 %952 }
 0x2b6   : > { %v958_v32 = vsel %vm839_vm2, %v953_v31, 0 }
 0x2ba   : > { %2456 = vmatmul.mubr.msk.bf16.vlgmr.msra.gmra.mrb[0].mxu1 %vm839_vm2, %v2992_v27 }
 0x2bb   : > { %2466 = vmatpush3.bf16.xpose.msra.mxu1 %v958_v32  ;;  %2467 = vmatprep.mubr.msk.bf16.mxu1 %vm2765_vm1, %v2764_v10 }
 0x2bc   : > { %2477 = vmatprep.subr.bf16.mxu1 %v2764_v10 }
 0x2c2   : > { %2468 = vmatmul.mubr.msk.bf16.vlgmr.msra.gmra.mrb[4].mxu1 %vm839_vm2, %v951_v33 }
 0x2c3   : > { %2479 = vmatprep.mubr.msk.bf16.mxu1 %vm2765_vm1, %v2764_v10  ;;  %2478 = vmatpush3.bf16.msra.mxu1 %v1067_v9 }
 0x2c4   : > { %2489 = vmatprep.subr.bf16.mxu1 %v2764_v10 }
 0x38d   : > { %v880_v34 = vpop.f32.mrb[0].mxu1 }
 0x38e   : > { %v886_v35 = vmul.f32 0.35355338, %v880_v34  ;;  %v2457_v36 = vpop.f32.mrb[1].mxu1 }
 0x38f   : > { %v883_v37 = vpop.f32.mrb[2].mxu1 }
 0x390   : > { %v2458_v38 = vpop.f32.mrb[3].mxu1  ;;  %v887_v39 = vsel %vm839_vm2, %v886_v35, -inf }
 0x391   : > { %888 = vmax.xlane.f32.xlu1 %v887_v39 }
 0x395   : > { %v994_v40 = vpop.f32.mrb[4].mxu1 }
 0x396   : > { %v1000_v41 = vmul.f32 0.35355338, %v994_v40  ;;  %v2469_v42 = vpop.f32.mrb[5].mxu1 }
 0x397   : > { %v997_v43 = vpop.f32.mrb[6].mxu1 }
 0x398   : > { %v2470_v44 = vpop.f32.mrb[7].mxu1  ;;  %v1001_v45 = vsel %vm839_vm2, %v1000_v41, -inf }
 0x399   : > { %1002 = vmax.xlane.f32.xlu0 %v1001_v45 }
 0x3af   : > { %1013 = vrot.lane.b32.xlu0 %v2992_v27, %s2769_s1  ;;  %s2389_s1 = sshll.u32 %s2922_s5, 4 }
 0x41e   : > { %v889_v46 = vpop.xlane.xlu1 %888 }
 0x41f   : > { %v890_v47 = vsub.f32 %v886_v35, %v889_v46 }
 0x421   : > { %v891_v48 = vmul.f32 1.442695, %v890_v47 }
 0x423   : > { %2676 = vpow2.f32 %v891_v48 }
 0x426   : > { %v1003_v49 = vpop.xlane.xlu0 %1002 }
 0x427   : > { %v1004_v50 = vsub.f32 %v1000_v41, %v1003_v49 }
 0x429   : > { %v1005_v51 = vmul.f32 1.442695, %v1004_v50 }
 0x42a   : > { %v1014_v62 = vpop.permute.xlu0 %1013 }
 0x42b   : > { %2678 = vpow2.f32 %v1005_v51  ;;  %v1019_v0 = vsel %vm904_vm3, %v1014_v62, 0 }
 0x42d   : > { %v2677_v52 = vpop.eup %2676 }
 0x42e   : > { %v893_v53 = vsel %vm839_vm2, %v2677_v52, 0.0 }
 0x42f   : > { %894 = vadd.xlane.f32.xlu1 %v893_v53 }
 0x435   : > { %v2679_v54 = vpop.eup %2678 }
 0x436   : > { %v1007_v55 = vsel %vm839_vm2, %v2679_v54, 0.0 }
 0x437   : > { %1008 = vadd.xlane.f32.xlu1 %v1007_v55  ;;  %v770_v55 = vld [vmem:[%s3353_s6 + $0x10] sm:$0xff] }
 0x448   : > { %899 = vrot.lane.b32.xlu1 %v2992_v27, %s2770_s0  ;;  %s2773_s0 = smov 48  }
 0x44c   : > { %1157 = vrot.lane.b32.xlu1 %v2992_v27, %s2771_s24  ;;  %s2774_s24 = smov 104  }
 0x450   : > { %1155 = vrot.lane.b32.xlu1 %v2992_v27, %s2772_s26  ;;  %s2775_s26 = smov 72  }
 0x4bc   : > { %v895_v56 = vpop.xlane.xlu1 %894 }
 0x4bd   : > { %2680 = vrcp.f32 %v895_v56  ;;  %v1267_v56 = vpack.c.bf16 %v770_v55, %v770_v55 }
 0x4c4   : > { %v1009_v57 = vpop.xlane.xlu1 %1008 }
 0x4c5   : > { %2682 = vrcp.f32 %v1009_v57  ;;  %v1272_v57 = vsel %vm904_vm3, %v1267_v56, 0  ;;  %v2666_v56 = vld [vmem:[%s3358_s12] sm:$0xff]  }
 0x4c7   : > { %v2681_v58 = vpop.eup %2680 }
 0x4c8   : > { %v897_v59 = vmul.f32 %v2681_v58, %v2677_v52  ;;  %v900_v60 = vpop.permute.xlu1 %899 }
 0x4c9   : > { %v906_v61 = vsel %vm904_vm3, %v900_v60, 0 }
 0x4ca   : > { %2460 = vmatpush3.bf16.msra.mxu0 %v906_v61  ;;  %v898_v63 = vpack.c.bf16 %v897_v59, %v897_v59 }
 0x4cb   : > { %2471 = vmatprep.subr.bf16.mxu0 %v2764_v10 }
 0x4cc   : > { %v1158_v16 = vpop.permute.xlu1 %1157 }
 0x4cd   : > { %2462 = vmatmul.mubr.msk.bf16.vlgmr.msra.gmra.mrb[4].mxu0 %vm839_vm2, %v898_v63  ;;  %v1163_v22 = vsel %vm839_vm2, %v1158_v16, 0 }
 0x4ce   : > { %2472 = vmatpush3.bf16.msra.mxu0 %v1019_v0  ;;  %2473 = vmatprep.mubr.msk.bf16.mxu0 %vm2765_vm1, %v2764_v10 }
 0x4cf   : > { %v2683_v1 = vpop.eup %2682  ;;  %2483 = vmatprep.subr.bf16.mxu0 %v2764_v10 }
 0x4d0   : > { %v1011_v2 = vmul.f32 %v2683_v1, %v2679_v54  ;;  %v1156_v24 = vpop.permute.xlu1 %1155 }
 0x4d2   : > { %v1012_v3 = vpack.c.bf16 %v1011_v2, %v1011_v2 }
 0x4d5   : > { %2474 = vmatmul.mubr.msk.bf16.vlgmr.msra.gmra.mrb[8].mxu0 %vm839_vm2, %v1012_v3 }
 0x4d6   : > { %2485 = vmatprep.mubr.msk.bf16.mxu0 %vm2765_vm1, %v2764_v10  ;;  %2484 = vmatpush3.bf16.msra.mxu0 %v1113_v7 }
 0x4d7   : > { %2495 = vmatprep.subr.bf16.mxu0 %v2764_v10 }
 0x5a0   : > { %v942_v11 = vpop.f32.mrb[4].mxu0 }
 0x5a1   : > { %v948_v12 = vpack.c.bf16 %v942_v11, %v942_v11  ;;  %v2463_v13 = vpop.f32.mrb[5].mxu0 }
 0x5a2   : > { %v945_v14 = vpop.f32.mrb[6].mxu0 }
 0x5a3   : > { %v2464_v15 = vpop.f32.mrb[7].mxu0  ;;  %2486 = vmatmul.mubr.msk.bf16.vlgmr.msra.gmra.mrb[12].mxu0 %vm839_vm2, %v948_v12 }
 0x5a4   : > { %2497 = vmatprep.mubr.msk.bf16.mxu0 %vm2765_vm1, %v2764_v10 }
 0x5a8   : > { %v1055_v17 = vpop.f32.mrb[8].mxu0 }
 0x5a9   : > { %v1061_v18 = vpack.c.bf16 %v1055_v17, %v1055_v17  ;;  %v2475_v19 = vpop.f32.mrb[9].mxu0 }
 0x5aa   : > { %v1058_v21 = vpop.f32.mrb[10].mxu0 }
 0x5ab   : > { %v2476_v23 = vpop.f32.mrb[11].mxu0  ;;  %2480 = vmatmul.mubr.msk.bf16.vlgmr.msra.gmra.mrb[8].mxu1 %vm839_vm2, %v1061_v18 }
 0x5ac   : > { %2490 = vmatpush3.bf16.xpose.msra.mxu1 %v1163_v22  ;;  %2491 = vmatprep.mubr.msk.bf16.mxu1 %vm2765_vm1, %v2764_v10 }
 0x5ad   : > { %2501 = vmatprep.subr.bf16.mxu1 %v2764_v10 }
 0x5b3   : > { %2492 = vmatmul.mubr.msk.bf16.vlgmr.msra.gmra.mrb[12].mxu1 %vm839_vm2, %v1156_v24 }
 0x5b4   : > { %2503 = vmatprep.mubr.msk.bf16.mxu1 %vm2765_vm1, %v2764_v10  ;;  %2502 = vmatpush3.bf16.msra.mxu1 %v1272_v57  ;;  %v2667_v57 = vld [vmem:[%s3358_s12 + $0x8] sm:$0xff]  }
 0x5b5   : > { %2513 = vmatprep.subr.bf16.mxu1 %v2764_v10 }
 0x676   : > { %v1149_v25 = vpop.f32.mrb[12].mxu0 }
 0x677   : > { %v2487_v26 = vpop.f32.mrb[13].mxu0 }
 0x678   : > { %v1152_v28 = vpop.f32.mrb[14].mxu0 }
 0x679   : > { %v2488_v29 = vpop.f32.mrb[15].mxu0 }
 0x67e   : > { %v1103_v30 = vpop.f32.mrb[8].mxu1 }
 0x67f   : > { %v3047_v31 = vadd.f32 %v1149_v25, %v1103_v30  ;;  %v2481_v32 = vpop.f32.mrb[9].mxu1 }
 0x680   : > { %v1106_v33 = vpop.f32.mrb[10].mxu1 }
 0x681   : > { %v2482_v34 = vpop.f32.mrb[11].mxu1 }
 0x686   : > { %v1199_v35 = vpop.f32.mrb[12].mxu1 }
 0x687   : > { %v1205_v36 = vmul.f32 0.35355338, %v1199_v35  ;;  %v2493_v37 = vpop.f32.mrb[13].mxu1 }
 0x688   : > { %v1202_v38 = vpop.f32.mrb[14].mxu1 }
 0x689   : > { %v2494_v39 = vpop.f32.mrb[15].mxu1  ;;  %v1206_v40 = vsel %vm839_vm2, %v1205_v36, -inf }
 0x68a   : > { %1207 = vmax.xlane.f32.xlu1 %v1206_v40 }
 0x69b   : > { %1218 = vrot.lane.b32.xlu1 %v2992_v27, %s2773_s0  ;;  %s3328_s0 = sand.u32 1, %s2754_s30  }
 0x69f   : > { %1315 = vrot.lane.b32.xlu1 %v2992_v27, %s2774_s24  ;;  %s3220_s24 = scalar_lea.vmem [#allocation2], %s3328_s0  ;;  %s3253_s0 = scalar_lea.hbm %s3319_s22, %s2389_s1 }
 0x717   : > { %v1208_v41 = vpop.xlane.xlu1 %1207 }
 0x718   : > { %v1209_v42 = vsub.f32 %v1205_v36, %v1208_v41 }
 0x71a   : > { %v1210_v43 = vmul.f32 1.442695, %v1209_v42 }
 0x71b   : > { %v1219_v44 = vpop.permute.xlu1 %1218 }
 0x71c   : > { %2684 = vpow2.f32 %v1210_v43  ;;  %v1224_v45 = vsel %vm904_vm3, %v1219_v44, 0 }
 0x71d   : > { %2496 = vmatpush3.bf16.msra.mxu0 %v1224_v45  ;;  %v2664_v45 = vld [vmem:[%s3355_s10] sm:$0xff]  }
 0x71e   : > { %2507 = vmatprep.subr.bf16.mxu0 %v2764_v10 }
 0x71f   : > { %v1316_v54 = vpop.permute.xlu1 %1315 }
 0x726   : > { %v2685_v46 = vpop.eup %2684 }
 0x727   : > { %v1212_v47 = vsel %vm839_vm2, %v2685_v46, 0.0 }
 0x728   : > { %1213 = vadd.xlane.f32.xlu0 %v1212_v47 }
 0x73e   : > { %1317 = vrot.lane.b32.xlu0 %v2992_v27, %s2775_s26 }
 0x7b5   : > { %v1214_v48 = vpop.xlane.xlu0 %1213 }
 0x7b6   : > { %2686 = vrcp.f32 %v1214_v48 }
 0x7b9   : > { %v1318_v51 = vpop.permute.xlu0 %1317 }
 0x7ba   : > { %v1323_v53 = vsel %vm839_vm2, %v1318_v51, 0 }
 0x7c0   : > { %v2687_v49 = vpop.eup %2686 }
 0x7c1   : > { %v1216_v50 = vmul.f32 %v2687_v49, %v2685_v46  ;;  %v2665_v46 = vld [vmem:[%s3355_s10 + $0x8] sm:$0xff]  }
 0x7c3   : > { %v1217_v52 = vpack.c.bf16 %v1216_v50, %v1216_v50  ;;  %v2357_v50 = vld [vmem:[%s3356_s8] ss:$0 sm:$0xff]  ;;  %s3362_s8 = sand.u32 1, %s2754_s30  }
 0x7c5   : > { %2498 = vmatmul.mubr.msk.bf16.vlgmr.msra.gmra.mrb[16].mxu0 %vm839_vm2, %v1217_v52  ;;  %v2358_v52 = vld [vmem:[%s3357_s9] ss:$0 sm:$0xff]  ;;  %s2218_s9 = scalar_lea.sflag [#allocation3], %s3362_s8 }
 0x7c6   : > { %2508 = vmatpush3.bf16.xpose.msra.mxu0 %v1323_v53  ;;  %2509 = vmatprep.mubr.msk.bf16.mxu0 %vm2765_vm1, %v2764_v10 }
 0x7c7   : > { %2519 = vmatprep.subr.bf16.mxu0 %v2764_v10 }
 0x7cd   : > { %2510 = vmatmul.mubr.msk.bf16.vlgmr.msra.gmra.mrb[20].mxu0 %vm839_vm2, %v1316_v54 }
 0x7ce   : > { %2521 = vmatprep.mubr.msk.bf16.mxu0 %vm2765_vm1, %v2764_v10 }
 0x898   : > { %v1260_v58 = vpop.f32.mrb[16].mxu0 }
 0x899   : > { %v1266_v59 = vpack.c.bf16 %v1260_v58, %v1260_v58  ;;  %v2499_v60 = vpop.f32.mrb[17].mxu0  ;;  %v2668_v58 = vld [vmem:[%s3358_s12 + $0x10] sm:$0xff]  }
 0x89a   : > { %v1263_v61 = vpop.f32.mrb[18].mxu0  ;;  %v2359_v60 = vld [vmem:[%s3359_s11] ss:$0 sm:$0xff] }
 0x89b   : > { %v2500_v62 = vpop.f32.mrb[19].mxu0  ;;  %2504 = vmatmul.mubr.msk.bf16.vlgmr.msra.gmra.mrb[16].mxu1 %vm839_vm2, %v1266_v59  ;;  %v2669_v59 = vld [vmem:[%s3358_s12 + $0x18] sm:$0xff]  }
 0x89c   : > { %2515 = vmatprep.mubr.msk.bf16.mxu1 %vm2765_vm1, %v2764_v10 }
 0x8a0   : > { %v1359_v63 = vpop.f32.mrb[20].mxu0 }
 0x8a1   : > { %v1365_v0 = vmul.f32 0.35355338, %v1359_v63  ;;  %v2511_v1 = vpop.f32.mrb[21].mxu0 }
 0x8a2   : > { %v1362_v2 = vpop.f32.mrb[22].mxu0 }
 0x8a3   : > { %v2512_v3 = vpop.f32.mrb[23].mxu0  ;;  %v1366_v4 = vsel %vm839_vm2, %v1365_v0, -inf }
 0x8a4   : > { %1367 = vmax.xlane.f32.xlu1 %v1366_v4 }
 0x931   : > { %v1368_v5 = vpop.xlane.xlu1 %1367 }
 0x932   : > { %v1369_v6 = vsub.f32 %v1365_v0, %v1368_v5 }
 0x934   : > { %v1370_v7 = vmul.f32 1.442695, %v1369_v6 }
 0x936   : > { %2688 = vpow2.f32 %v1370_v7 }
 0x940   : > { %v2689_v8 = vpop.eup %2688 }
 0x941   : > { %v1372_v9 = vsel %vm839_vm2, %v2689_v8, 0.0 }
 0x942   : > { %1373 = vadd.xlane.f32.xlu0 %v1372_v9 }
 0x958   : > { %1378 = vrot.lane.b32.xlu0 %v2992_v27, %s2776_s3  ;;  %v771_v27 = vld [vmem:[%s3353_s6 + $0x18] sm:$0xff]  ;;  %s2779_s3 = smov 4   ;;  %s2236_s6 = sshll.u32 %s3220_s24, 4  ;;  %s2237_s6 = int_to_ptr.vmem [resolvable:$true] %s2236_s6 }
 0x959   : > { %v1427_v23 = vpack.c.bf16 %v771_v27, %v771_v27  ;;  %s2700_s10 = scalar_lea.vmem %s2237_s6, 16 }
 0x95a   : > { %p2701_p11 = scmp.ne.s32.totalorder %s2237_s6, %s2700_s10 }
 0x95b   : > { %v1432_v24 = vsel %vm904_vm3, %v1427_v23, 0 }
 0x95c   : > { %2520 = vmatpush3.bf16.msra.mxu0 %v1432_v24  ;;  %p2702_p12 = pnand %p2701_p11, %p2939_p5 }
 0x95d   : > { %2533 = vmatprep.subr.bf16.mxu0 %v2764_v10 }
 0x95e   : > { %p2703_p13 = pneg %p2702_p12 }
 0x96e   : > { %v1308_v11 = vpop.f32.mrb[16].mxu1 }
 0x96f   : > { %v1314_v12 = vadd.f32 %v1308_v11, %v3047_v31  ;;  %v2505_v13 = vpop.f32.mrb[17].mxu1  ;;  %v2356_v31 = vld [vmem:[%s3354_s27] ss:$0 sm:$0xff]  ;;  %s2778_s27 = smov 124  }
 0x970   : > { %v1311_v14 = vpop.f32.mrb[18].mxu1  ;;  %v2363_v13 = vld [vmem:[%s3310_s13] ss:$0 sm:$0xff] }
 0x971   : > { %v2506_v15 = vpop.f32.mrb[19].mxu1 }
 0x9cf   : > { %v1374_v16 = vpop.xlane.xlu0 %1373 }
 0x9d0   : > { %2690 = vrcp.f32 %v1374_v16 }
 0x9d3   : > { %v1379_v17 = vpop.permute.xlu0 %1378 }
 0x9d4   : > { %v1384_v18 = vsel %vm904_vm3, %v1379_v17, 0 }
 0x9d5   : > { %2514 = vmatpush3.bf16.msra.mxu1 %v1384_v18 }
 0x9d6   : > { %2525 = vmatprep.subr.bf16.mxu1 %v2764_v10 }
 0x9da   : > { %v2691_v19 = vpop.eup %2690 }
 0x9db   : > { %v1376_v21 = vmul.f32 %v2691_v19, %v2689_v8 }
 0x9dd   : > { %v1377_v22 = vpack.c.bf16 %v1376_v21, %v1376_v21 }
 0x9df   : > { %2516 = vmatmul.mubr.msk.bf16.vlgmr.msra.gmra.mrb[20].mxu1 %vm839_vm2, %v1377_v22 }
 0x9e0   : > { %2529 = vmatprep.mubr.msk.bf16.mxu1 %vm2765_vm1, %v2764_v10  ;;  %2526 = vmatpush3.bf16.msra.mxu1 %v2664_v45 }
 0x9e1   : > { %2527 = vmatprep.subr.bf16.mxu1 %v2764_v10 }
 0x9e4   : > { %2528 = vmatpush3.bf16.msra.mxu1 %v2665_v46  ;;  %v1707_v46 = vld [vmem:[%s3314_s17] sm:$0x1] }
 0x9e5   : > { %2545 = vmatprep.subr.bf16.mxu1 %v2764_v10 }
 0xab2   : > { %v1420_v25 = vpop.f32.mrb[20].mxu1 }
 0xab3   : > { %v1426_v26 = vpack.c.bf16 %v1420_v25, %v1420_v25  ;;  %v2517_v28 = vpop.f32.mrb[21].mxu1 }
 0xab4   : > { %v1423_v29 = vpop.f32.mrb[22].mxu1  ;;  %v2671_v28 = vld [vmem:[%s3313_s16 + $0x8] sm:$0xff]  }
 0xab5   : > { %v2518_v30 = vpop.f32.mrb[23].mxu1  ;;  %2522 = vmatmul.mubr.msk.bf16.vlgmr.msra.gmra.mrb[24].mxu0 %vm839_vm2, %v1426_v26  ;;  %v2670_v26 = vld [vmem:[%s3313_s16] sm:$0xff]  }
 0xab6   : > { %2541 = vmatprep.mubr.msk.bf16.mxu0 %vm2765_vm1, %v2764_v10  ;;  %2534 = vmatpush3.bf16.msra.mxu0 %v2666_v56 }
 0xab7   : > { %2535 = vmatprep.subr.bf16.mxu0 %v2764_v10 }
 0xaba   : > { %2536 = vmatpush3.bf16.msra.mxu0 %v2667_v57 }
 0xabb   : > { %2537 = vmatprep.subr.bf16.mxu0 %v2764_v10 }
 0xabe   : > { %2538 = vmatpush3.bf16.msra.mxu0 %v2668_v58 }
 0xabf   : > { %2539 = vmatprep.subr.bf16.mxu0 %v2764_v10 }
 0xac2   : > { %2540 = vmatpush3.bf16.msra.mxu0 %v2669_v59 }
 0xb88   : > { %v1468_v32 = vpop.f32.mrb[24].mxu0 }
 0xb89   : > { %v1474_v33 = vadd.f32 %v1468_v32, %v1314_v12  ;;  %v2523_v34 = vpop.f32.mrb[25].mxu0 }
 0xb8a   : > { %v1471_v35 = vpop.f32.mrb[26].mxu0 }
 0xb8b   : > { %v1481_v36 = vadd.f32 %v2356_v31, %v1474_v33  ;;  %v2524_v37 = vpop.f32.mrb[27].mxu0  ;;  %v2369_v33 = vld [vmem:[%s3311_s14] ss:$0 sm:$0xff] }
 0xb8c   : > { %v2370_v35 = vld [vmem:[%s3312_s15] ss:$0 sm:$0xff] }
 0xb8d   : > { %v1482_v38 = vadd.f32 %v1481_v36, %v2982_v20 }
 0xb8f   : > { %v1485_v39 = vsel %vm734_vm0, %v1482_v38, 0.0 }
 0xb90   : > { %1486 = vadd.xlane.f32.xlu1 %v1485_v39  ;;  %v2672_v39 = vld [vmem:[%s3315_s18] sm:$0xff]  }
 0xc1d   : > { %v1487_v40 = vpop.xlane.xlu1 %1486 }
 0xc1e   : > { %v1488_v41 = vmul.f32 0.03125, %v1487_v40  ;;  %v2673_v40 = vld [vmem:[%s3315_s18 + $0x8] sm:$0xff]  }
 0xc20   : > { %v1489_v42 = vsub.f32 %v1482_v38, %v1488_v41  ;;  %v1824_v41 = vld [vmem:[%s3316_s19] sm:$0xff] }
 0xc22   : > { %v1490_v43 = vmul.f32 %v1489_v42, %v1489_v42 }
 0xc24   : > { %v1491_v44 = vsel %vm734_vm0, %v1490_v43, 0.0  ;;  %v2777_v43 = vmov 0.0|0.0  }
 0xc25   : > { %1492 = vadd.xlane.f32.xlu1 %v1491_v44  ;;  %2589 = vmatprep.subr.bf16.mxu0 %v2777_v43 }
 0xcb2   : > { %v1493_v20 = vpop.xlane.xlu1 %1492 }
 0xcb3   : > { %v1494_v47 = vmul.f32 0.03125, %v1493_v20 }
 0xcb5   : > { %v1495_v48 = vadd.f32 1e-12, %v1494_v47 }
 0xcb7   : > { %2692 = vrsqrt.f32 %v1495_v48 }
 0xcc1   : > { %v2693_v49 = vpop.eup %2692 }
 0xcc2   : > { %v1497_v51 = vmul.f32 %v2693_v49, %v1489_v42  ;;  %v1825_v42 = vld [vmem:[%s3316_s19 + $0x8] sm:$0xff] }
 0xcc3   : > { %v3167_v44 = vpack.c.bf16 %v1825_v42, %v1824_v41 }
 0xcc4   : > { %v1504_v53 = vmul.f32 %v2357_v50, %v1497_v51 }
 0xcc6   : > { %v1511_v54 = vadd.f32 %v2358_v52, %v1504_v53 }
 0xcc8   : > { %v1516_v55 = vpack.c.bf16 %v1511_v54, %v1511_v54 }
 0xcca   : > { %2530 = vmatmul.mubr.msk.bf16.vlgmr.msra.gmra.mrb[24].mxu1 %vm734_vm0, %v1516_v55 }
 0xccb   : > { %2549 = vmatprep.mubr.msk.bf16.mxu1 %vm2765_vm1, %v2764_v10  ;;  %2546 = vmatpush3.bf16.msra.mxu1 %v2670_v26 }
 0xccc   : > { %2547 = vmatprep.subr.bf16.mxu1 %v2764_v10 }
 0xccf   : > { %2548 = vmatpush3.bf16.msra.mxu1 %v2671_v28 }
 0xcd0   : > { %2553 = vmatprep.subr.bf16.mxu1 %v2764_v10 }
 0xd9d   : > { %v1573_v61 = vpop.f32.mrb[24].mxu1 }
 0xd9e   : > { %v1574_v62 = vadd.f32 %v2359_v60, %v1573_v61  ;;  %v2531_v63 = vpop.f32.mrb[25].mxu1 }
 0xd9f   : > { %v1576_v0 = vpop.f32.mrb[26].mxu1 }
 0xda0   : > { %v1580_v1 = vmul.f32 0.044715, %v1574_v62  ;;  %v2532_v2 = vpop.f32.mrb[27].mxu1  ;;  %v1579_v8 = vmul.f32 0.5, %v1574_v62 }
 0xda1   : > { %v1915_v2 = vld [vmem:[%s3317_s20] sm:$0x1] }
 0xda2   : > { %v1581_v3 = vmul.f32 %v1580_v1, %v1574_v62 }
 0xda4   : > { %v1582_v4 = vmul.f32 %v1581_v3, %v1574_v62 }
 0xda6   : > { %v1583_v5 = vadd.f32 %v1582_v4, %v1574_v62 }
 0xda8   : > { %v1584_v6 = vmul.f32 0.7978846, %v1583_v5 }
 0xdaa   : > { %2694 = vtanh.f32 %v1584_v6 }
 0xdb4   : > { %v2695_v7 = vpop.eup %2694 }
 0xdb5   : > { %v1586_v9 = vadd.f32 1.0, %v2695_v7 }
 0xdb7   : > { %v1587_v11 = vmul.f32 %v1586_v9, %v1579_v8 }
 0xdb9   : > { %v1596_v12 = vpack.c.bf16 %v1587_v11, %v1587_v11 }
 0xdbb   : > { %2542 = vmatmul.mubr.msk.bf16.vlgmr.msra.gmra.mrb[28].mxu0 %vm1628_vm4, %v1596_v12  ;;  %v2103_v12 = vld [vmem:[%s3317_s20] sm:$0x1] }
 0xdbc   : > { %2565 = vmatprep.mubr.msk.f32.mxu0 %vm2765_vm1, %v2764_v10  ;;  %2592 = vmatpush3.bf16.xpose.msk.msra.mxu0 %vm3171_vm6, %v3167_v44 }
 0xdbd   : > { %2596 = vmatprep.subr.bf16.mxu0 %v2777_v43 }
 0xe8e   : > { %v1666_v14 = vpop.f32.mrb[28].mxu0 }
 0xe8f   : > { %v1667_v15 = vadd.f32 %v2363_v13, %v1666_v14  ;;  %v2543_v16 = vpop.f32.mrb[29].mxu0 }
 0xe90   : > { %v1669_v17 = vpop.f32.mrb[30].mxu0 }
 0xe91   : > { %v2544_v18 = vpop.f32.mrb[31].mxu0  ;;  %v1672_v19 = vadd.f32 %v1667_v15, %v1511_v54  ;;  %v1826_v17 = vlaneseq }
 0xe93   : > { %v1675_v21 = vsel %vm734_vm0, %v1672_v19, 0.0  ;;  %v3211_v18 = vand.u32 127, %v1826_v17 }
 0xe94   : > { %1676 = vadd.xlane.f32.xlu1 %v1675_v21 }
 0xf21   : > { %v1677_v22 = vpop.xlane.xlu1 %1676 }
 0xf22   : > { %v1678_v27 = vmul.f32 0.03125, %v1677_v22 }
 0xf24   : > { %v1679_v23 = vsub.f32 %v1672_v19, %v1678_v27  ;;  %v1923_v19 = vcvt.s32.f32 %v3211_v18 }
 0xf26   : > { %v1680_v24 = vmul.f32 %v1679_v23, %v1679_v23 }
 0xf28   : > { %v1681_v25 = vsel %vm734_vm0, %v1680_v24, 0.0 }
 0xf29   : > { %1682 = vadd.xlane.f32.xlu1 %v1681_v25 }
 0xfb6   : > { %v1683_v29 = vpop.xlane.xlu1 %1682 }
 0xfb7   : > { %v1684_v30 = vmul.f32 0.03125, %v1683_v29 }
 0xfb9   : > { %v1685_v31 = vadd.f32 1e-12, %v1684_v30 }
 0xfbb   : > { %2696 = vrsqrt.f32 %v1685_v31 }
 0xfc5   : > { %v2697_v32 = vpop.eup %2696 }
 0xfc6   : > { %v1687_v34 = vmul.f32 %v2697_v32, %v1679_v23 }
 0xfc8   : > { %v1694_v36 = vmul.f32 %v2369_v33, %v1687_v34 }
 0xfca   : > { %v1701_v37 = vadd.f32 %v2370_v35, %v1694_v36 }
 0xfcc   : > { %v1706_v38 = vpack.c.bf16 %v1701_v37, %v1701_v37 }
 0xfce   : > { %2550 = vmatmul.mubr.msk.bf16.vlgmr.msra.gmra.mrb[28].mxu1 %vm734_vm0, %v1706_v38 }
 0xfcf   : > { %2557 = vmatprep.mubr.msk.bf16.mxu1 %vm2765_vm1, %v2764_v10  ;;  %2554 = vmatpush3.bf16.msra.mxu1 %v2672_v39 }
 0xfd0   : > { %2555 = vmatprep.subr.bf16.mxu1 %v2764_v10 }
 0xfd3   : > { %2556 = vmatpush3.bf16.msra.mxu1 %v2673_v40 }
 0xfd4   : > { %2593 = vmatprep.subr.bf16.mxu1 %v2777_v43 }
0x10a1   : > { %v1757_v20 = vpop.f32.mrb[28].mxu1 }
0x10a2   : > { %v1758_v47 = vadd.f32 %v1757_v20, %v1707_v46  ;;  %v2551_v48 = vpop.f32.mrb[29].mxu1 }
0x10a3   : > { %v1760_v49 = vpop.f32.mrb[30].mxu1 }
0x10a4   : > { %2698 = vtanh.f32 %v1758_v47  ;;  %v2552_v50 = vpop.f32.mrb[31].mxu1 }
0x10ae   : > { %v2699_v51 = vpop.eup %2698 }
0x10af   : > { %v1768_v52 = vpack.c.bf16 %v2699_v51, %v2699_v51 }
0x10b1   : > { %2558 = vmatmul.mubr.msk.bf16.vlgmr.msra.gmra.mrb[32].mxu1 %vm734_vm0, %v1768_v52 }
0x10b2   : > { %2595 = vmatpush3.bf16.msra.mxu1 %v3167_v44  ;;  %2572 = vmatprep.mubr.msk.f32.mxu1 %vm2765_vm1, %v2764_v10 }
0x10b3   : > { %2600 = vmatprep.subr.bf16.mxu1 %v2777_v43 }
0x1184   : > { %v3185_v53 = vpop.f32.mrb[32].mxu1 }
0x1185   : > { %2027 = vrot.lane.b32.xlu1 %v3185_v53, %s2778_s27  ;;  %v2559_v54 = vpop.f32.mrb[33].mxu1  ;;  %2566 = vmatmul.mubr.msk.f32.vlgmr.msra.gmra.mrb[32].mxu0 %vm1833_vm5, %v3185_v53  ;;  %v1828_v55 = vmul.f32 %v3185_v53, %v3185_v53 }
0x1186   : > { %v1821_v56 = vpop.f32.mrb[34].mxu1  ;;  %2599 = vmatpush3.bf16.xpose.msk.msra.mxu0 %vm3171_vm6, %v3167_v44  ;;  %2579 = vmatprep.mubr.msk.f32.mxu0 %vm2765_vm1, %v2764_v10 }
0x1187   : > { %2021 = vrot.lane.b32.xlu0 %v1828_v55, %s2778_s27  ;;  %v2560_v57 = vpop.f32.mrb[35].mxu1  ;;  %v1830_v58 = vsel %vm1829_vm7, %v1828_v55, 0.0 }
0x11a6   : > { %1831 = vadd.xlane.f32.xlu0 %v1830_v58 }
0x11f7   : > { %v3198_v59 = vpop.permute.xlu1 %2027 }
0x11f8   : > { %2580 = vmatmul.mubr.msk.f32.vlgmr.msra.gmra.mrb[34].mxu0 %vm1833_vm5, %v3198_v59 }
0x11f9   : > { %v2022_v60 = vpop.permute.xlu0 %2021 }
0x11fa   : > { %v2024_v61 = vsel %vm1829_vm7, %v2022_v60, 0.0 }
0x11fb   : > { %2025 = vadd.xlane.f32.xlu1 %v2024_v61 }
0x1233   : > { %v1832_v1 = vpop.xlane.xlu0 %1831 }
0x1258   : > { %v1909_v62 = vpop.f32.mrb[32].mxu0 }
0x1259   : > { %v1913_v63 = vmul.f32 2.0, %v1909_v62  ;;  %v2567_v0 = vpop.f32.mrb[33].mxu0 }
0x125b   : > { %v1914_v3 = vsub.f32 %v1832_v1, %v1913_v63 }
0x125d   : > { %v1916_v4 = vadd.f32 %v1915_v2, %v1914_v3 }
0x125f   : > { %v1917_v5 = vsub.f32 0.0, %v1916_v4 }
0x1261   : > { %v1919_v6 = vsel %vm1918_vm8, %v1917_v5, -inf }
0x1262   : > { %1920 = vmax.xlane.f32.xlu0 %v1919_v6 }
0x1288   : > { %v2026_v11 = vpop.xlane.xlu1 %2025 }
0x12cb   : > { %v2097_v7 = vpop.f32.mrb[34].mxu0 }
0x12cc   : > { %v2101_v8 = vmul.f32 2.0, %v2097_v7  ;;  %v2581_v9 = vpop.f32.mrb[35].mxu0 }
0x12ce   : > { %v2102_v13 = vsub.f32 %v2026_v11, %v2101_v8 }
0x12d0   : > { %v2104_v14 = vadd.f32 %v2103_v12, %v2102_v13 }
0x12d2   : > { %v2105_v15 = vsub.f32 0.0, %v2104_v14 }
0x12d4   : > { %v2106_v16 = vsel %vm1918_vm8, %v2105_v15, -inf }
0x12d5   : > { %2107 = vmax.xlane.f32.xlu0 %v2106_v16 }
0x12ef   : > { %v1921_v21 = vpop.xlane.xlu0 %1920 }
0x12f0   : > { %vm1922_vm9 = vcmp.ge.f32.partialorder %v1917_v5, %v1921_v21 }
0x12f1   : > { %v1924_v22 = vsel %vm1922_vm9, %v1923_v19, 16.0 }
0x12f2   : > { %v1925_v27 = vsel %vm1918_vm8, %v1924_v22, inf }
0x12f3   : > { %1926 = vmin.xlane.f32.xlu0 %v1925_v27 }
0x1362   : > { %v2108_v23 = vpop.xlane.xlu0 %2107 }
0x1363   : > { %vm2109_vm10 = vcmp.ge.f32.partialorder %v2105_v15, %v2108_v23 }
0x1364   : > { %v2110_v24 = vsel %vm2109_vm10, %v1923_v19, 16.0 }
0x1365   : > { %v2111_v25 = vsel %vm1918_vm8, %v2110_v24, inf }
0x1366   : > { %2112 = vmin.xlane.f32.xlu0 %v2111_v25 }
0x1380   : > { %v1927_v26 = vpop.xlane.xlu0 %1926 }
0x1381   : > { %v2603_v28 = vtrunc.f32 %v1927_v26 }
0x1383   : > { %v2604_v29 = vcvt.f32.s32 %v2603_v28 }
0x1385   : > { %vm1929_vm13 = vcmp.eq.s32.totalorder %v3211_v18, %v2604_v29  ;;  %2019 = vst.msk [vmem:[%s3220_s24] sm:$0x1] %vm2018_vm11, %v2604_v29  ;;  %v2012_v32 = vadd.s32 1, %v2604_v29 }
0x1386   : > { %v2380_v30 = vsel %vm1929_vm13, 1.0, %v2764_v10 }
0x1387   : > { %2573 = vmatmul.mubr.msk.f32.vlgmr.msra.gmra.mrb[36].mxu1 %vm1932_vm12, %v2380_v30  ;;  %vm2013_vm15 = vcmp.eq.s32.totalorder %v3211_v18, %v2012_v32 }
0x1388   : > { %2602 = vmatpush3.bf16.msra.mxu1 %v3167_v44  ;;  %2586 = vmatprep.mubr.msk.f32.mxu1 %vm2765_vm1, %v2764_v10  ;;  %v2382_v37 = vsel %vm2013_vm15, 1.0, %v2764_v10 }
0x13f3   : > { %v2113_v31 = vpop.xlane.xlu0 %2112 }
0x13f4   : > { %v2605_v33 = vtrunc.f32 %v2113_v31 }
0x13f6   : > { %v2606_v34 = vcvt.f32.s32 %v2605_v33 }
0x13f8   : > { %vm2115_vm0 = vcmp.eq.s32.totalorder %v3211_v18, %v2606_v34  ;;  %v2198_v35 = vadd.s32 1, %v2606_v34  ;;  %2210 = vst.msk [vmem:[%s3220_s24] sm:$0x1] %vm2209_vm14, %v2606_v34 }
0x13f9   : > { %v2386_v36 = vsel %vm2115_vm0, 1.0, %v2764_v10 }
0x13fa   : > { %vm2199_vm2 = vcmp.eq.s32.totalorder %v3211_v18, %v2198_v35  ;;  %2587 = vmatmul.mubr.msk.f32.vlgmr.msra.gmra.mrb[38].mxu1 %vm1932_vm12, %v2386_v36 }
0x13fb   : > { %v2388_v38 = vsel %vm2199_vm2, 1.0, %v2764_v10 }
0x13fc   : > { %v2202_v39 = vadd.f32 %v2388_v38, %v2382_v37 }
0x145a   : > { %v2002_v40 = vpop.f32.mrb[36].mxu1 }
0x145b   : > { %v2006_v41 = vsub.f32 %v2002_v40, %v3185_v53  ;;  %2017 = vst.msk [vmem:[%s3240_s2] sm:$0x1] %vm1829_vm7, %v2002_v40  ;;  %v2574_v42 = vpop.f32.mrb[37].mxu1 }
0x145d   : > { %v2007_v43 = vmul.f32 %v2006_v41, %v2006_v41 }
0x145f   : > { %v2008_v44 = vsel %vm1829_vm7, %v2007_v43, 0.0 }
0x1460   : > { %2009 = vadd.xlane.f32.xlu1 %v2008_v44 }
0x14cd   : > { %v2187_v10 = vpop.f32.mrb[38].mxu1 }
0x14ce   : > { %v2192_v45 = vsub.f32 %v2187_v10, %v3198_v59  ;;  %2204 = vrot.lane.b32.xlu1 %v2187_v10, %s2779_s3  ;;  %v2588_v46 = vpop.f32.mrb[39].mxu1  ;;  %s2780_s3 = smov [#allocation2]  }
0x14cf   : > { %s2704_s11 = sshll.u32 %s2780_s3, 4  ;;  %s2705_s11 = int_to_ptr.vmem [resolvable:$false] %s2704_s11 }
0x14d0   : > { %v2193_v20 = vmul.f32 %v2192_v45, %v2192_v45  ;;  %s2706_s12 = scalar_lea.vmem %s2705_s11, 32  ;;  %p2707_p0 = scmp.lt.s32.totalorder %s2237_s6, %s2705_s11 }
0x14d1   : > { %p2708_p1 = scmp.lt.s32.totalorder %s2706_s12, %s2700_s10 }
0x14d2   : > { %v2194_v47 = vsel %vm1829_vm7, %v2193_v20, 0.0 }
0x14d3   : > { %2195 = vadd.xlane.f32.xlu0 %v2194_v47  ;;  %p2709_p2 = por %p2708_p1, %p2707_p0 }
0x14d5   : > { %p2710_p3 = pnand %p2709_p2, %p2703_p13 }
0x14d7   : > { %2713 = shalt.err (!%p2710_p3)
}
0x14d8   : > { %s2714_s8 = scalar_lea.hbm %s3253_s0, 16  ;;  %s2718_s1 = scalar_lea.hbm %s3319_s22, 32 }
0x14d9   : > { %p2715_p4 = scmp.ne.s32.totalorder %s3253_s0, %s2714_s8  ;;  %p2719_p9 = scmp.lt.u32.totalorder %s3253_s0, %s3319_s22 }
0x14da   : > { %p2720_p10 = scmp.lt.u32.totalorder %s2718_s1, %s2714_s8  ;;  %p2722_p12 = scmp.lt.u32.totalorder %s2714_s8, %s3253_s0 }
0x14db   : > { %p2716_p7 = pnand %p2715_p4, %p2939_p5 }
0x14dc   : > { %p2721_p11 = por %p2720_p10, %p2719_p9 }
0x14dd   : > { %p2717_p8 = pneg %p2716_p7 }
0x14de   : > { %p2723_p13 = por %p2722_p12, %p2721_p11 }
0x14e0   : > { %p2724_p0 = pnand %p2723_p13, %p2717_p8 }
0x14e2   : > { %2727 = shalt.err (!%p2724_p0)
}
0x14e3   : > { %2607 = dma.vmem_to_hbm [thread:$0]  (%p2939_p5), %s2237_s6, 16, %s3253_s0, %s2218_s9   ;;  %vm2207_vm1 = vcmask 57376   ;;  %vm2211_vm3 = vcmp.eq.s32.totalorder %v3211_v18, 0 }
0x14e4   : > { %s721_s27 = scalar_lea.vmem %s3320_s23, %s2951_s29 }
0x14ed   : > { %v2010_v48 = vpop.xlane.xlu1 %2009 }
0x1540   : > { %v2205_v49 = vpop.permute.xlu1 %2204 }
0x1541   : > { %2208 = vst.msk [vmem:[%s3240_s2] sm:$0x1] %vm2207_vm1, %v2205_v49 }
0x1560   : > { %v2196_v50 = vpop.xlane.xlu0 %2195 }
0x1561   : > { %v2197_v51 = vadd.f32 %v2196_v50, %v2010_v48 }
0x1563   : > { %v2212_v52 = vsel %vm2211_vm3, %v2197_v51, %v2202_v39 }
0x1564   : > { %2213 = vst [vmem:[%s721_s27] sm:$0x1] %v2212_v52 }
0x1565 PF: > { %p2613_p1 = scmp.ge.s32.totalorder %s2762_s25, 2  ;;  %s2257_s9 = sand.u32 1, %s2750_s4  }
0x1566   : > { %s2258_s7 = scalar_lea.sflag [#allocation3], %s2257_s9 }
0x1567   : > { %p2610_p5 = pnand %p2613_p1, %p2943_p6 }
0x1569   : > { %2745 = dma.done.wait (!%p2610_p5), %s2258_s7, 16  }
0x156a   : > { %2747 = vsyncadd (!%p2610_p5), %s2258_s7, 4294967280  ;;  %s3363_s25 = sld [smem:[#allocation6_spill]]  ;;  %s3364_s0 = sld [smem:[#allocation5_spill]] }
0x156b   : > { %s3365_s24 = sld [smem:[#allocation7_spill]]  ;;  %s3366_s4 = smov %s2754_s30 }
0x1570   : > { %p34_p2 = scmp.ge.s32.totalorder %s3363_s25, 4   ;;  %s3367_s30 = smov %s3364_s0 }
0x1572   :  { %36 = sbr.rel (!%p34_p2) target bundleno = 17 (0x11), region = 163 }
0x1579   :  { %2268 = vsyncpa [#allocation3], 1 }
0x157a   :  { %2270 = vsyncpa [#allocation3 + $0x1], 1 }

</bundles_post_ra>
